<compile_context>
chip_gen: v5e
topology: v5e:2x2
jax: 0.10.0
libtpu: 0.0.40
codegen_flags: <defaults>
</compile_context>

<pallas_src>
import math
import functools

import jax
import jax.numpy as jnp
from jax import lax
from jax.experimental import pallas as pl
from jax.experimental.pallas import tpu as pltpu

SEQ = 300  # fixed by nn.Linear(300, 300) in the reference module


def _round_up(x, m):
    return ((x + m - 1) // m) * m


# ----------------------------------------------------------------------------
# Fused Pallas kernel: both co-attention branches for one batch element.
# Everything is 2D; all matmuls contract over the last dim of the LHS and
# either dim of the RHS (standard / trans_b), which lowers directly to the MXU.
# ----------------------------------------------------------------------------
def _dense_coattn_kernel(jt_ref, v1t_ref, v2t_ref,
                         wk1_ref, bk1_ref, wv1_ref, bv1_ref,
                         wk2_ref, bk2_ref, wv2_ref, bv2_ref,
                         o1_ref, o2_ref, *, scale):
    jointT = jt_ref[0]                    # (Dp, Sp)  zero-padded rows>=D, cols>=300

    def branch(vt_ref, wk_ref, bk_ref, wv_ref, bv_ref, out_ref):
        vt = vt_ref[0]                    # (dm, Sp)  value_m transposed, padded cols zero
        # key[d, t] = sum_s vt[d, s] * Wk[t, s] + bk[t]          -> (dm, Sp)
        key = lax.dot_general(vt, wk_ref[...], (((1,), (1,)), ((), ())),
                              preferred_element_type=jnp.float32) + bk_ref[...]
        # valT[o, s] = sum_d Wv[o, d] * vt[d, s] + bv[o]          -> (dm, Sp)
        valT = jnp.dot(wv_ref[...], vt,
                       preferred_element_type=jnp.float32) + bv_ref[...]
        # scoresT[e, d] = tanh(scale * sum_t jointT[e, t] * key[d, t])   -> (Dp, dm)
        scoresT = jnp.tanh(scale * lax.dot_general(
            jointT, key, (((1,), (1,)), ((), ())),
            preferred_element_type=jnp.float32))
        # TODO(synk): dropout(scores) omitted (eval mode => identity).
        # weightedT[e, s] = relu(tanh(sum_d scoresT[e, d] * valT[d, s])) -> (Dp, Sp)
        wT = jnp.tanh(jnp.dot(scoresT, valT, preferred_element_type=jnp.float32))
        out_ref[0] = jnp.maximum(wT, 0.0).astype(out_ref.dtype)   # lane-dense store

    branch(v1t_ref, wk1_ref, bk1_ref, wv1_ref, bv1_ref, o1_ref)
    branch(v2t_ref, wk2_ref, bk2_ref, wv2_ref, bv2_ref, o2_ref)


# ----------------------------------------------------------------------------
# Parameter init (deterministic, PyTorch nn.Linear-style uniform init)
# ----------------------------------------------------------------------------
def _init_linear(key, fan_out, fan_in):
    kw, kb = jax.random.split(key)
    bound = 1.0 / math.sqrt(fan_in)
    w = jax.random.uniform(kw, (fan_out, fan_in), jnp.float32, -bound, bound)
    b = jax.random.uniform(kb, (fan_out,), jnp.float32, -bound, bound)
    return w, b


def init_params(key, dim1, dim2):
    ks = jax.random.split(key, 4)
    return {
        "key1": _init_linear(ks[0], SEQ, SEQ),
        "key2": _init_linear(ks[1], SEQ, SEQ),
        "value1": _init_linear(ks[2], dim1, dim1),
        "value2": _init_linear(ks[3], dim2, dim2),
    }


# ----------------------------------------------------------------------------
# Full DenseCoAttn forward: one fused pallas_call; wrapper only pads/transposes.
# ----------------------------------------------------------------------------
def dense_coattn(params, value1, value2):
    B, S, d1 = value1.shape
    d2 = value2.shape[-1]
    D = d1 + d2
    Sp = _round_up(S, 128)        # 300 -> 384 : lane/sublane-aligned seq axis
    Dp = _round_up(D, 128)        # 48  -> 128 : lane-dense joint feature axis
    pad_s = Sp - S

    wk1, bk1 = params["key1"]
    wk2, bk2 = params["key2"]
    wv1, bv1 = params["value1"]
    wv2, bv2 = params["value2"]

    # Wrapper-side padding / transposition (cheap XLA ops on tiny tensors).
    v1p = jnp.pad(value1, ((0, 0), (0, pad_s), (0, 0)))
    v2p = jnp.pad(value2, ((0, 0), (0, pad_s), (0, 0)))
    v1t = jnp.swapaxes(v1p, 1, 2)                              # (B, d1, Sp)
    v2t = jnp.swapaxes(v2p, 1, 2)                              # (B, d2, Sp)
    jointT = jnp.concatenate([v1t, v2t], axis=1)               # (B, D,  Sp)
    jointT = jnp.pad(jointT, ((0, 0), (0, Dp - D), (0, 0)))    # (B, Dp, Sp)

    # Key weights/biases zero-padded along both seq axes -> exactness preserved.
    wk1p = jnp.pad(wk1, ((0, pad_s), (0, pad_s)))
    wk2p = jnp.pad(wk2, ((0, pad_s), (0, pad_s)))
    bk1p = jnp.pad(bk1, (0, pad_s)).reshape(1, Sp)
    bk2p = jnp.pad(bk2, (0, pad_s)).reshape(1, Sp)
    bv1c = bv1.reshape(d1, 1)
    bv2c = bv2.reshape(d2, 1)

    scale = 1.0 / math.sqrt(D)    # d_k = real (unpadded) joint width
    kernel = functools.partial(_dense_coattn_kernel, scale=scale)

    flops = 2 * B * sum(dm * Sp * Sp + dm * dm * Sp + 2 * Dp * Sp * dm
                        for dm in (d1, d2))
    transc = B * sum(Dp * dm + Dp * Sp for dm in (d1, d2))
    bytes_acc = 4 * (B * Sp * (Dp + d1 + d2)
                     + 2 * (Sp * Sp + Sp) + d1 * d1 + d1 + d2 * d2 + d2
                     + 2 * B * Dp * Sp)

    out1t, out2t = pl.pallas_call(
        kernel,
        out_shape=(jax.ShapeDtypeStruct((B, Dp, Sp), value1.dtype),
                   jax.ShapeDtypeStruct((B, Dp, Sp), value2.dtype)),
        grid=(B,),
        in_specs=[
            pl.BlockSpec((1, Dp, Sp), lambda i: (i, 0, 0)),   # jointT
            pl.BlockSpec((1, d1, Sp), lambda i: (i, 0, 0)),   # value1^T
            pl.BlockSpec((1, d2, Sp), lambda i: (i, 0, 0)),   # value2^T
            pl.BlockSpec((Sp, Sp), lambda i: (0, 0)),         # Wk1
            pl.BlockSpec((1, Sp), lambda i: (0, 0)),          # bk1
            pl.BlockSpec((d1, d1), lambda i: (0, 0)),         # Wv1
            pl.BlockSpec((d1, 1), lambda i: (0, 0)),          # bv1
            pl.BlockSpec((Sp, Sp), lambda i: (0, 0)),         # Wk2
            pl.BlockSpec((1, Sp), lambda i: (0, 0)),          # bk2
            pl.BlockSpec((d2, d2), lambda i: (0, 0)),         # Wv2
            pl.BlockSpec((d2, 1), lambda i: (0, 0)),          # bv2
        ],
        out_specs=(pl.BlockSpec((1, Dp, Sp), lambda i: (i, 0, 0)),
                   pl.BlockSpec((1, Dp, Sp), lambda i: (i, 0, 0))),
        compiler_params=pltpu.CompilerParams(
            dimension_semantics=("parallel",)),
        cost_estimate=pl.CostEstimate(flops=flops, transcendentals=transc,
                                      bytes_accessed=bytes_acc),
    )(jointT, v1t, v2t, wk1p, bk1p, wv1, bv1c, wk2p, bk2p, wv2, bv2c)

    # Back to (B, S, D) natural orientation; drop the zero padding.
    w1 = jnp.swapaxes(out1t[:, :D, :S], 1, 2)
    w2 = jnp.swapaxes(out2t[:, :D, :S], 1, 2)
    return w1, w2


# Pure-JAX reference (mirrors the PyTorch forward exactly) for verification.
def dense_coattn_ref(params, value1, value2):
    joint = jnp.concatenate([value1, value2], axis=-1)
    D = joint.shape[-1]

    def branch(valm, wk, bk, wv, bv):
        key = jnp.einsum("bsd,ts->bdt", valm, wk) + bk                  # (B, dm, S)
        val = jnp.einsum("bsd,od->bso", valm, wv) + bv                  # (B, S, dm)
        scores = jnp.tanh(
            jnp.einsum("bds,bse->bde", key, joint) / math.sqrt(D))      # (B, dm, D)
        weighted = jnp.tanh(jnp.einsum("bsd,bde->bse", val, scores))    # (B, S, D)
        return jnp.maximum(weighted, 0.0)

    w1 = branch(value1, *params["key1"], *params["value1"])
    w2 = branch(value2, *params["key2"], *params["value2"])
    return w1, w2


if __name__ == "__main__":
    B, dim1, dim2 = 2, 32, 16
    root = jax.random.PRNGKey(0)
    kp, k1, k2 = jax.random.split(root, 3)

    params = init_params(kp, dim1, dim2)
    value1 = jax.random.normal(k1, (B, SEQ, dim1), jnp.float32)
    value2 = jax.random.normal(k2, (B, SEQ, dim2), jnp.float32)

    w1, w2 = jax.jit(dense_coattn)(params, value1, value2)
    jax.block_until_ready((w1, w2))

    r1, r2 = dense_coattn_ref(params, value1, value2)
    assert w1.shape == (B, SEQ, dim1 + dim2) and w2.shape == (B, SEQ, dim1 + dim2)
    assert jnp.allclose(w1, r1, rtol=1e-3, atol=1e-3)
    assert jnp.allclose(w2, r2, rtol=1e-3, atol=1e-3)

    print("KERNEL_OK")
</pallas_src>

<mosaic_0001>
module attributes {stable_mosaic.version = 11 : i64} {
  func.func @_dense_coattn_kernel(%arg0: i32, %arg1: memref<1x128x384xf32, #tpu.memory_space<vmem>>, %arg2: memref<1x32x384xf32, #tpu.memory_space<vmem>>, %arg3: memref<1x16x384xf32, #tpu.memory_space<vmem>>, %arg4: memref<384x384xf32, #tpu.memory_space<vmem>>, %arg5: memref<1x384xf32, #tpu.memory_space<vmem>>, %arg6: memref<32x32xf32, #tpu.memory_space<vmem>>, %arg7: memref<32x1xf32, #tpu.memory_space<vmem>>, %arg8: memref<384x384xf32, #tpu.memory_space<vmem>>, %arg9: memref<1x384xf32, #tpu.memory_space<vmem>>, %arg10: memref<16x16xf32, #tpu.memory_space<vmem>>, %arg11: memref<16x1xf32, #tpu.memory_space<vmem>>, %arg12: memref<1x128x384xf32, #tpu.memory_space<vmem>>, %arg13: memref<1x128x384xf32, #tpu.memory_space<vmem>>) attributes {dimension_semantics = [#tpu.dimension_semantics<parallel>], iteration_bounds = array<i64: 2>, scalar_prefetch = 0 : i64, scratch_operands = 0 : i64, tpu.core_type = #tpu.core_type<tc>, window_params = [{transform_indices = @transform_0, window_bounds = array<i64: 1, 128, 384>}, {transform_indices = @transform_1, window_bounds = array<i64: 1, 32, 384>}, {transform_indices = @transform_2, window_bounds = array<i64: 1, 16, 384>}, {pipeline_mode = #tpu.pipeline_mode<synchronous>, transform_indices = @transform_3, window_bounds = array<i64: 384, 384>}, {pipeline_mode = #tpu.pipeline_mode<synchronous>, transform_indices = @transform_4, window_bounds = array<i64: 1, 384>}, {pipeline_mode = #tpu.pipeline_mode<synchronous>, transform_indices = @transform_5, window_bounds = array<i64: 32, 32>}, {pipeline_mode = #tpu.pipeline_mode<synchronous>, transform_indices = @transform_6, window_bounds = array<i64: 32, 1>}, {pipeline_mode = #tpu.pipeline_mode<synchronous>, transform_indices = @transform_7, window_bounds = array<i64: 384, 384>}, {pipeline_mode = #tpu.pipeline_mode<synchronous>, transform_indices = @transform_8, window_bounds = array<i64: 1, 384>}, {pipeline_mode = #tpu.pipeline_mode<synchronous>, transform_indices = @transform_9, window_bounds = array<i64: 16, 16>}, {pipeline_mode = #tpu.pipeline_mode<synchronous>, transform_indices = @transform_10, window_bounds = array<i64: 16, 1>}, {transform_indices = @transform_11, window_bounds = array<i64: 1, 128, 384>}, {transform_indices = @transform_12, window_bounds = array<i64: 1, 128, 384>}]} {
    %c0 = arith.constant 0 : index
    %c0_0 = arith.constant 0 : index
    %c0_1 = arith.constant 0 : index
    %0 = vector.load %arg1[%c0, %c0_0, %c0_1] : memref<1x128x384xf32, #tpu.memory_space<vmem>>, vector<1x128x384xf32>
    %1 = vector.shape_cast %0 : vector<1x128x384xf32> to vector<128x384xf32>
    %c0_2 = arith.constant 0 : index
    %c0_3 = arith.constant 0 : index
    %c0_4 = arith.constant 0 : index
    %2 = vector.load %arg2[%c0_2, %c0_3, %c0_4] : memref<1x32x384xf32, #tpu.memory_space<vmem>>, vector<1x32x384xf32>
    %3 = vector.shape_cast %2 : vector<1x32x384xf32> to vector<32x384xf32>
    %c0_5 = arith.constant 0 : index
    %c0_6 = arith.constant 0 : index
    %4 = vector.load %arg4[%c0_5, %c0_6] : memref<384x384xf32, #tpu.memory_space<vmem>>, vector<384x384xf32>
    %cst = arith.constant dense<0.000000e+00> : vector<32x384xf32>
    %5 = tpu.matmul %3, %4, %cst {dimension_numbers = #tpu.dot_dimension_numbers<[1], [1], [0], [0], [0, 0, 1, 0], [], []>} : vector<32x384xf32>, vector<384x384xf32>, vector<32x384xf32> -> vector<32x384xf32>
    %c0_7 = arith.constant 0 : index
    %c0_8 = arith.constant 0 : index
    %6 = vector.load %arg5[%c0_7, %c0_8] : memref<1x384xf32, #tpu.memory_space<vmem>>, vector<1x384xf32>
    %7 = vector.broadcast %6 : vector<1x384xf32> to vector<32x384xf32>
    %8 = arith.addf %5, %7 : vector<32x384xf32>
    %c0_9 = arith.constant 0 : index
    %c0_10 = arith.constant 0 : index
    %9 = vector.load %arg6[%c0_9, %c0_10] : memref<32x32xf32, #tpu.memory_space<vmem>>, vector<32x32xf32>
    %cst_11 = arith.constant dense<0.000000e+00> : vector<32x384xf32>
    %10 = tpu.matmul %9, %3, %cst_11 {dimension_numbers = #tpu.dot_dimension_numbers<[1], [0], [0], [1], [0, 0, 1, 1], [], []>} : vector<32x32xf32>, vector<32x384xf32>, vector<32x384xf32> -> vector<32x384xf32>
    %c0_12 = arith.constant 0 : index
    %c0_13 = arith.constant 0 : index
    %11 = vector.load %arg7[%c0_12, %c0_13] : memref<32x1xf32, #tpu.memory_space<vmem>>, vector<32x1xf32>
    %12 = vector.broadcast %11 : vector<32x1xf32> to vector<32x384xf32>
    %13 = arith.addf %10, %12 : vector<32x384xf32>
    %cst_14 = arith.constant dense<0.000000e+00> : vector<128x32xf32>
    %14 = tpu.matmul %1, %8, %cst_14 {dimension_numbers = #tpu.dot_dimension_numbers<[1], [1], [0], [0], [0, 0, 1, 0], [], []>} : vector<128x384xf32>, vector<32x384xf32>, vector<128x32xf32> -> vector<128x32xf32>
    %cst_15 = arith.constant 0.144337565 : f32
    %15 = vector.broadcast %cst_15 : f32 to vector<128x32xf32>
    %16 = arith.mulf %15, %14 : vector<128x32xf32>
    %17 = math.tanh %16 : vector<128x32xf32>
    %cst_16 = arith.constant dense<0.000000e+00> : vector<128x384xf32>
    %18 = tpu.matmul %17, %13, %cst_16 {dimension_numbers = #tpu.dot_dimension_numbers<[1], [0], [0], [1], [0, 0, 1, 1], [], []>} : vector<128x32xf32>, vector<32x384xf32>, vector<128x384xf32> -> vector<128x384xf32>
    %19 = math.tanh %18 : vector<128x384xf32>
    %cst_17 = arith.constant 0.000000e+00 : f32
    %20 = vector.broadcast %cst_17 : f32 to vector<128x384xf32>
    %21 = arith.maximumf %19, %20 : vector<128x384xf32>
    %c0_18 = arith.constant 0 : index
    %c0_19 = arith.constant 0 : index
    %c0_20 = arith.constant 0 : index
    %22 = vector.load %arg12[%c0_18, %c0_19, %c0_20] : memref<1x128x384xf32, #tpu.memory_space<vmem>>, vector<1x128x384xf32>
    %23 = vector.shape_cast %22 : vector<1x128x384xf32> to vector<128x384xf32>
    %24 = vector.shape_cast %21 : vector<128x384xf32> to vector<1x128x384xf32>
    tpu.vector_store %arg12[%c0_18, %c0_19, %c0_20], %24 {strides = array<i32>} : memref<1x128x384xf32, #tpu.memory_space<vmem>>, vector<1x128x384xf32>,
    %c0_21 = arith.constant 0 : index
    %c0_22 = arith.constant 0 : index
    %c0_23 = arith.constant 0 : index
    %25 = vector.load %arg3[%c0_21, %c0_22, %c0_23] : memref<1x16x384xf32, #tpu.memory_space<vmem>>, vector<1x16x384xf32>
    %26 = vector.shape_cast %25 : vector<1x16x384xf32> to vector<16x384xf32>
    %c0_24 = arith.constant 0 : index
    %c0_25 = arith.constant 0 : index
    %27 = vector.load %arg8[%c0_24, %c0_25] : memref<384x384xf32, #tpu.memory_space<vmem>>, vector<384x384xf32>
    %cst_26 = arith.constant dense<0.000000e+00> : vector<16x384xf32>
    %28 = tpu.matmul %26, %27, %cst_26 {dimension_numbers = #tpu.dot_dimension_numbers<[1], [1], [0], [0], [0, 0, 1, 0], [], []>} : vector<16x384xf32>, vector<384x384xf32>, vector<16x384xf32> -> vector<16x384xf32>
    %c0_27 = arith.constant 0 : index
    %c0_28 = arith.constant 0 : index
    %29 = vector.load %arg9[%c0_27, %c0_28] : memref<1x384xf32, #tpu.memory_space<vmem>>, vector<1x384xf32>
    %30 = vector.broadcast %29 : vector<1x384xf32> to vector<16x384xf32>
    %31 = arith.addf %28, %30 : vector<16x384xf32>
    %c0_29 = arith.constant 0 : index
    %c0_30 = arith.constant 0 : index
    %32 = vector.load %arg10[%c0_29, %c0_30] : memref<16x16xf32, #tpu.memory_space<vmem>>, vector<16x16xf32>
    %cst_31 = arith.constant dense<0.000000e+00> : vector<16x384xf32>
    %33 = tpu.matmul %32, %26, %cst_31 {dimension_numbers = #tpu.dot_dimension_numbers<[1], [0], [0], [1], [0, 0, 1, 1], [], []>} : vector<16x16xf32>, vector<16x384xf32>, vector<16x384xf32> -> vector<16x384xf32>
    %c0_32 = arith.constant 0 : index
    %c0_33 = arith.constant 0 : index
    %34 = vector.load %arg11[%c0_32, %c0_33] : memref<16x1xf32, #tpu.memory_space<vmem>>, vector<16x1xf32>
    %35 = vector.broadcast %34 : vector<16x1xf32> to vector<16x384xf32>
    %36 = arith.addf %33, %35 : vector<16x384xf32>
    %cst_34 = arith.constant dense<0.000000e+00> : vector<128x16xf32>
    %37 = tpu.matmul %1, %31, %cst_34 {dimension_numbers = #tpu.dot_dimension_numbers<[1], [1], [0], [0], [0, 0, 1, 0], [], []>} : vector<128x384xf32>, vector<16x384xf32>, vector<128x16xf32> -> vector<128x16xf32>
    %cst_35 = arith.constant 0.144337565 : f32
    %38 = vector.broadcast %cst_35 : f32 to vector<128x16xf32>
    %39 = arith.mulf %38, %37 : vector<128x16xf32>
    %40 = math.tanh %39 : vector<128x16xf32>
    %cst_36 = arith.constant dense<0.000000e+00> : vector<128x384xf32>
    %41 = tpu.matmul %40, %36, %cst_36 {dimension_numbers = #tpu.dot_dimension_numbers<[1], [0], [0], [1], [0, 0, 1, 1], [], []>} : vector<128x16xf32>, vector<16x384xf32>, vector<128x384xf32> -> vector<128x384xf32>
    %42 = math.tanh %41 : vector<128x384xf32>
    %cst_37 = arith.constant 0.000000e+00 : f32
    %43 = vector.broadcast %cst_37 : f32 to vector<128x384xf32>
    %44 = arith.maximumf %42, %43 : vector<128x384xf32>
    %c0_38 = arith.constant 0 : index
    %c0_39 = arith.constant 0 : index
    %c0_40 = arith.constant 0 : index
    %45 = vector.load %arg13[%c0_38, %c0_39, %c0_40] : memref<1x128x384xf32, #tpu.memory_space<vmem>>, vector<1x128x384xf32>
    %46 = vector.shape_cast %45 : vector<1x128x384xf32> to vector<128x384xf32>
    %47 = vector.shape_cast %44 : vector<128x384xf32> to vector<1x128x384xf32>
    tpu.vector_store %arg13[%c0_38, %c0_39, %c0_40], %47 {strides = array<i32>} : memref<1x128x384xf32, #tpu.memory_space<vmem>>, vector<1x128x384xf32>,
    return
  }
  func.func @transform_0(%arg0: i32) -> (i32, i32, i32) {
    %c0_i32 = arith.constant 0 : i32
    %c0_i32_0 = arith.constant 0 : i32
    %c0_i32_1 = arith.constant 0 : i32
    return %arg0, %c0_i32, %c0_i32_0 : i32, i32, i32
  }
  func.func @transform_1(%arg0: i32) -> (i32, i32, i32) {
    %c0_i32 = arith.constant 0 : i32
    %c0_i32_0 = arith.constant 0 : i32
    %c0_i32_1 = arith.constant 0 : i32
    return %arg0, %c0_i32, %c0_i32_0 : i32, i32, i32
  }
  func.func @transform_2(%arg0: i32) -> (i32, i32, i32) {
    %c0_i32 = arith.constant 0 : i32
    %c0_i32_0 = arith.constant 0 : i32
    %c0_i32_1 = arith.constant 0 : i32
    return %arg0, %c0_i32, %c0_i32_0 : i32, i32, i32
  }
  func.func @transform_3(%arg0: i32) -> (i32, i32) {
    %c0_i32 = arith.constant 0 : i32
    %c0_i32_0 = arith.constant 0 : i32
    %c0_i32_1 = arith.constant 0 : i32
    return %c0_i32, %c0_i32_0 : i32, i32
  }
  func.func @transform_4(%arg0: i32) -> (i32, i32) {
    %c0_i32 = arith.constant 0 : i32
    %c0_i32_0 = arith.constant 0 : i32
    %c0_i32_1 = arith.constant 0 : i32
    return %c0_i32, %c0_i32_0 : i32, i32
  }
  func.func @transform_5(%arg0: i32) -> (i32, i32) {
    %c0_i32 = arith.constant 0 : i32
    %c0_i32_0 = arith.constant 0 : i32
    %c0_i32_1 = arith.constant 0 : i32
    return %c0_i32, %c0_i32_0 : i32, i32
  }
  func.func @transform_6(%arg0: i32) -> (i32, i32) {
    %c0_i32 = arith.constant 0 : i32
    %c0_i32_0 = arith.constant 0 : i32
    %c0_i32_1 = arith.constant 0 : i32
    return %c0_i32, %c0_i32_0 : i32, i32
  }
  func.func @transform_7(%arg0: i32) -> (i32, i32) {
    %c0_i32 = arith.constant 0 : i32
    %c0_i32_0 = arith.constant 0 : i32
    %c0_i32_1 = arith.constant 0 : i32
    return %c0_i32, %c0_i32_0 : i32, i32
  }
  func.func @transform_8(%arg0: i32) -> (i32, i32) {
    %c0_i32 = arith.constant 0 : i32
    %c0_i32_0 = arith.constant 0 : i32
    %c0_i32_1 = arith.constant 0 : i32
    return %c0_i32, %c0_i32_0 : i32, i32
  }
  func.func @transform_9(%arg0: i32) -> (i32, i32) {
    %c0_i32 = arith.constant 0 : i32
    %c0_i32_0 = arith.constant 0 : i32
    %c0_i32_1 = arith.constant 0 : i32
    return %c0_i32, %c0_i32_0 : i32, i32
  }
  func.func @transform_10(%arg0: i32) -> (i32, i32) {
    %c0_i32 = arith.constant 0 : i32
    %c0_i32_0 = arith.constant 0 : i32
    %c0_i32_1 = arith.constant 0 : i32
    return %c0_i32, %c0_i32_0 : i32, i32
  }
  func.func @transform_11(%arg0: i32) -> (i32, i32, i32) {
    %c0_i32 = arith.constant 0 : i32
    %c0_i32_0 = arith.constant 0 : i32
    %c0_i32_1 = arith.constant 0 : i32
    return %arg0, %c0_i32, %c0_i32_0 : i32, i32, i32
  }
  func.func @transform_12(%arg0: i32) -> (i32, i32, i32) {
    %c0_i32 = arith.constant 0 : i32
    %c0_i32_0 = arith.constant 0 : i32
    %c0_i32_1 = arith.constant 0 : i32
    return %arg0, %c0_i32, %c0_i32_0 : i32, i32, i32
  }
}

</mosaic_0001>

<bundles_post_ra>
// kernel: dense_coattn.1
= control target key start
LH: loop header
LB: loop body
LE: loop exit
PB: predicated region body
PF: predicated region fallthrough
CT: control target
= control target key end

     0   :  { %s3386_s21 = smov 0   ;;  %s4852_s0 = inlined_call_operand.vmem [shape: f32[2,128,384], index: 0, kind: input, shape index: {}]   ;;  %s4853_s1 = inlined_call_operand.vmem [shape: f32[2,32,384], index: 1, kind: input, shape index: {}]   ;;  %s4854_s2 = inlined_call_operand.vmem [shape: f32[2,16,384], index: 2, kind: input, shape index: {}]   ;;  %s4855_s3 = inlined_call_operand.vmem [shape: f32[384,384], index: 3, kind: input, shape index: {}]   ;;  %s4856_s4 = inlined_call_operand.vmem [shape: f32[1,384], index: 4, kind: input, shape index: {}]   ;;  %s4857_s5 = inlined_call_operand.vmem [shape: f32[32,32], index: 5, kind: input, shape index: {}]   ;;  %s4858_s6 = inlined_call_operand.vmem [shape: f32[32,1], index: 6, kind: input, shape index: {}]   ;;  %s4859_s7 = inlined_call_operand.vmem [shape: f32[384,384], index: 7, kind: input, shape index: {}]   ;;  %s4860_s8 = inlined_call_operand.vmem [shape: f32[1,384], index: 8, kind: input, shape index: {}]   ;;  %s4861_s9 = inlined_call_operand.vmem [shape: f32[16,16], index: 9, kind: input, shape index: {}]   ;;  %s4862_s10 = inlined_call_operand.vmem [shape: f32[16,1], index: 10, kind: input, shape index: {}]   ;;  %s4863_s11 = inlined_call_operand.vmem [shape: f32[2,128,384], index: 11, kind: output, shape index: {0}]   ;;  %s4864_s12 = inlined_call_operand.vmem [shape: f32[2,128,384], index: 12, kind: output, shape index: {1}]  }
   0x1 LB: > { %s2863_s22 = sadd.s32 4294967295, %s3318_s21   ;;  %p2867_p0 = scmp.ge.s32.totalorder %s3318_s21, 1  ;;  %s3318_s21 = sphi %s3386_s21, %s23_s21  }
   0x2   : > { %p385_p1 = scmp.lt.s32.totalorder %s3318_s21, 3 }
   0x4   : > { %p386_p2 = pnand %p2867_p0, %p385_p1 }
   0x5   : > { %p442_p3 = scmp.lt.s32.totalorder (!%p386_p2), %s2863_s22, 1 }
   0x6   : > { %389 = sbr.rel (%p386_p2) target bundleno = 1319 (0x527), region = 64 }
   0xb   : > { %v572_v0 = vld [vmem:[%s4855_s3 + $0x168] sm:$0xff]  ;;  %v573_v1 = vld [vmem:[%s4855_s3 + $0x170] sm:$0xff]  ;;  %v570_v3 = vld [vmem:[%s4855_s3 + $0x158] sm:$0xff]  ;;  %s4866_s22 = smov (!%p442_p3, %s2863_s22), 1  ;;  %vm968_vm0 = vcmask 261120   ;;  %vm2061_vm1 = vcmask 130048  }
   0xc   : > { %679 = vmatpush.xpose.msra.mxu2 %v572_v0  ;;  %708 = vmatpush.xpose.msra.mxu1 %v573_v1  ;;  %v569_v2 = vld [vmem:[%s4855_s3 + $0x150] sm:$0xff]  ;;  %v566_v4 = vld [vmem:[%s4855_s3 + $0x138] sm:$0xff]  ;;  %v567_v5 = vld [vmem:[%s4855_s3 + $0x140] sm:$0xff]  ;;  %s2994_s17 = smul.u32 96, %s4866_s22 }
   0xd   : > { %v563_v6 = vld [vmem:[%s4855_s3 + $0x120] sm:$0xff]  ;;  %v564_v7 = vld [vmem:[%s4855_s3 + $0x128] sm:$0xff]  ;;  %v561_v9 = vld [vmem:[%s4855_s3 + $0x110] sm:$0xff]  ;;  %s2995_s24 = smul.u32 48, %s4866_s22 }
   0xe   : > { %v560_v8 = vld [vmem:[%s4855_s3 + $0x108] sm:$0xff]  ;;  %v557_v10 = vld [vmem:[%s4855_s3 + $0xf0] sm:$0xff]  ;;  %v558_v11 = vld [vmem:[%s4855_s3 + $0xf8] sm:$0xff]  ;;  %s3557_s14 = scalar_lea.vmem %s4853_s1, %s2994_s17  ;;  %s3960_s17 = smul.u32 384, %s4866_s22 }
   0xf   : > { %v620_v12 = vld [vmem:[%s4855_s3 + $0x2e8] sm:$0xff]  ;;  %v554_v13 = vld [vmem:[%s4855_s3 + $0xd8] sm:$0xff]  ;;  %v555_v14 = vld [vmem:[%s4855_s3 + $0xe0] sm:$0xff]  ;;  %s4319_s18 = scalar_lea.vmem %s4854_s2, %s2995_s24 }
  0x10   : > { %680 = vmatpush.xpose.msra.mxu2 %v569_v2  ;;  %709 = vmatpush.xpose.msra.mxu1 %v570_v3  ;;  %v617_v15 = vld [vmem:[%s4855_s3 + $0x2d0] sm:$0xff]  ;;  %v551_v16 = vld [vmem:[%s4855_s3 + $0xc0] sm:$0xff]  ;;  %v552_v17 = vld [vmem:[%s4855_s3 + $0xc8] sm:$0xff]  ;;  %s3966_s26 = scalar_lea.vmem %s4852_s0, %s3960_s17  ;;  %s4525_s29 = scalar_lea.vmem %s4863_s11, %s3960_s17 }
  0x11   : > { %766 = vmatpush.xpose.msra.mxu3 %v620_v12  ;;  %v614_v18 = vld [vmem:[%s4855_s3 + $0x2b8] sm:$0xff]  ;;  %v621_v19 = vld [vmem:[%s4855_s3 + $0x2f0] sm:$0xff]  ;;  %v548_v20 = vld [vmem:[%s4855_s3 + $0xa8] sm:$0xff] }
  0x12   : > { %795 = vmatpush.xpose.msra.mxu0 %v621_v19  ;;  %v549_v21 = vld [vmem:[%s4855_s3 + $0xb0] sm:$0xff]  ;;  %v611_v22 = vld [vmem:[%s4855_s3 + $0x2a0] sm:$0xff]  ;;  %v618_v23 = vld [vmem:[%s4855_s3 + $0x2d8] sm:$0xff] }
  0x13   : > { %v545_v24 = vld [vmem:[%s4855_s3 + $0x90] sm:$0xff]  ;;  %v546_v25 = vld [vmem:[%s4855_s3 + $0x98] sm:$0xff]  ;;  %v608_v26 = vld [vmem:[%s4855_s3 + $0x288] sm:$0xff] }
  0x14   : > { %681 = vmatpush.xpose.msra.mxu2 %v566_v4  ;;  %710 = vmatpush.xpose.msra.mxu1 %v567_v5  ;;  %v615_v27 = vld [vmem:[%s4855_s3 + $0x2c0] sm:$0xff]  ;;  %v542_v28 = vld [vmem:[%s4855_s3 + $0x78] sm:$0xff]  ;;  %v605_v30 = vld [vmem:[%s4855_s3 + $0x270] sm:$0xff] }
  0x15   : > { %767 = vmatpush.xpose.msra.mxu3 %v617_v15  ;;  %v543_v29 = vld [vmem:[%s4855_s3 + $0x80] sm:$0xff]  ;;  %v612_v31 = vld [vmem:[%s4855_s3 + $0x2a8] sm:$0xff]  ;;  %v602_v34 = vld [vmem:[%s4855_s3 + $0x258] sm:$0xff] }
  0x16   : > { %796 = vmatpush.xpose.msra.mxu0 %v618_v23  ;;  %v539_v32 = vld [vmem:[%s4855_s3 + $0x60] sm:$0xff]  ;;  %v540_v33 = vld [vmem:[%s4855_s3 + $0x68] sm:$0xff]  ;;  %v609_v35 = vld [vmem:[%s4855_s3 + $0x290] sm:$0xff] }
  0x17   : > { %v536_v36 = vld [vmem:[%s4855_s3 + $0x48] sm:$0xff]  ;;  %v537_v37 = vld [vmem:[%s4855_s3 + $0x50] sm:$0xff]  ;;  %v599_v38 = vld [vmem:[%s4855_s3 + $0x240] sm:$0xff] }
  0x18   : > { %682 = vmatpush.xpose.msra.mxu2 %v563_v6  ;;  %711 = vmatpush.xpose.msra.mxu1 %v564_v7  ;;  %v606_v39 = vld [vmem:[%s4855_s3 + $0x278] sm:$0xff]  ;;  %v533_v40 = vld [vmem:[%s4855_s3 + $0x30] sm:$0xff]  ;;  %v596_v42 = vld [vmem:[%s4855_s3 + $0x228] sm:$0xff] }
  0x19   : > { %768 = vmatpush.xpose.msra.mxu3 %v614_v18  ;;  %v534_v41 = vld [vmem:[%s4855_s3 + $0x38] sm:$0xff]  ;;  %v603_v43 = vld [vmem:[%s4855_s3 + $0x260] sm:$0xff]  ;;  %v593_v46 = vld [vmem:[%s4855_s3 + $0x210] sm:$0xff] }
  0x1a   : > { %797 = vmatpush.xpose.msra.mxu0 %v615_v27  ;;  %v530_v44 = vld [vmem:[%s4855_s3 + $0x18] sm:$0xff]  ;;  %v531_v45 = vld [vmem:[%s4855_s3 + $0x20] sm:$0xff]  ;;  %v600_v47 = vld [vmem:[%s4855_s3 + $0x248] sm:$0xff] }
  0x1b   : > { %v527_v48 = vld [vmem:[%s4855_s3] sm:$0xff]  ;;  %v574_v49 = vld [vmem:[%s4855_s3 + $0x178] sm:$0xff]  ;;  %v528_v50 = vld [vmem:[%s4855_s3 + $0x8] sm:$0xff] }
  0x1c   : > { %683 = vmatpush.xpose.msra.mxu2 %v560_v8  ;;  %712 = vmatpush.xpose.msra.mxu1 %v561_v9  ;;  %v622_v51 = vld [vmem:[%s4855_s3 + $0x2f8] sm:$0xff]  ;;  %v597_v53 = vld [vmem:[%s4855_s3 + $0x230] sm:$0xff]  ;;  %v3569_v54 = vld [vmem:[%s3557_s14] sm:$0xff] }
  0x1d   : > { %769 = vmatpush.xpose.msra.mxu3 %v611_v22  ;;  %v590_v52 = vld [vmem:[%s4855_s3 + $0x1f8] sm:$0xff]  ;;  %v3572_v55 = vld [vmem:[%s3557_s14 + $0x8] sm:$0xff]  ;;  %v571_v56 = vld [vmem:[%s4855_s3 + $0x160] sm:$0xff] }
  0x1e   : > { %798 = vmatpush.xpose.msra.mxu0 %v612_v31  ;;  %v619_v57 = vld [vmem:[%s4855_s3 + $0x2e0] sm:$0xff]  ;;  %v594_v59 = vld [vmem:[%s4855_s3 + $0x218] sm:$0xff]  ;;  %v568_v60 = vld [vmem:[%s4855_s3 + $0x148] sm:$0xff] }
  0x1f   : > { %v587_v58 = vld [vmem:[%s4855_s3 + $0x1e0] sm:$0xff]  ;;  %v616_v61 = vld [vmem:[%s4855_s3 + $0x2c8] sm:$0xff]  ;;  %v3601_v0 = vld [vmem:[%s3557_s14 + $0x18] sm:$0xff] }
  0x20   : > { %684 = vmatpush.xpose.msra.mxu2 %v557_v10  ;;  %713 = vmatpush.xpose.msra.mxu1 %v558_v11  ;;  %v584_v62 = vld [vmem:[%s4855_s3 + $0x1c8] sm:$0xff]  ;;  %v591_v63 = vld [vmem:[%s4855_s3 + $0x200] sm:$0xff]  ;;  %v565_v2 = vld [vmem:[%s4855_s3 + $0x130] sm:$0xff] }
  0x21   : > { %770 = vmatpush.xpose.msra.mxu3 %v608_v26  ;;  %v3604_v1 = vld [vmem:[%s3557_s14 + $0x20] sm:$0xff]  ;;  %v613_v3 = vld [vmem:[%s4855_s3 + $0x2b0] sm:$0xff]  ;;  %v588_v5 = vld [vmem:[%s4855_s3 + $0x1e8] sm:$0xff] }
  0x22   : > { %799 = vmatpush.xpose.msra.mxu0 %v609_v35  ;;  %v581_v4 = vld [vmem:[%s4855_s3 + $0x1b0] sm:$0xff]  ;;  %v562_v6 = vld [vmem:[%s4855_s3 + $0x118] sm:$0xff]  ;;  %v559_v12 = vld [vmem:[%s4855_s3 + $0x100] sm:$0xff] }
  0x23   : > { %v610_v7 = vld [vmem:[%s4855_s3 + $0x298] sm:$0xff]  ;;  %v585_v9 = vld [vmem:[%s4855_s3 + $0x1d0] sm:$0xff]  ;;  %v579_v18 = vld [vmem:[%s4855_s3 + $0x1a0] sm:$0xff] }
  0x24   : > { %685 = vmatpush.xpose.msra.mxu2 %v554_v13  ;;  %714 = vmatpush.xpose.msra.mxu1 %v555_v14  ;;  %v578_v8 = vld [vmem:[%s4855_s3 + $0x198] sm:$0xff]  ;;  %v3633_v10 = vld [vmem:[%s3557_s14 + $0x30] sm:$0xff]  ;;  %v607_v13 = vld [vmem:[%s4855_s3 + $0x280] sm:$0xff] }
  0x25   : > { %771 = vmatpush.xpose.msra.mxu3 %v605_v30  ;;  %v3636_v11 = vld [vmem:[%s3557_s14 + $0x38] sm:$0xff]  ;;  %v575_v14 = vld [vmem:[%s4855_s3 + $0x180] sm:$0xff]  ;;  %v3663_v19 = vld [vmem:[%s3557_s14 + $0x48] sm:$0xff] }
  0x26   : > { %800 = vmatpush.xpose.msra.mxu0 %v606_v39  ;;  %v582_v15 = vld [vmem:[%s4855_s3 + $0x1b8] sm:$0xff]  ;;  %v601_v22 = vld [vmem:[%s4855_s3 + $0x250] sm:$0xff]  ;;  %v576_v23 = vld [vmem:[%s4855_s3 + $0x188] sm:$0xff] }
  0x27   : > { %v669_v26 = vld [vmem:[%s4855_s3 + $0x470] sm:$0xff]  ;;  %v547_v27 = vld [vmem:[%s4855_s3 + $0xa0] sm:$0xff]  ;;  %v544_v30 = vld [vmem:[%s4855_s3 + $0x88] sm:$0xff] }
  0x28   : > { %686 = vmatpush.xpose.msra.mxu2 %v551_v16  ;;  %715 = vmatpush.xpose.msra.mxu1 %v552_v17  ;;  %v556_v16 = vld [vmem:[%s4855_s3 + $0xe8] sm:$0xff]  ;;  %v589_v35 = vld [vmem:[%s4855_s3 + $0x1f0] sm:$0xff]  ;;  %v586_v39 = vld [vmem:[%s4855_s3 + $0x1d8] sm:$0xff] }
  0x29   : > { %772 = vmatpush.xpose.msra.mxu3 %v602_v34  ;;  %v604_v17 = vld [vmem:[%s4855_s3 + $0x268] sm:$0xff]  ;;  %v541_v34 = vld [vmem:[%s4855_s3 + $0x70] sm:$0xff] }
  0x2a   : > { %801 = vmatpush.xpose.msra.mxu0 %v603_v43  ;;  %v592_v31 = vld [vmem:[%s4855_s3 + $0x208] sm:$0xff]  ;;  %v583_v43 = vld [vmem:[%s4855_s3 + $0x1c0] sm:$0xff] }
  0x2c   : > { %687 = vmatpush.xpose.msra.mxu2 %v548_v20  ;;  %716 = vmatpush.xpose.msra.mxu1 %v549_v21  ;;  %v3666_v20 = vld [vmem:[%s3557_s14 + $0x50] sm:$0xff] }
  0x2d   : > { %773 = vmatpush.xpose.msra.mxu3 %v599_v38  ;;  %v553_v21 = vld [vmem:[%s4855_s3 + $0xd0] sm:$0xff]  ;;  %v538_v38 = vld [vmem:[%s4855_s3 + $0x58] sm:$0xff] }
  0x2e   : > { %802 = vmatpush.xpose.msra.mxu0 %v600_v47  ;;  %v580_v47 = vld [vmem:[%s4855_s3 + $0x1a8] sm:$0xff] }
  0x30   : > { %688 = vmatpush.xpose.msra.mxu2 %v545_v24  ;;  %717 = vmatpush.xpose.msra.mxu1 %v546_v25  ;;  %v550_v24 = vld [vmem:[%s4855_s3 + $0xb8] sm:$0xff] }
  0x31   : > { %774 = vmatpush.xpose.msra.mxu3 %v596_v42  ;;  %v598_v25 = vld [vmem:[%s4855_s3 + $0x238] sm:$0xff]  ;;  %v535_v42 = vld [vmem:[%s4855_s3 + $0x40] sm:$0xff] }
  0x32   : > { %803 = vmatpush.xpose.msra.mxu0 %v597_v53  ;;  %v655_v53 = vld [vmem:[%s4855_s3 + $0x400] sm:$0xff] }
  0x34   : > { %689 = vmatpush.xpose.msra.mxu2 %v542_v28  ;;  %718 = vmatpush.xpose.msra.mxu1 %v543_v29  ;;  %v595_v28 = vld [vmem:[%s4855_s3 + $0x220] sm:$0xff]  ;;  %v666_v29 = vld [vmem:[%s4855_s3 + $0x458] sm:$0xff] }
  0x35   : > { %775 = vmatpush.xpose.msra.mxu3 %v593_v46  ;;  %v532_v46 = vld [vmem:[%s4855_s3 + $0x28] sm:$0xff] }
  0x36   : > { %804 = vmatpush.xpose.msra.mxu0 %v594_v59  ;;  %v652_v59 = vld [vmem:[%s4855_s3 + $0x3e8] sm:$0xff] }
  0x38   : > { %690 = vmatpush.xpose.msra.mxu2 %v539_v32  ;;  %719 = vmatpush.xpose.msra.mxu1 %v540_v33  ;;  %v663_v32 = vld [vmem:[%s4855_s3 + $0x440] sm:$0xff]  ;;  %v670_v33 = vld [vmem:[%s4855_s3 + $0x478] sm:$0xff] }
  0x39   : > { %776 = vmatpush.xpose.msra.mxu3 %v590_v52  ;;  %v648_v52 = vld [vmem:[%s4855_s3 + $0x3c8] sm:$0xff] }
  0x3a   : > { %805 = vmatpush.xpose.msra.mxu0 %v591_v63  ;;  %v662_v63 = vld [vmem:[%s4855_s3 + $0x438] sm:$0xff] }
  0x3c   : > { %691 = vmatpush.xpose.msra.mxu2 %v536_v36  ;;  %720 = vmatpush.xpose.msra.mxu1 %v537_v37  ;;  %v660_v36 = vld [vmem:[%s4855_s3 + $0x428] sm:$0xff]  ;;  %v667_v37 = vld [vmem:[%s4855_s3 + $0x460] sm:$0xff] }
  0x3d   : > { %777 = vmatpush.xpose.msra.mxu3 %v587_v58  ;;  %v645_v58 = vld [vmem:[%s4855_s3 + $0x3b0] sm:$0xff] }
  0x3e   : > { %806 = vmatpush.xpose.msra.mxu0 %v588_v5  ;;  %v659_v5 = vld [vmem:[%s4855_s3 + $0x420] sm:$0xff] }
  0x40   : > { %692 = vmatpush.xpose.msra.mxu2 %v533_v40  ;;  %721 = vmatpush.xpose.msra.mxu1 %v534_v41  ;;  %v657_v40 = vld [vmem:[%s4855_s3 + $0x410] sm:$0xff]  ;;  %v664_v41 = vld [vmem:[%s4855_s3 + $0x448] sm:$0xff] }
  0x41   : > { %778 = vmatpush.xpose.msra.mxu3 %v584_v62  ;;  %v649_v62 = vld [vmem:[%s4855_s3 + $0x3d0] sm:$0xff] }
  0x42   : > { %807 = vmatpush.xpose.msra.mxu0 %v585_v9  ;;  %v523_v9 = vld [vmem:[%s3557_s14 + $0x40] sm:$0xff] }
  0x44   : > { %693 = vmatpush.xpose.msra.mxu2 %v530_v44  ;;  %722 = vmatpush.xpose.msra.mxu1 %v531_v45  ;;  %v654_v44 = vld [vmem:[%s4855_s3 + $0x3f8] sm:$0xff]  ;;  %v661_v45 = vld [vmem:[%s4855_s3 + $0x430] sm:$0xff] }
  0x45   : > { %779 = vmatpush.xpose.msra.mxu3 %v581_v4  ;;  %v646_v4 = vld [vmem:[%s4855_s3 + $0x3b8] sm:$0xff] }
  0x46   : > { %808 = vmatpush.xpose.msra.mxu0 %v582_v15  ;;  %v630_v15 = vld [vmem:[%s4855_s3 + $0x338] sm:$0xff] }
  0x48   : > { %694 = vmatpush.xpose.msra.mxu2 %v527_v48  ;;  %723 = vmatpush.xpose.msra.mxu1 %v528_v50  ;;  %v651_v48 = vld [vmem:[%s4855_s3 + $0x3e0] sm:$0xff]  ;;  %v529_v50 = vld [vmem:[%s4855_s3 + $0x10] sm:$0xff] }
  0x49   : > { %780 = vmatpush.xpose.msra.mxu3 %v578_v8  ;;  %v656_v8 = vld [vmem:[%s4855_s3 + $0x408] sm:$0xff] }
  0x4a   : > { %809 = vmatpush.xpose.msra.mxu0 %v579_v18  ;;  %v526_v18 = vld [vmem:[%s3557_s14 + $0x58] sm:$0xff] }
  0x4b   : > { %695 = vmatmul.f32.vlgmr.msra.gmra.mxu2 %v3569_v54  ;;  %724 = vmatmul.f32.vlgmr.msra.gmra.mxu1 %v3572_v55 }
  0x4c   : > { %737 = vmatpush.xpose.msrb.mxu2 %v574_v49  ;;  %824 = vmatpush.xpose.msrb.mxu1 %v622_v51  ;;  %v658_v49 = vld [vmem:[%s4855_s3 + $0x418] sm:$0xff]  ;;  %v577_v51 = vld [vmem:[%s4855_s3 + $0x190] sm:$0xff] }
  0x4d   : > { %781 = vmatpush.xpose.msra.mxu3 %v575_v14  ;;  %v653_v14 = vld [vmem:[%s4855_s3 + $0x3f0] sm:$0xff] }
  0x4e   : > { %810 = vmatpush.xpose.msra.mxu0 %v576_v23  ;;  %v647_v23 = vld [vmem:[%s4855_s3 + $0x3c0] sm:$0xff] }
  0x50   : > { %738 = vmatpush.xpose.msrb.mxu2 %v571_v56  ;;  %825 = vmatpush.xpose.msrb.mxu1 %v619_v57  ;;  %v668_v56 = vld [vmem:[%s4855_s3 + $0x468] sm:$0xff]  ;;  %v3780_v57 = vld [vmem:[%s3557_s14 + $0x10] sm:$0xff] }
  0x51   : > { %782 = vmatmul.f32.vlgmr.msra.gmra.mxu3 %v3569_v54  ;;  %811 = vmatmul.f32.vlgmr.msra.gmra.mxu0 %v3572_v55 }
  0x52   : > { %882 = vmatpush.xpose.msrb.mxu3 %v669_v26  ;;  %911 = vmatpush.xpose.msrb.mxu0 %v670_v33  ;;  %v644_v26 = vld [vmem:[%s4855_s3 + $0x3a8] sm:$0xff]  ;;  %v629_v33 = vld [vmem:[%s4855_s3 + $0x330] sm:$0xff] }
  0x53   : > { %698 = vmatmul.f32.gmra.mxu2 %v3601_v0  ;;  %727 = vmatmul.f32.gmra.mxu1 %v3604_v1 }
  0x54   : > { %739 = vmatpush.xpose.msrb.mxu2 %v568_v60  ;;  %826 = vmatpush.xpose.msrb.mxu1 %v616_v61  ;;  %v665_v60 = vld [vmem:[%s4855_s3 + $0x450] sm:$0xff]  ;;  %v642_v61 = vld [vmem:[%s4855_s3 + $0x398] sm:$0xff] }
  0x56   : > { %883 = vmatpush.xpose.msrb.mxu3 %v666_v29  ;;  %912 = vmatpush.xpose.msrb.mxu0 %v667_v37  ;;  %v625_v29 = vld [vmem:[%s4855_s3 + $0x310] sm:$0xff]  ;;  %v3320_v37 = vmov 0  }
  0x57   : > { %3005 = vset.pattern.permute.xlu0 %v3320_v37  ;;  %3006 = vset.pattern.permute.xlu1 %v3320_v37 }
  0x58   : > { %740 = vmatpush.xpose.msrb.mxu2 %v565_v2  ;;  %827 = vmatpush.xpose.msrb.mxu1 %v613_v3  ;;  %v3806_v2 = vld [vmem:[%s3557_s14 + $0x28] sm:$0xff]  ;;  %v639_v3 = vld [vmem:[%s4855_s3 + $0x380] sm:$0xff] }
  0x59   : > { %785 = vmatmul.f32.gmra.mxu3 %v3601_v0  ;;  %814 = vmatmul.f32.gmra.mxu0 %v3604_v1 }
  0x5a   : > { %884 = vmatpush.xpose.msrb.mxu3 %v663_v32  ;;  %913 = vmatpush.xpose.msrb.mxu0 %v664_v41  ;;  %v632_v32 = vld [vmem:[%s4855_s3 + $0x348] sm:$0xff] }
  0x5b   : > { %701 = vmatmul.f32.gmra.mxu2 %v3633_v10  ;;  %730 = vmatmul.f32.gmra.mxu1 %v3636_v11  ;;  %v945_v41 = vld [vmem:[%s4858_s6 + $0x8] sm:$0xff] }
  0x5c   : > { %741 = vmatpush.xpose.msrb.mxu2 %v562_v6  ;;  %828 = vmatpush.xpose.msrb.mxu1 %v610_v7  ;;  %v636_v6 = vld [vmem:[%s4855_s3 + $0x368] sm:$0xff]  ;;  %v643_v7 = vld [vmem:[%s4855_s3 + $0x3a0] sm:$0xff] }
  0x5d   : > { %3007 = vset.pattern.permute.xlu2 %v3320_v37  ;;  %955 = vperm.xlu1 %3006, %v945_v41  }
  0x5e   : > { %885 = vmatpush.xpose.msrb.mxu3 %v660_v36  ;;  %914 = vmatpush.xpose.msrb.mxu0 %v661_v45  ;;  %v940_v36 = vld [vmem:[%s4857_s5] sm:$0xff] }
  0x60   : > { %742 = vmatpush.xpose.msrb.mxu2 %v559_v12  ;;  %829 = vmatpush.xpose.msrb.mxu1 %v607_v13  ;;  %v633_v12 = vld [vmem:[%s4855_s3 + $0x350] sm:$0xff]  ;;  %v640_v13 = vld [vmem:[%s4855_s3 + $0x388] sm:$0xff] }
  0x61   : > { %788 = vmatmul.f32.gmra.mxu3 %v3633_v10  ;;  %817 = vmatmul.f32.gmra.mxu0 %v3636_v11 }
  0x62   : > { %886 = vmatpush.xpose.msrb.mxu3 %v657_v40  ;;  %915 = vmatpush.xpose.msrb.mxu0 %v658_v49 }
  0x63   : > { %704 = vmatmul.f32.gmra.mxu2 %v3663_v19  ;;  %733 = vmatmul.f32.gmra.mxu1 %v3666_v20 }
  0x64   : > { %743 = vmatpush.xpose.msrb.mxu2 %v556_v16  ;;  %830 = vmatpush.xpose.msrb.mxu1 %v604_v17  ;;  %v637_v16 = vld [vmem:[%s4855_s3 + $0x370] sm:$0xff]  ;;  %v650_v17 = vld [vmem:[%s4855_s3 + $0x3d8] sm:$0xff] }
  0x66   : > { %887 = vmatpush.xpose.msrb.mxu3 %v654_v44  ;;  %916 = vmatpush.xpose.msrb.mxu0 %v655_v53  ;;  %v946_v44 = vld [vmem:[%s4858_s6 + $0x10] sm:$0xff] }
  0x68   : > { %744 = vmatpush.xpose.msrb.mxu2 %v553_v21  ;;  %831 = vmatpush.xpose.msrb.mxu1 %v601_v22  ;;  %v627_v21 = vld [vmem:[%s4855_s3 + $0x320] sm:$0xff]  ;;  %v634_v22 = vld [vmem:[%s4855_s3 + $0x358] sm:$0xff] }
  0x69   : > { %791 = vmatmul.f32.gmra.mxu3 %v3663_v19  ;;  %820 = vmatmul.f32.gmra.mxu0 %v3666_v20 }
  0x6a   : > { %888 = vmatpush.xpose.msrb.mxu3 %v651_v48  ;;  %917 = vmatpush.xpose.msrb.mxu0 %v652_v59 }
  0x6c   : > { %745 = vmatpush.xpose.msrb.mxu2 %v550_v24  ;;  %832 = vmatpush.xpose.msrb.mxu1 %v598_v25  ;;  %v624_v24 = vld [vmem:[%s4855_s3 + $0x308] sm:$0xff]  ;;  %v631_v25 = vld [vmem:[%s4855_s3 + $0x340] sm:$0xff] }
  0x6e   : > { %889 = vmatpush.xpose.msrb.mxu3 %v648_v52  ;;  %918 = vmatpush.xpose.msrb.mxu0 %v649_v62 }
  0x70   : > { %746 = vmatpush.xpose.msrb.mxu2 %v547_v27  ;;  %833 = vmatpush.xpose.msrb.mxu1 %v595_v28  ;;  %v628_v27 = vld [vmem:[%s4855_s3 + $0x328] sm:$0xff]  ;;  %v641_v28 = vld [vmem:[%s4855_s3 + $0x390] sm:$0xff] }
  0x72   : > { %890 = vmatpush.xpose.msrb.mxu3 %v645_v58  ;;  %919 = vmatpush.xpose.msrb.mxu0 %v646_v4 }
  0x74   : > { %747 = vmatpush.xpose.msrb.mxu2 %v544_v30  ;;  %834 = vmatpush.xpose.msrb.mxu1 %v592_v31  ;;  %v638_v30 = vld [vmem:[%s4855_s3 + $0x378] sm:$0xff]  ;;  %v635_v31 = vld [vmem:[%s4855_s3 + $0x360] sm:$0xff] }
  0x76   : > { %891 = vmatpush.xpose.msrb.mxu3 %v642_v61  ;;  %920 = vmatpush.xpose.msrb.mxu0 %v643_v7 }
  0x78   : > { %748 = vmatpush.xpose.msrb.mxu2 %v541_v34  ;;  %835 = vmatpush.xpose.msrb.mxu1 %v589_v35  ;;  %v626_v34 = vld [vmem:[%s4855_s3 + $0x318] sm:$0xff]  ;;  %v623_v35 = vld [vmem:[%s4855_s3 + $0x300] sm:$0xff] }
  0x7a   : > { %892 = vmatpush.xpose.msrb.mxu3 %v639_v3  ;;  %921 = vmatpush.xpose.msrb.mxu0 %v640_v13 }
  0x7c   : > { %749 = vmatpush.xpose.msrb.mxu2 %v538_v38  ;;  %836 = vmatpush.xpose.msrb.mxu1 %v586_v39  ;;  %v947_v38 = vld [vmem:[%s4858_s6 + $0x18] sm:$0xff] }
  0x7d   : > { %965 = vperm.xlu0 %3005, %v947_v38  }
  0x7e   : > { %893 = vmatpush.xpose.msrb.mxu3 %v636_v6  ;;  %922 = vmatpush.xpose.msrb.mxu0 %v637_v16 }
  0x80   : > { %750 = vmatpush.xpose.msrb.mxu2 %v535_v42  ;;  %837 = vmatpush.xpose.msrb.mxu1 %v583_v43 }
  0x82   : > { %894 = vmatpush.xpose.msrb.mxu3 %v633_v12  ;;  %923 = vmatpush.xpose.msrb.mxu0 %v634_v22 }
  0x84   : > { %751 = vmatpush.xpose.msrb.mxu2 %v532_v46  ;;  %838 = vmatpush.xpose.msrb.mxu1 %v580_v47  ;;  %v944_v46 = vld [vmem:[%s4858_s6] sm:$0xff] }
  0x85   : > { %960 = vperm.xlu0 %3005, %v946_v44   ;;  %950 = vperm.xlu1 %3006, %v944_v46   ;;  %v486_v46 = vld [vmem:[%s3966_s26 + $0x98] sm:$0xff] }
  0x86   : > { %895 = vmatpush.xpose.msrb.mxu3 %v630_v15  ;;  %924 = vmatpush.xpose.msrb.mxu0 %v631_v25 }
  0x88   : > { %752 = vmatpush.xpose.msrb.mxu2 %v529_v50  ;;  %839 = vmatpush.xpose.msrb.mxu1 %v577_v51 }
  0x8a   : > { %896 = vmatpush.xpose.msrb.mxu3 %v627_v21  ;;  %925 = vmatpush.xpose.msrb.mxu0 %v628_v27 }
  0x8b   : > { %753 = vmatmul.f32.vlgmr.msrb.gmra.mxu2 %v3780_v57  ;;  %840 = vmatmul.f32.vlgmr.msrb.gmra.mxu1 %v3780_v57 }
  0x8c   : > { %853 = vmatpush.xpose.msra.mxu2 %v668_v56  ;;  %993 = vmatpush.msra.mxu1 %v3663_v19  ;;  %v3955_v56 = vld [vmem:[%s4856_s4] sm:$0x7] }
  0x8d   : > { %v673_v4 = vperm.slane %v3955_v56, 0 }
  0x8e   : > { %994 = vmatpush.msra.mxu1 %v3633_v10  ;;  %897 = vmatpush.xpose.msrb.mxu3 %v624_v24 }
  0x8f   : > { %926 = vmatpush.xpose.msrb.mxu0 %v625_v29 }
  0x90   : > { %854 = vmatpush.xpose.msra.mxu2 %v665_v60  ;;  %995 = vmatpush.msra.mxu1 %v3601_v0 }
  0x91   : > { %898 = vmatmul.f32.vlgmr.msrb.gmra.mxu3 %v3572_v55 }
  0x92   : > { %996 = vmatpush.msra.mxu1 %v3569_v54  ;;  %1051 = vmatpush.msra.mxu3 %v526_v18 }
  0x93   : > { %756 = vmatmul.f32.gmra.mxu2 %v3806_v2  ;;  %843 = vmatmul.f32.gmra.mxu1 %v3806_v2 }
  0x94   : > { %855 = vmatpush.xpose.msra.mxu2 %v662_v63  ;;  %1052 = vmatpush.msra.mxu3 %v523_v9 }
  0x95   : > { %927 = vmatmul.f32.vlgmr.msrb.gmra.mxu0 %v3780_v57 }
  0x96   : > { %1053 = vmatpush.msra.mxu3 %v3806_v2 }
  0x98   : > { %856 = vmatpush.xpose.msra.mxu2 %v659_v5  ;;  %1054 = vmatpush.msra.mxu3 %v3780_v57  ;;  %v674_v57 = vperm.slane %v3955_v56, 1 }
  0x99   : > { %901 = vmatmul.f32.gmra.mxu3 %v3604_v1 }
  0x9b   : > { %759 = vmatmul.f32.gmra.mxu2 %v523_v9  ;;  %846 = vmatmul.f32.gmra.mxu1 %v523_v9 }
  0x9c   : > { %857 = vmatpush.xpose.msra.mxu2 %v656_v8 }
  0x9d   : > { %930 = vmatmul.f32.gmra.mxu0 %v3806_v2 }
  0xa0   : > { %858 = vmatpush.xpose.msra.mxu2 %v653_v14 }
  0xa1   : > { %904 = vmatmul.f32.gmra.mxu3 %v3636_v11 }
  0xa3   : > { %762 = vmatmul.f32.gmra.mxu2 %v526_v18  ;;  %849 = vmatmul.f32.gmra.mxu1 %v526_v18 }
  0xa4   : > { %859 = vmatpush.xpose.msra.mxu2 %v650_v17 }
  0xa5   : > { %933 = vmatmul.f32.gmra.mxu0 %v523_v9 }
  0xa8   : > { %860 = vmatpush.xpose.msra.mxu2 %v647_v23 }
  0xa9   : > { %907 = vmatmul.f32.gmra.mxu3 %v3666_v20 }
  0xab   : > { %2873 = vmatmul.msk.f32.vlgmr.msra.gmra.mxu1 %vm968_vm0, %v940_v36 }
  0xac   : > { %861 = vmatpush.xpose.msra.mxu2 %v644_v26 }
  0xad   : > { %936 = vmatmul.f32.gmra.mxu0 %v526_v18 }
  0xb0   : > { %862 = vmatpush.xpose.msra.mxu2 %v641_v28 }
  0xb1   : > { %2881 = vmatmul.msk.f32.vlgmr.msra.gmra.mxu3 %vm968_vm0, %v940_v36 }
  0xb4   : > { %863 = vmatpush.xpose.msra.mxu2 %v638_v30  ;;  %v468_v30 = vld [vmem:[%s3966_s26 + $0x8] sm:$0xff] }
  0xb8   : > { %864 = vmatpush.xpose.msra.mxu2 %v635_v31 }
  0xbc   : > { %865 = vmatpush.xpose.msra.mxu2 %v632_v32 }
  0xc0   : > { %866 = vmatpush.xpose.msra.mxu2 %v629_v33  ;;  %v467_v33 = vld [vmem:[%s3966_s26] sm:$0xff] }
  0xc4   : > { %867 = vmatpush.xpose.msra.mxu2 %v626_v34  ;;  %v471_v34 = vld [vmem:[%s3966_s26 + $0x20] sm:$0xff] }
  0xc8   : > { %868 = vmatpush.xpose.msra.mxu2 %v623_v35  ;;  %v470_v35 = vld [vmem:[%s3966_s26 + $0x18] sm:$0xff] }
  0xcb   : > { %869 = vmatmul.f32.vlgmr.msra.gmra.mxu2 %v3569_v54  ;;  %v3915_v54 = vpop.f32.mrf.mxu1 }
  0xcc   : > { %1022 = vmatpush.msrb.mxu2 %v3666_v20 }
  0xce   : > { %1023 = vmatpush.msrb.mxu2 %v3636_v11  ;;  %v812_v42 = vpop.f32.mrf.mxu0 }
  0xd0   : > { %1024 = vmatpush.msrb.mxu2 %v3604_v1  ;;  %v942_v1 = vld [vmem:[%s4857_s5 + $0x10] sm:$0xff] }
  0xd2   : > { %1025 = vmatpush.msrb.mxu2 %v3572_v55  ;;  %v941_v55 = vld [vmem:[%s4857_s5 + $0x8] sm:$0xff] }
  0xd3   : > { %872 = vmatmul.f32.gmra.mxu2 %v3601_v0  ;;  %2874 = vmatmul.msk.f32.gmra.mxu1 %vm968_vm0, %v941_v55  ;;  %v3922_v0 = vpop.f32.mrf.mxu2 }
  0xd4   : > { %2882 = vmatmul.msk.f32.gmra.mxu3 %vm968_vm0, %v941_v55  ;;  %v783_v39 = vpop.f32.mrf.mxu3  ;;  %v697_v27 = vadd.f32 %v3922_v0, %v673_v4 }
  0xd5   : > { %v784_v12 = vadd.f32 %v783_v39, %v674_v57  ;;  %v479_v39 = vld [vmem:[%s3966_s26 + $0x60] sm:$0xff] }
  0xd6   : > { %v815_v48 = vpop.f32.mrf.mxu0  ;;  %v726_v31 = vadd.f32 %v3915_v54, %v697_v27  ;;  %v498_v27 = vld [vmem:[%s3966_s26 + $0xf8] sm:$0xff] }
  0xd7   : > { %v813_v18 = vadd.f32 %v812_v42, %v784_v12 }
  0xdb   : > { %875 = vmatmul.f32.gmra.mxu2 %v3633_v10  ;;  %v3928_v10 = vpop.f32.mrf.mxu1  ;;  %2875 = vmatmul.msk.f32.gmra.mxu1 %vm968_vm0, %v942_v1  ;;  %v699_v11 = vpop.f32.mrf.mxu2 }
  0xdc   : > { %2883 = vmatmul.msk.f32.gmra.mxu3 %vm968_vm0, %v942_v1  ;;  %v786_v45 = vpop.f32.mrf.mxu3  ;;  %v700_v23 = vadd.f32 %v699_v11, %v673_v4  ;;  %v476_v11 = vld [vmem:[%s3966_s26 + $0x48] sm:$0xff] }
  0xdd   : > { %v787_v5 = vadd.f32 %v786_v45, %v674_v57  ;;  %v482_v45 = vld [vmem:[%s3966_s26 + $0x78] sm:$0xff] }
  0xde   : > { %v818_v53 = vpop.f32.mrf.mxu0  ;;  %v729_v28 = vadd.f32 %v3928_v10, %v700_v23 }
  0xdf   : > { %v816_v13 = vadd.f32 %v815_v48, %v787_v5  ;;  %v488_v5 = vld [vmem:[%s3966_s26 + $0xa8] sm:$0xff] }
  0xe3   : > { %878 = vmatmul.f32.gmra.mxu2 %v3663_v19  ;;  %v943_v19 = vld [vmem:[%s4857_s5 + $0x18] sm:$0xff]  ;;  %v731_v20 = vpop.f32.mrf.mxu1  ;;  %v702_v40 = vpop.f32.mrf.mxu2 }
  0xe4   : > { %2876 = vmatmul.msk.f32.gmra.mxu1 %vm968_vm0, %v943_v19  ;;  %2884 = vmatmul.msk.f32.gmra.mxu3 %vm968_vm0, %v943_v19  ;;  %v789_v50 = vpop.f32.mrf.mxu3  ;;  %v703_v15 = vadd.f32 %v702_v40, %v673_v4  ;;  %v483_v40 = vld [vmem:[%s3966_s26 + $0x80] sm:$0xff] }
  0xe5   : > { %v790_v63 = vadd.f32 %v789_v50, %v674_v57 }
  0xe6   : > { %v821_v62 = vpop.f32.mrf.mxu0  ;;  %v732_v24 = vadd.f32 %v731_v20, %v703_v15  ;;  %v480_v20 = vld [vmem:[%s3966_s26 + $0x68] sm:$0xff] }
  0xe7   : > { %v819_v6 = vadd.f32 %v818_v53, %v790_v63 }
  0xeb   : > { %2877 = vmatmul.msk.f32.vlgmr.msrb.gmra.mxu2 %vm968_vm0, %v940_v36  ;;  %v734_v43 = vpop.f32.mrf.mxu1  ;;  %v705_v47 = vpop.f32.mrf.mxu2  ;;  %v474_v36 = vld [vmem:[%s3966_s26 + $0x38] sm:$0xff] }
  0xec   : > { %v792_v59 = vpop.f32.mrf.mxu3  ;;  %v706_v8 = vadd.f32 %v705_v47, %v673_v4  ;;  %v675_v47 = vperm.slane %v3955_v56, 2 }
  0xed   : > { %v793_v61 = vadd.f32 %v792_v59, %v674_v57  ;;  %v485_v57 = vld [vmem:[%s3966_s26 + $0x90] sm:$0xff] }
  0xee   : > { %v735_v16 = vadd.f32 %v734_v43, %v706_v8  ;;  %v3990_v8 = vpop.permute.xlu1 %955 }
  0xef   : > { %v822_v2 = vadd.f32 %v821_v62, %v793_v61  ;;  %v489_v62 = vld [vmem:[%s3966_s26 + $0xb0] sm:$0xff]  ;;  %v3987_v4 = vpop.permute.xlu0 %965 }
  0xf3   : > { %2878 = vmatmul.msk.f32.gmra.mxu2 %vm968_vm0, %v941_v55  ;;  %v473_v55 = vld [vmem:[%s3966_s26 + $0x30] sm:$0xff] }
  0xf7   : > { %v3994_v15 = vpop.permute.xlu0 %960 }
  0xfb   : > { %2879 = vmatmul.msk.f32.gmra.mxu2 %vm968_vm0, %v942_v1  ;;  %v477_v1 = vld [vmem:[%s3966_s26 + $0x50] sm:$0xff] }
 0x103   : > { %2880 = vmatmul.msk.f32.gmra.mxu2 %vm968_vm0, %v943_v19 }
 0x108   : > { %v841_v49 = vpop.f32.mrf.mxu1 }
 0x109   : > { %v842_v25 = vadd.f32 %v841_v49, %v813_v18 }
 0x10e   : > { %v754_v51 = vpop.f32.mrf.mxu2 }
 0x10f   : > { %v755_v32 = vadd.f32 %v754_v51, %v726_v31  ;;  %v500_v31 = vld [vmem:[%s3966_s26 + $0x108] sm:$0xff] }
 0x110   : > { %v844_v52 = vpop.f32.mrf.mxu1 }
 0x111   : > { %v845_v21 = vadd.f32 %v844_v52, %v816_v13 }
 0x112   : > { %v928_v54 = vpop.f32.mrf.mxu0 }
 0x114   : > { %v899_v0 = vpop.f32.mrf.mxu3 }
 0x116   : > { %v757_v58 = vpop.f32.mrf.mxu2 }
 0x117   : > { %v758_v29 = vadd.f32 %v757_v58, %v729_v28  ;;  %v497_v28 = vld [vmem:[%s3966_s26 + $0xf0] sm:$0xff] }
 0x118   : > { %v847_v60 = vpop.f32.mrf.mxu1 }
 0x119   : > { %v848_v14 = vadd.f32 %v847_v60, %v819_v6 }
 0x11a   : > { %v931_v37 = vpop.f32.mrf.mxu0 }
 0x11c   : > { %v902_v19 = vpop.f32.mrf.mxu3 }
 0x11e   : > { %v760_v3 = vpop.f32.mrf.mxu2 }
 0x11f   : > { %v761_v26 = vadd.f32 %v760_v3, %v732_v24  ;;  %v495_v24 = vld [vmem:[%s3966_s26 + $0xe0] sm:$0xff] }
 0x120   : > { %v850_v7 = vpop.f32.mrf.mxu1 }
 0x121   : > { %v851_v9 = vadd.f32 %v850_v7, %v822_v2 }
 0x122   : > { %v934_v44 = vpop.f32.mrf.mxu0 }
 0x123   : > { %1145 = vmatpush.xpose.msra.mxu2 %v851_v9  ;;  %v492_v9 = vld [vmem:[%s3966_s26 + $0xc8] sm:$0xff] }
 0x124   : > { %v905_v42 = vpop.f32.mrf.mxu3 }
 0x126   : > { %v763_v17 = vpop.f32.mrf.mxu2 }
 0x127   : > { %v764_v22 = vadd.f32 %v763_v17, %v735_v16  ;;  %1146 = vmatpush.xpose.msra.mxu2 %v848_v14  ;;  %v491_v17 = vld [vmem:[%s3966_s26 + $0xc0] sm:$0xff] }
 0x128   : > { %v998_v41 = vpop.f32.mrf.mxu1 }
 0x129   : > { %1080 = vmatpush.xpose.msrb.mxu1 %v764_v22  ;;  %v4000_v22 = vpop.permute.xlu1 %950 }
 0x12a   : > { %v937_v53 = vpop.f32.mrf.mxu0  ;;  %v999_v23 = vadd.f32 %v998_v41, %v4000_v22 }
 0x12b   : > { %1147 = vmatpush.xpose.msra.mxu2 %v845_v21  ;;  %v484_v21 = vld [vmem:[%s3966_s26 + $0x88] sm:$0xff] }
 0x12c   : > { %v908_v51 = vpop.f32.mrf.mxu3 }
 0x12d   : > { %1081 = vmatpush.xpose.msrb.mxu1 %v761_v26  ;;  %v487_v26 = vld [vmem:[%s3966_s26 + $0xa0] sm:$0xff] }
 0x12f   : > { %1148 = vmatpush.xpose.msra.mxu2 %v842_v25  ;;  %v494_v25 = vld [vmem:[%s3966_s26 + $0xd8] sm:$0xff] }
 0x131   : > { %1082 = vmatpush.xpose.msrb.mxu1 %v758_v29  ;;  %v490_v29 = vld [vmem:[%s3966_s26 + $0xb8] sm:$0xff] }
 0x132   : > { %1149 = vmatmul.f32.vlgmr.msra.gmra.mxu2 %v468_v30  ;;  %v501_v30 = vld [vmem:[%s3966_s26 + $0x110] sm:$0xff] }
 0x135   : > { %1083 = vmatpush.xpose.msrb.mxu1 %v755_v32  ;;  %v493_v32 = vld [vmem:[%s3966_s26 + $0xd0] sm:$0xff] }
 0x138   : > { %1084 = vmatmul.f32.vlgmr.msrb.gmra.mxu1 %v467_v33  ;;  %v504_v33 = vld [vmem:[%s3966_s26 + $0x128] sm:$0xff] }
 0x13a   : > { %1152 = vmatmul.f32.gmra.mxu2 %v471_v34  ;;  %v503_v34 = vld [vmem:[%s3966_s26 + $0x120] sm:$0xff] }
 0x140   : > { %1087 = vmatmul.f32.gmra.mxu1 %v470_v35  ;;  %v496_v35 = vld [vmem:[%s3966_s26 + $0xe8] sm:$0xff] }
 0x142   : > { %1155 = vmatmul.f32.gmra.mxu2 %v474_v36 }
 0x148   : > { %1090 = vmatmul.f32.gmra.mxu1 %v473_v55  ;;  %v507_v55 = vld [vmem:[%s3966_s26 + $0x140] sm:$0xff] }
 0x14a   : > { %1158 = vmatmul.f32.gmra.mxu2 %v477_v1 }
 0x14e   : > { %v870_v10 = vpop.f32.mrf.mxu2 }
 0x14f   : > { %v871_v2 = vadd.f32 %v870_v10, %v675_v47  ;;  %v510_v10 = vld [vmem:[%s3966_s26 + $0x158] sm:$0xff] }
 0x150   : > { %1093 = vmatmul.f32.gmra.mxu1 %v476_v11  ;;  %v1001_v48 = vpop.f32.mrf.mxu1  ;;  %v509_v11 = vld [vmem:[%s3966_s26 + $0x150] sm:$0xff] }
 0x151   : > { %v900_v6 = vadd.f32 %v899_v0, %v871_v2  ;;  %v1002_v18 = vadd.f32 %v1001_v48, %v3990_v8  ;;  %v506_v0 = vld [vmem:[%s3966_s26 + $0x138] sm:$0xff] }
 0x152   : > { %1161 = vmatmul.f32.gmra.mxu2 %v480_v20  ;;  %v513_v20 = vld [vmem:[%s3966_s26 + $0x170] sm:$0xff] }
 0x153   : > { %v929_v14 = vadd.f32 %v928_v54, %v900_v6  ;;  %v499_v54 = vld [vmem:[%s3966_s26 + $0x100] sm:$0xff] }
 0x156   : > { %v873_v38 = vpop.f32.mrf.mxu2 }
 0x157   : > { %v874_v58 = vadd.f32 %v873_v38, %v675_v47  ;;  %v512_v38 = vld [vmem:[%s3966_s26 + $0x168] sm:$0xff] }
 0x158   : > { %1096 = vmatmul.f32.gmra.mxu1 %v479_v39  ;;  %v1004_v63 = vpop.f32.mrf.mxu1  ;;  %v505_v39 = vld [vmem:[%s3966_s26 + $0x130] sm:$0xff] }
 0x159   : > { %v903_v56 = vadd.f32 %v902_v19, %v874_v58  ;;  %v1005_v16 = vadd.f32 %v1004_v63, %v3994_v15  ;;  %v502_v19 = vld [vmem:[%s3966_s26 + $0x118] sm:$0xff]  ;;  %v481_v63 = vld [vmem:[%s3966_s26 + $0x70] sm:$0xff] }
 0x15a   : > { %1164 = vmatmul.f32.gmra.mxu2 %v483_v40 }
 0x15b   : > { %v932_v7 = vadd.f32 %v931_v37, %v903_v56 }
 0x15e   : > { %v876_v43 = vpop.f32.mrf.mxu2 }
 0x15f   : > { %v877_v49 = vadd.f32 %v876_v43, %v675_v47 }
 0x160   : > { %1099 = vmatmul.f32.gmra.mxu1 %v482_v45  ;;  %v508_v45 = vld [vmem:[%s3966_s26 + $0x148] sm:$0xff] }
 0x161   : > { %v906_v59 = vadd.f32 %v905_v42, %v877_v49  ;;  %v1007_v12 = vpop.f32.mrf.mxu1  ;;  %v469_v42 = vld [vmem:[%s3966_s26 + $0x10] sm:$0xff]  ;;  %v472_v49 = vld [vmem:[%s3966_s26 + $0x28] sm:$0xff] }
 0x162   : > { %1167 = vmatmul.f32.gmra.mxu2 %v486_v46  ;;  %v1008_v13 = vadd.f32 %v1007_v12, %v3987_v4 }
 0x163   : > { %v935_v3 = vadd.f32 %v934_v44, %v906_v59 }
 0x164   : > { %1355 = vmatpush.msra.mxu0 %v1008_v13 }
 0x166   : > { %v879_v50 = vpop.f32.mrf.mxu2  ;;  %1356 = vmatpush.msra.mxu0 %v1005_v16 }
 0x167   : > { %v880_v52 = vadd.f32 %v879_v50, %v675_v47  ;;  %v511_v50 = vld [vmem:[%s3966_s26 + $0x160] sm:$0xff] }
 0x168   : > { %1102 = vmatmul.f32.gmra.mxu1 %v485_v57  ;;  %1357 = vmatpush.msra.mxu0 %v1002_v18  ;;  %v514_v57 = vld [vmem:[%s3966_s26 + $0x178] sm:$0xff] }
 0x169   : > { %v909_v60 = vadd.f32 %v908_v51, %v880_v52  ;;  %v1056_v51 = vpop.f32.mrf.mxu3 }
 0x16a   : > { %1170 = vmatmul.f32.gmra.mxu2 %v489_v62  ;;  %1358 = vmatpush.msra.mxu0 %v999_v23  ;;  %v1730_v23 = vld [vmem:[%s4859_s7 + $0x150] sm:$0xff] }
 0x16b   : > { %v938_v61 = vadd.f32 %v937_v53, %v909_v60  ;;  %v475_v53 = vld [vmem:[%s3966_s26 + $0x40] sm:$0xff]  ;;  %v478_v60 = vld [vmem:[%s3966_s26 + $0x58] sm:$0xff] }
 0x16d   : > { %1210 = vmatpush.xpose.msra.mxu1 %v938_v61  ;;  %2989 = vmatpush.xpose.msrb.mxu3 %v938_v61 }
 0x16e   : > { %v1027_v36 = vpop.f32.mrf.mxu2 }
 0x16f   : > { %v1028_v47 = vadd.f32 %v1027_v36, %v4000_v22 }
 0x170   : > { %1105 = vmatmul.f32.gmra.mxu1 %v488_v5 }
 0x171   : > { %1211 = vmatpush.xpose.msra.mxu1 %v935_v3  ;;  %2990 = vmatpush.xpose.msrb.mxu3 %v935_v3  ;;  %v1059_v58 = vpop.f32.mrf.mxu3 }
 0x172   : > { %1173 = vmatmul.f32.gmra.mxu2 %v492_v9  ;;  %v1060_v6 = vadd.f32 %v1059_v58, %v3990_v8  ;;  %v1700_v58 = vld [vmem:[%s4859_s7 + $0x60] sm:$0xff] }
 0x175   : > { %1212 = vmatpush.xpose.msra.mxu1 %v932_v7  ;;  %2991 = vmatpush.xpose.msrb.mxu3 %v932_v7  ;;  %v1057_v7 = vadd.f32 %v1056_v51, %v4000_v22  ;;  %v1710_v51 = vld [vmem:[%s4859_s7 + $0xb0] sm:$0xff] }
 0x176   : > { %v1030_v1 = vpop.f32.mrf.mxu2 }
 0x177   : > { %v1031_v46 = vadd.f32 %v1030_v1, %v3990_v8  ;;  %v1722_v1 = vld [vmem:[%s4859_s7 + $0x110] sm:$0xff] }
 0x178   : > { %1108 = vmatmul.f32.gmra.mxu1 %v491_v17 }
 0x179   : > { %1213 = vmatpush.xpose.msra.mxu1 %v929_v14  ;;  %2992 = vmatpush.xpose.msrb.mxu3 %v929_v14  ;;  %v1062_v61 = vpop.f32.mrf.mxu3 }
 0x17a   : > { %1176 = vmatmul.f32.gmra.mxu2 %v495_v24  ;;  %v1063_v3 = vadd.f32 %v1062_v61, %v3994_v15 }
 0x17c   : > { %1229 = vmatmul.f32.vlgmr.msrb.gmra.mxu3 %v484_v21  ;;  %v1733_v21 = vld [vmem:[%s4859_s7 + $0x168] sm:$0xff] }
 0x17d   : > { %1840 = vmatpush.xpose.msra.mxu3 %v1733_v21 }
 0x17e   : > { %v1033_v37 = vpop.f32.mrf.mxu2 }
 0x17f   : > { %v1034_v43 = vadd.f32 %v1033_v37, %v3994_v15 }
 0x180   : > { %1111 = vmatmul.f32.gmra.mxu1 %v494_v25  ;;  %v1727_v25 = vld [vmem:[%s4859_s7 + $0x138] sm:$0xff] }
 0x181   : > { %v1065_v2 = vpop.f32.mrf.mxu3  ;;  %1841 = vmatpush.xpose.msra.mxu3 %v1730_v23 }
 0x182   : > { %1179 = vmatmul.f32.gmra.mxu2 %v498_v27  ;;  %v1066_v5 = vadd.f32 %v1065_v2, %v3987_v4  ;;  %v1724_v27 = vld [vmem:[%s4859_s7 + $0x120] sm:$0xff] }
 0x184   : > { %1232 = vmatmul.f32.gmra.mxu3 %v487_v26  ;;  %1485 = vmatpush.msrb.mxu2 %v1066_v5  ;;  %v1734_v26 = vld [vmem:[%s4859_s7 + $0x170] sm:$0xff]  ;;  %v1697_v5 = vld [vmem:[%s4859_s7 + $0x48] sm:$0xff] }
 0x185   : > { %1842 = vmatpush.xpose.msra.mxu3 %v1727_v25  ;;  %1863 = vmatpush.xpose.msrb.mxu0 %v1734_v26 }
 0x186   : > { %v1036_v40 = vpop.f32.mrf.mxu2  ;;  %1486 = vmatpush.msrb.mxu2 %v1063_v3 }
 0x187   : > { %v1037_v44 = vadd.f32 %v1036_v40, %v3987_v4  ;;  %v1716_v40 = vld [vmem:[%s4859_s7 + $0xe0] sm:$0xff] }
 0x188   : > { %1114 = vmatmul.f32.gmra.mxu1 %v497_v28  ;;  %1487 = vmatpush.msrb.mxu2 %v1060_v6  ;;  %v1731_v28 = vld [vmem:[%s4859_s7 + $0x158] sm:$0xff]  ;;  %v1704_v6 = vld [vmem:[%s4859_s7 + $0x80] sm:$0xff] }
 0x189   : > { %1420 = vmatpush.msrb.mxu1 %v1037_v44  ;;  %1843 = vmatpush.xpose.msra.mxu3 %v1724_v27  ;;  %v1691_v27 = vld [vmem:[%s4859_s7 + $0x18] sm:$0xff] }
 0x18a   : > { %1182 = vmatmul.f32.gmra.mxu2 %v501_v30  ;;  %1864 = vmatpush.xpose.msrb.mxu0 %v1731_v28  ;;  %v1698_v28 = vld [vmem:[%s4859_s7 + $0x50] sm:$0xff] }
 0x18b   : > { %1421 = vmatpush.msrb.mxu1 %v1034_v43  ;;  %1488 = vmatpush.msrb.mxu2 %v1057_v7 }
 0x18c   : > { %1235 = vmatmul.f32.gmra.mxu3 %v490_v29 }
 0x18d   : > { %1422 = vmatpush.msrb.mxu1 %v1031_v46  ;;  %v1713_v46 = vld [vmem:[%s4859_s7 + $0xc8] sm:$0xff] }
 0x18f   : > { %1423 = vmatpush.msrb.mxu1 %v1028_v47 }
 0x190   : > { %1117 = vmatmul.f32.gmra.mxu1 %v500_v31  ;;  %v1721_v31 = vld [vmem:[%s4859_s7 + $0x108] sm:$0xff] }
 0x191   : > { %1844 = vmatpush.xpose.msra.mxu3 %v1721_v31 }
 0x192   : > { %1185 = vmatmul.f32.gmra.mxu2 %v504_v33  ;;  %v1718_v33 = vld [vmem:[%s4859_s7 + $0xf0] sm:$0xff] }
 0x194   : > { %1238 = vmatmul.f32.gmra.mxu3 %v493_v32  ;;  %v1728_v32 = vld [vmem:[%s4859_s7 + $0x140] sm:$0xff] }
 0x195   : > { %1865 = vmatpush.xpose.msrb.mxu0 %v1728_v32  ;;  %1845 = vmatpush.xpose.msra.mxu3 %v1718_v33  ;;  %v1688_v33 = vld [vmem:[%s4859_s7] sm:$0xff] }
 0x198   : > { %1120 = vmatmul.f32.gmra.mxu1 %v503_v34  ;;  %v1725_v34 = vld [vmem:[%s4859_s7 + $0x128] sm:$0xff] }
 0x199   : > { %1866 = vmatpush.xpose.msrb.mxu0 %v1725_v34  ;;  %v1695_v34 = vld [vmem:[%s4859_s7 + $0x38] sm:$0xff] }
 0x19a   : > { %1188 = vmatmul.f32.gmra.mxu2 %v507_v55 }
 0x19c   : > { %1241 = vmatmul.f32.gmra.mxu3 %v496_v35 }
 0x19d   : > { %1867 = vmatpush.xpose.msrb.mxu0 %v1722_v1  ;;  %v1732_v1 = vld [vmem:[%s4859_s7 + $0x160] sm:$0xff] }
 0x1a0   : > { %1123 = vmatmul.f32.gmra.mxu1 %v506_v0 }
 0x1a2   : > { %1191 = vmatmul.f32.gmra.mxu2 %v510_v10 }
 0x1a4   : > { %1244 = vmatmul.f32.gmra.mxu3 %v499_v54  ;;  %v1715_v54 = vld [vmem:[%s4859_s7 + $0xd8] sm:$0xff] }
 0x1a5   : > { %1846 = vmatpush.xpose.msra.mxu3 %v1715_v54 }
 0x1a8   : > { %1126 = vmatmul.f32.gmra.mxu1 %v509_v11  ;;  %v1712_v11 = vld [vmem:[%s4859_s7 + $0xc0] sm:$0xff] }
 0x1a9   : > { %1847 = vmatpush.xpose.msra.mxu3 %v1712_v11 }
 0x1aa   : > { %1194 = vmatmul.f32.gmra.mxu2 %v513_v20 }
 0x1ac   : > { %1247 = vmatmul.f32.gmra.mxu3 %v502_v19  ;;  %v1719_v19 = vld [vmem:[%s4859_s7 + $0xf8] sm:$0xff] }
 0x1ad   : > { %1868 = vmatpush.xpose.msrb.mxu0 %v1719_v19  ;;  %v1689_v19 = vld [vmem:[%s4859_s7 + $0x8] sm:$0xff] }
 0x1b0   : > { %1129 = vmatmul.f32.gmra.mxu1 %v512_v38 }
 0x1b1   : > { %1869 = vmatpush.xpose.msrb.mxu0 %v1716_v40 }
 0x1b4   : > { %1250 = vmatmul.f32.gmra.mxu3 %v505_v39  ;;  %v1709_v39 = vld [vmem:[%s4859_s7 + $0xa8] sm:$0xff] }
 0x1b5   : > { %v4024_v41 = vpop.f32.mrf.mxu1  ;;  %v1150_v4 = vpop.f32.mrf.mxu2  ;;  %1848 = vmatpush.xpose.msra.mxu3 %v1709_v39  ;;  %1870 = vmatpush.xpose.msrb.mxu0 %v1713_v46  ;;  %v1723_v46 = vld [vmem:[%s4859_s7 + $0x118] sm:$0xff] }
 0x1b6   : > { %v1151_v35 = vadd.f32 %v1150_v4, %v4024_v41 }
 0x1b8   : > { %1214 = vmatmul.f32.vlgmr.msra.gmra.mxu1 %v469_v42 }
 0x1b9   : > { %1871 = vmatpush.xpose.msrb.mxu0 %v1710_v51 }
 0x1bc   : > { %1253 = vmatmul.f32.gmra.mxu3 %v508_v45  ;;  %v1706_v45 = vld [vmem:[%s4859_s7 + $0x90] sm:$0xff] }
 0x1bd   : > { %v4032_v48 = vpop.f32.mrf.mxu1  ;;  %v1153_v17 = vpop.f32.mrf.mxu2  ;;  %1849 = vmatpush.xpose.msra.mxu3 %v1706_v45 }
 0x1be   : > { %v1154_v20 = vadd.f32 %v1153_v17, %v4032_v48  ;;  %v1701_v17 = vld [vmem:[%s4859_s7 + $0x68] sm:$0xff] }
 0x1c0   : > { %1217 = vmatmul.f32.gmra.mxu1 %v472_v49 }
 0x1c4   : > { %1256 = vmatmul.f32.gmra.mxu3 %v511_v50  ;;  %v1703_v50 = vld [vmem:[%s4859_s7 + $0x78] sm:$0xff] }
 0x1c5   : > { %v4036_v52 = vpop.f32.mrf.mxu1  ;;  %v1156_v22 = vpop.f32.mrf.mxu2  ;;  %1850 = vmatpush.xpose.msra.mxu3 %v1703_v50 }
 0x1c6   : > { %v1157_v47 = vadd.f32 %v1156_v22, %v4036_v52 }
 0x1c8   : > { %1220 = vmatmul.f32.gmra.mxu1 %v475_v53 }
 0x1c9   : > { %1851 = vmatpush.xpose.msra.mxu3 %v1700_v58 }
 0x1cc   : > { %1259 = vmatmul.f32.gmra.mxu3 %v514_v57 }
 0x1cd   : > { %v4040_v59 = vpop.f32.mrf.mxu1  ;;  %v1159_v29 = vpop.f32.mrf.mxu2  ;;  %1852 = vmatpush.xpose.msra.mxu3 %v1697_v5 }
 0x1ce   : > { %v1160_v61 = vadd.f32 %v1159_v29, %v4040_v59  ;;  %v1694_v59 = vld [vmem:[%s4859_s7 + $0x30] sm:$0xff] }
 0x1d0   : > { %1223 = vmatmul.f32.gmra.mxu1 %v478_v60  ;;  %v1707_v60 = vld [vmem:[%s4859_s7 + $0x98] sm:$0xff] }
 0x1d1   : > { %1872 = vmatpush.xpose.msrb.mxu0 %v1707_v60  ;;  %1853 = vmatpush.xpose.msra.mxu3 %v1694_v59  ;;  %v1717_v60 = vld [vmem:[%s4859_s7 + $0xe8] sm:$0xff] }
 0x1d5   : > { %v4043_v62 = vpop.f32.mrf.mxu1  ;;  %v4103_v0 = vpop.f32.mrf.mxu2  ;;  %1873 = vmatpush.xpose.msrb.mxu0 %v1704_v6  ;;  %1854 = vmatpush.xpose.msra.mxu3 %v1691_v27 }
 0x1d6   : > { %v1163_v21 = vadd.f32 %v4103_v0, %v4043_v62 }
 0x1d8   : > { %1226 = vmatmul.f32.gmra.mxu1 %v481_v63 }
 0x1d9   : > { %1874 = vmatpush.xpose.msrb.mxu0 %v1701_v17  ;;  %1855 = vmatpush.xpose.msra.mxu3 %v1688_v33  ;;  %v1711_v17 = vld [vmem:[%s4859_s7 + $0xb8] sm:$0xff]  ;;  %v1705_v33 = vld [vmem:[%s4859_s7 + $0x88] sm:$0xff] }
 0x1dd   : > { %v4046_v56 = vpop.f32.mrf.mxu1  ;;  %v1165_v43 = vpop.f32.mrf.mxu2  ;;  %1875 = vmatpush.xpose.msrb.mxu0 %v1698_v28 }
 0x1de   : > { %v1166_v31 = vadd.f32 %v1165_v43, %v4046_v56  ;;  %v1735_v56 = vld [vmem:[%s4859_s7 + $0x178] sm:$0xff] }
 0x1df   : > { %1886 = vmatpush.xpose.msrb.mxu3 %v1735_v56 }
 0x1e1   : > { %1876 = vmatpush.xpose.msrb.mxu0 %v1695_v34  ;;  %v1757_v34 = vld [vmem:[%s4859_s7 + $0x228] sm:$0xff] }
 0x1e3   : > { %1887 = vmatpush.xpose.msrb.mxu3 %v1732_v1  ;;  %v1702_v1 = vld [vmem:[%s4859_s7 + $0x70] sm:$0xff] }
 0x1e5   : > { %v4052_v9 = vpop.f32.mrf.mxu1  ;;  %v1168_v52 = vpop.f32.mrf.mxu2 }
 0x1e6   : > { %v1169_v54 = vadd.f32 %v1168_v52, %v4052_v9  ;;  %v1729_v9 = vld [vmem:[%s4859_s7 + $0x148] sm:$0xff] }
 0x1e7   : > { %1888 = vmatpush.xpose.msrb.mxu3 %v1729_v9  ;;  %v1777_v9 = vld [vmem:[%s4859_s7 + $0x2c8] sm:$0xff] }
 0x1ed   : > { %v4054_v12 = vpop.f32.mrf.mxu1  ;;  %v1171_v22 = vpop.f32.mrf.mxu2 }
 0x1ee   : > { %v1172_v40 = vadd.f32 %v1171_v22, %v4054_v12  ;;  %v1779_v12 = vld [vmem:[%s4859_s7 + $0x2d8] sm:$0xff] }
 0x1f5   : > { %v4056_v13 = vpop.f32.mrf.mxu1 }
 0x1fd   : > { %v4058_v14 = vpop.f32.mrf.mxu1 }
 0x1ff   : > { %v1230_v44 = vpop.f32.mrf.mxu3 }
 0x200   : > { %v1231_v62 = vadd.f32 %v1230_v44, %v1166_v31  ;;  %v1760_v31 = vld [vmem:[%s4859_s7 + $0x240] sm:$0xff] }
 0x205   : > { %v4060_v16 = vpop.f32.mrf.mxu1 }
 0x207   : > { %v1233_v63 = vpop.f32.mrf.mxu3 }
 0x208   : > { %v1234_v11 = vadd.f32 %v1233_v63, %v1169_v54 }
 0x20d   : > { %v4062_v15 = vpop.f32.mrf.mxu1 }
 0x20f   : > { %v1236_v26 = vpop.f32.mrf.mxu3 }
 0x210   : > { %v1237_v44 = vadd.f32 %v1236_v26, %v1172_v40  ;;  %v1752_v40 = vld [vmem:[%s4859_s7 + $0x200] sm:$0xff] }
 0x215   : > { %v4064_v8 = vpop.f32.mrf.mxu1 }
 0x21d   : > { %v4066_v18 = vpop.f32.mrf.mxu1 }
 0x225   : > { %v4074_v24 = vpop.f32.mrf.mxu1 }
 0x22d   : > { %v4088_v30 = vpop.f32.mrf.mxu1 }
 0x235   : > { %v1215_v36 = vpop.f32.mrf.mxu1 }
 0x236   : > { %v1216_v55 = vadd.f32 %v1215_v36, %v1151_v35  ;;  %v1268_v35 = vmul.f32 0.14433756, %v1231_v62  ;;  %v1174_v36 = vpop.f32.mrf.mxu2  ;;  %v1783_v62 = vld [vmem:[%s4859_s7 + $0x2f8] sm:$0xff] }
 0x237   : > { %v1175_v51 = vadd.f32 %v1174_v36, %v4056_v13  ;;  %v1773_v13 = vld [vmem:[%s4859_s7 + $0x2a8] sm:$0xff]  ;;  %1955 = vmatpush.xpose.msra.mxu2 %v1783_v62 }
 0x238   : > { %v1263_v10 = vmul.f32 0.14433756, %v1216_v55  ;;  %v1692_v55 = vld [vmem:[%s4859_s7 + $0x20] sm:$0xff] }
 0x239   : > { %1877 = vmatpush.xpose.msrb.mxu0 %v1692_v55  ;;  %v1780_v55 = vld [vmem:[%s4859_s7 + $0x2e0] sm:$0xff] }
 0x23a   : > { %3008 = vtanh.f32 %v1263_v10  ;;  %v1239_v10 = vpop.f32.mrf.mxu3 }
 0x23b   : > { %v1240_v52 = vadd.f32 %v1239_v10, %v1175_v51  ;;  %1956 = vmatpush.xpose.msra.mxu2 %v1780_v55  ;;  %v1754_v10 = vld [vmem:[%s4859_s7 + $0x210] sm:$0xff]  ;;  %v4363_v51 = vld [vmem:[%s4319_s18 + $0x18] sm:$0xff]  ;;  %v1817_v55 = vld [vmem:[%s4859_s7 + $0x408] sm:$0xff] }
 0x23d   : > { %v1218_v37 = vpop.f32.mrf.mxu1  ;;  %1878 = vmatpush.xpose.msrb.mxu0 %v1689_v19 }
 0x23e   : > { %v1219_v38 = vadd.f32 %v1218_v37, %v1154_v20  ;;  %v1781_v20 = vld [vmem:[%s4859_s7 + $0x2e8] sm:$0xff]  ;;  %v1269_v37 = vmul.f32 0.14433756, %v1234_v11  ;;  %v1177_v43 = vpop.f32.mrf.mxu2 }
 0x23f   : > { %v1178_v6 = vadd.f32 %v1177_v43, %v4058_v14  ;;  %v1767_v14 = vld [vmem:[%s4859_s7 + $0x278] sm:$0xff]  ;;  %1957 = vmatpush.xpose.msra.mxu2 %v1777_v9 }
 0x240   : > { %v3009_v41 = vpop.eup %3008  ;;  %v1264_v42 = vmul.f32 0.14433756, %v1219_v38  ;;  %v1782_v38 = vld [vmem:[%s4859_s7 + $0x2f0] sm:$0xff]  ;;  %v1811_v9 = vld [vmem:[%s4859_s7 + $0x3d8] sm:$0xff] }
 0x241   : > { %2885 = vmatmul.msk.f32.vlgmr.msra.gmra.mxu0 %vm968_vm0, %v3009_v41  ;;  %2901 = vmatmul.msk.f32.vlgmr.msrb.gmra.mxu1 %vm968_vm0, %v3009_v41 }
 0x242   : > { %3010 = vtanh.f32 %v1264_v42  ;;  %2917 = vmatmul.msk.f32.vlgmr.msrb.gmra.mxu2 %vm968_vm0, %v3009_v41  ;;  %1909 = vmatpush.xpose.msra.mxu0 %v1781_v20  ;;  %v1726_v41 = vld [vmem:[%s4859_s7 + $0x130] sm:$0xff]  ;;  %v1242_v45 = vpop.f32.mrf.mxu3  ;;  %v1699_v20 = vld [vmem:[%s4859_s7 + $0x58] sm:$0xff] }
 0x243   : > { %1932 = vmatpush.xpose.msra.mxu1 %v1782_v38  ;;  %v1778_v42 = vld [vmem:[%s4859_s7 + $0x2d0] sm:$0xff]  ;;  %1889 = vmatpush.xpose.msrb.mxu3 %v1726_v41  ;;  %v1243_v59 = vadd.f32 %v1242_v45, %v1178_v6  ;;  %v4331_v38 = vld [vmem:[%s4319_s18] sm:$0xff]  ;;  %v1739_v6 = vld [vmem:[%s4859_s7 + $0x198] sm:$0xff] }
 0x244   : > { %1856 = vmatmul.f32.vlgmr.msra.gmra.mxu3 %v4331_v38  ;;  %v1774_v41 = vld [vmem:[%s4859_s7 + $0x2b0] sm:$0xff] }
 0x245   : > { %v1221_v48 = vpop.f32.mrf.mxu1  ;;  %1958 = vmatpush.xpose.msra.mxu2 %v1774_v41 }
 0x246   : > { %v1222_v49 = vadd.f32 %v1221_v48, %v1157_v47  ;;  %1910 = vmatpush.xpose.msra.mxu0 %v1778_v42  ;;  %v1775_v47 = vld [vmem:[%s4859_s7 + $0x2b8] sm:$0xff]  ;;  %v1270_v48 = vmul.f32 0.14433756, %v1237_v44  ;;  %v1180_v58 = vpop.f32.mrf.mxu2  ;;  %v1696_v44 = vld [vmem:[%s4859_s7 + $0x40] sm:$0xff] }
 0x247   : > { %1933 = vmatpush.xpose.msra.mxu1 %v1779_v12  ;;  %1890 = vmatpush.xpose.msrb.mxu3 %v1723_v46  ;;  %v1181_v28 = vadd.f32 %v1180_v58, %v4060_v16  ;;  %v1761_v16 = vld [vmem:[%s4859_s7 + $0x248] sm:$0xff]  ;;  %v1748_v12 = vld [vmem:[%s4859_s7 + $0x1e0] sm:$0xff] }
 0x248   : > { %v3011_v53 = vpop.eup %3010  ;;  %v1265_v57 = vmul.f32 0.14433756, %v1222_v49  ;;  %v1776_v49 = vld [vmem:[%s4859_s7 + $0x2c0] sm:$0xff] }
 0x249   : > { %2886 = vmatmul.msk.f32.gmra.mxu0 %vm968_vm0, %v3011_v53  ;;  %2902 = vmatmul.msk.f32.gmra.mxu1 %vm968_vm0, %v3011_v53 }
 0x24a   : > { %3012 = vtanh.f32 %v1265_v57  ;;  %2918 = vmatmul.msk.f32.gmra.mxu2 %vm968_vm0, %v3011_v53  ;;  %1911 = vmatpush.xpose.msra.mxu0 %v1775_v47  ;;  %v1720_v53 = vld [vmem:[%s4859_s7 + $0x100] sm:$0xff]  ;;  %v1245_v63 = vpop.f32.mrf.mxu3 }
 0x24b   : > { %1934 = vmatpush.xpose.msra.mxu1 %v1776_v49  ;;  %v1772_v57 = vld [vmem:[%s4859_s7 + $0x2a0] sm:$0xff]  ;;  %1891 = vmatpush.xpose.msrb.mxu3 %v1720_v53  ;;  %v1693_v49 = vld [vmem:[%s4859_s7 + $0x28] sm:$0xff] }
 0x24c   : > { %1859 = vmatmul.f32.gmra.mxu3 %v4363_v51 }
 0x24d   : > { %v1224_v2 = vpop.f32.mrf.mxu1 }
 0x24e   : > { %v1225_v3 = vadd.f32 %v1224_v2, %v1160_v61  ;;  %1912 = vmatpush.xpose.msra.mxu0 %v1772_v57  ;;  %v1769_v61 = vld [vmem:[%s4859_s7 + $0x288] sm:$0xff]  ;;  %v1271_v2 = vmul.f32 0.14433756, %v1240_v52  ;;  %v1183_v22 = vpop.f32.mrf.mxu2  ;;  %v1746_v57 = vld [vmem:[%s4859_s7 + $0x1d0] sm:$0xff]  ;;  %v1768_v52 = vld [vmem:[%s4859_s7 + $0x280] sm:$0xff] }
 0x24f   : > { %1935 = vmatpush.xpose.msra.mxu1 %v1773_v13  ;;  %1892 = vmatpush.xpose.msrb.mxu3 %v1717_v60  ;;  %v1184_v54 = vadd.f32 %v1183_v22, %v4062_v15  ;;  %v1755_v15 = vld [vmem:[%s4859_s7 + $0x218] sm:$0xff]  ;;  %v1690_v60 = vld [vmem:[%s4859_s7 + $0x10] sm:$0xff] }
 0x250   : > { %v3013_v7 = vpop.eup %3012  ;;  %v1266_v4 = vmul.f32 0.14433756, %v1225_v3  ;;  %v1770_v3 = vld [vmem:[%s4859_s7 + $0x290] sm:$0xff] }
 0x251   : > { %2887 = vmatmul.msk.f32.gmra.mxu0 %vm968_vm0, %v3013_v7  ;;  %2903 = vmatmul.msk.f32.gmra.mxu1 %vm968_vm0, %v3013_v7 }
 0x252   : > { %3014 = vtanh.f32 %v1266_v4  ;;  %2919 = vmatmul.msk.f32.gmra.mxu2 %vm968_vm0, %v3013_v7  ;;  %1913 = vmatpush.xpose.msra.mxu0 %v1769_v61  ;;  %v1714_v7 = vld [vmem:[%s4859_s7 + $0xd0] sm:$0xff]  ;;  %v1248_v26 = vpop.f32.mrf.mxu3 }
 0x253   : > { %1936 = vmatpush.xpose.msra.mxu1 %v1770_v3  ;;  %v1766_v4 = vld [vmem:[%s4859_s7 + $0x270] sm:$0xff]  ;;  %1893 = vmatpush.xpose.msrb.mxu3 %v1714_v7  ;;  %v1249_v19 = vadd.f32 %v1248_v26, %v1184_v54  ;;  %v1823_v26 = vld [vmem:[%s4859_s7 + $0x438] sm:$0xff]  ;;  %v1753_v54 = vld [vmem:[%s4859_s7 + $0x208] sm:$0xff] }
 0x254   : > { %v1742_v61 = vld [vmem:[%s4859_s7 + $0x1b0] sm:$0xff] }
 0x255   : > { %v1227_v23 = vpop.f32.mrf.mxu1 }
 0x256   : > { %v1228_v25 = vadd.f32 %v1227_v23, %v1163_v21  ;;  %1914 = vmatpush.xpose.msra.mxu0 %v1766_v4  ;;  %v1763_v21 = vld [vmem:[%s4859_s7 + $0x258] sm:$0xff]  ;;  %v1272_v23 = vmul.f32 0.14433756, %v1243_v59  ;;  %v1186_v36 = vpop.f32.mrf.mxu2  ;;  %v4395_v4 = vld [vmem:[%s4319_s18 + $0x10] sm:$0xff] }
 0x257   : > { %1937 = vmatpush.xpose.msra.mxu1 %v1767_v14  ;;  %1894 = vmatpush.xpose.msrb.mxu3 %v1711_v17  ;;  %v1187_v43 = vadd.f32 %v1186_v36, %v4064_v8  ;;  %v1749_v8 = vld [vmem:[%s4859_s7 + $0x1e8] sm:$0xff]  ;;  %v1826_v59 = vld [vmem:[%s4859_s7 + $0x450] sm:$0xff]  ;;  %v1740_v17 = vld [vmem:[%s4859_s7 + $0x1a0] sm:$0xff] }
 0x258   : > { %v3015_v29 = vpop.eup %3014  ;;  %v1267_v32 = vmul.f32 0.14433756, %v1228_v25  ;;  %v1764_v25 = vld [vmem:[%s4859_s7 + $0x260] sm:$0xff] }
 0x259   : > { %2888 = vmatmul.msk.f32.gmra.mxu0 %vm968_vm0, %v3015_v29  ;;  %2904 = vmatmul.msk.f32.gmra.mxu1 %vm968_vm0, %v3015_v29  ;;  %v1756_v36 = vld [vmem:[%s4859_s7 + $0x220] sm:$0xff] }
 0x25a   : > { %3016 = vtanh.f32 %v1267_v32  ;;  %2920 = vmatmul.msk.f32.gmra.mxu2 %vm968_vm0, %v3015_v29  ;;  %1915 = vmatpush.xpose.msra.mxu0 %v1763_v21  ;;  %v1708_v29 = vld [vmem:[%s4859_s7 + $0xa0] sm:$0xff]  ;;  %v1246_v32 = vadd.f32 %v1245_v63, %v1181_v28  ;;  %v1251_v11 = vpop.f32.mrf.mxu3  ;;  %v1829_v63 = vld [vmem:[%s4859_s7 + $0x468] sm:$0xff]  ;;  %v1831_v28 = vld [vmem:[%s4859_s7 + $0x478] sm:$0xff] }
 0x25b   : > { %3018 = vtanh.f32 %v1268_v35  ;;  %1938 = vmatpush.xpose.msra.mxu1 %v1764_v25  ;;  %1895 = vmatpush.xpose.msrb.mxu3 %v1708_v29  ;;  %v1758_v35 = vld [vmem:[%s4859_s7 + $0x230] sm:$0xff]  ;;  %v1252_v46 = vadd.f32 %v1251_v11, %v1187_v43  ;;  %v1759_v29 = vld [vmem:[%s4859_s7 + $0x238] sm:$0xff]  ;;  %v1805_v43 = vld [vmem:[%s4859_s7 + $0x3a8] sm:$0xff] }
 0x25c   : > { %3020 = vtanh.f32 %v1269_v37  ;;  %v1273_v56 = vmul.f32 0.14433756, %v1246_v32  ;;  %v1751_v37 = vld [vmem:[%s4859_s7 + $0x1f8] sm:$0xff]  ;;  %v1762_v25 = vld [vmem:[%s4859_s7 + $0x250] sm:$0xff]  ;;  %v4427_v32 = vld [vmem:[%s4319_s18 + $0x28] sm:$0xff] }
 0x25d   : > { %3022 = vtanh.f32 %v1270_v48  ;;  %v1771_v48 = vld [vmem:[%s4859_s7 + $0x298] sm:$0xff]  ;;  %v1275_v53 = vmul.f32 0.14433756, %v1252_v46  ;;  %v1822_v11 = vld [vmem:[%s4859_s7 + $0x430] sm:$0xff] }
 0x25e   : > { %3024 = vtanh.f32 %v1271_v2  ;;  %1916 = vmatpush.xpose.msra.mxu0 %v1760_v31  ;;  %v1189_v45 = vpop.f32.mrf.mxu2  ;;  %1959 = vmatpush.xpose.msra.mxu2 %v1771_v48  ;;  %v1743_v2 = vld [vmem:[%s4859_s7 + $0x1b8] sm:$0xff]  ;;  %v1830_v48 = vld [vmem:[%s4859_s7 + $0x470] sm:$0xff] }
 0x25f   : > { %3026 = vtanh.f32 %v1272_v23  ;;  %1939 = vmatpush.xpose.msra.mxu1 %v1761_v16  ;;  %1896 = vmatpush.xpose.msrb.mxu3 %v1705_v33  ;;  %v1190_v58 = vadd.f32 %v1189_v45, %v4066_v18  ;;  %v1736_v23 = vld [vmem:[%s4859_s7 + $0x180] sm:$0xff]  ;;  %v1802_v45 = vld [vmem:[%s4859_s7 + $0x390] sm:$0xff] }
 0x260   : > { %v3017_v0 = vpop.eup %3016  ;;  %3028 = vtanh.f32 %v1273_v56  ;;  %v1820_v16 = vld [vmem:[%s4859_s7 + $0x420] sm:$0xff] }
 0x261   : > { %2889 = vmatmul.msk.f32.gmra.mxu0 %vm968_vm0, %v3017_v0  ;;  %2905 = vmatmul.msk.f32.gmra.mxu1 %vm968_vm0, %v3017_v0  ;;  %v3019_v39 = vpop.eup %3018 }
 0x262   : > { %2921 = vmatmul.msk.f32.gmra.mxu2 %vm968_vm0, %v3017_v0  ;;  %v3021_v50 = vpop.eup %3020  ;;  %1917 = vmatpush.xpose.msra.mxu0 %v1757_v34  ;;  %v1254_v47 = vpop.f32.mrf.mxu3  ;;  %v1828_v34 = vld [vmem:[%s4859_s7 + $0x460] sm:$0xff] }
 0x263   : > { %v3023_v5 = vpop.eup %3022  ;;  %1940 = vmatpush.xpose.msra.mxu1 %v1758_v35  ;;  %1897 = vmatpush.xpose.msrb.mxu3 %v1702_v1  ;;  %v1255_v18 = vadd.f32 %v1254_v47, %v1190_v58  ;;  %v1814_v1 = vld [vmem:[%s4859_s7 + $0x3f0] sm:$0xff]  ;;  %v4498_v47 = vld [vmem:[%s4319_s18 + $0x8] sm:$0xff] }
 0x264   : > { %v3025_v27 = vpop.eup %3024  ;;  %1960 = vmatpush.xpose.msra.mxu2 %v1768_v52  ;;  %v1807_v52 = vld [vmem:[%s4859_s7 + $0x3b8] sm:$0xff] }
 0x265   : > { %v3027_v0 = vpop.eup %3026  ;;  %v1276_v14 = vmul.f32 0.14433756, %v1255_v18 }
 0x266   : > { %1918 = vmatpush.xpose.msra.mxu0 %v1754_v10  ;;  %v3029_v42 = vpop.eup %3028  ;;  %v1192_v3 = vpop.f32.mrf.mxu2 }
 0x267   : > { %1941 = vmatpush.xpose.msra.mxu1 %v1755_v15  ;;  %1898 = vmatpush.xpose.msrb.mxu3 %v1699_v20  ;;  %v1193_v22 = vadd.f32 %v1192_v3, %v4074_v24  ;;  %v1750_v15 = vld [vmem:[%s4859_s7 + $0x1f0] sm:$0xff]  ;;  %v1819_v20 = vld [vmem:[%s4859_s7 + $0x418] sm:$0xff]  ;;  %v4531_v3 = vld [vmem:[%s4319_s18 + $0x20] sm:$0xff]  ;;  %s4799_s18 = scalar_lea.vmem %s4864_s12, %s3960_s17 }
 0x269   : > { %2890 = vmatmul.msk.f32.gmra.mxu0 %vm968_vm0, %v3019_v39  ;;  %2906 = vmatmul.msk.f32.gmra.mxu1 %vm968_vm0, %v3019_v39 }
 0x26a   : > { %2922 = vmatmul.msk.f32.gmra.mxu2 %vm968_vm0, %v3019_v39  ;;  %v1274_v39 = vmul.f32 0.14433756, %v1249_v19  ;;  %1919 = vmatpush.xpose.msra.mxu0 %v1751_v37  ;;  %v1257_v7 = vpop.f32.mrf.mxu3  ;;  %v1747_v37 = vld [vmem:[%s4859_s7 + $0x1d8] sm:$0xff] }
 0x26b   : > { %1942 = vmatpush.xpose.msra.mxu1 %v1752_v40  ;;  %1899 = vmatpush.xpose.msrb.mxu3 %v1696_v44  ;;  %v1258_v24 = vadd.f32 %v1257_v7, %v1193_v22  ;;  %v1816_v40 = vld [vmem:[%s4859_s7 + $0x400] sm:$0xff]  ;;  %v1813_v44 = vld [vmem:[%s4859_s7 + $0x3e8] sm:$0xff] }
 0x26c   : > { %3030 = vtanh.f32 %v1274_v39  ;;  %v1808_v39 = vld [vmem:[%s4859_s7 + $0x3c0] sm:$0xff] }
 0x26d   : > { %3032 = vtanh.f32 %v1275_v53  ;;  %v1277_v62 = vmul.f32 0.14433756, %v1258_v24  ;;  %v1799_v53 = vld [vmem:[%s4859_s7 + $0x378] sm:$0xff]  ;;  %v1804_v7 = vld [vmem:[%s4859_s7 + $0x3a0] sm:$0xff] }
 0x26e   : > { %1920 = vmatpush.xpose.msra.mxu0 %v1748_v12  ;;  %3034 = vtanh.f32 %v1276_v14  ;;  %v1195_v31 = vpop.f32.mrf.mxu2  ;;  %v1741_v12 = vld [vmem:[%s4859_s7 + $0x1a8] sm:$0xff] }
 0x26f   : > { %1943 = vmatpush.xpose.msra.mxu1 %v1749_v8  ;;  %1900 = vmatpush.xpose.msrb.mxu3 %v1693_v49  ;;  %v1196_v35 = vadd.f32 %v1195_v31, %v4088_v30  ;;  %3036 = vtanh.f32 %v1277_v62  ;;  %v1825_v30 = vld [vmem:[%s4859_s7 + $0x448] sm:$0xff]  ;;  %v1810_v49 = vld [vmem:[%s4859_s7 + $0x3d0] sm:$0xff] }
 0x270   : > { %v1821_v14 = vld [vmem:[%s4859_s7 + $0x428] sm:$0xff]  ;;  %v1798_v62 = vld [vmem:[%s4859_s7 + $0x370] sm:$0xff] }
 0x271   : > { %2891 = vmatmul.msk.f32.gmra.mxu0 %vm968_vm0, %v3021_v50  ;;  %2907 = vmatmul.msk.f32.gmra.mxu1 %vm968_vm0, %v3021_v50 }
 0x272   : > { %2923 = vmatmul.msk.f32.gmra.mxu2 %vm968_vm0, %v3021_v50  ;;  %v1745_v50 = vld [vmem:[%s4859_s7 + $0x1c8] sm:$0xff]  ;;  %v3031_v13 = vpop.eup %3030  ;;  %v1260_v33 = vpop.f32.mrf.mxu3 }
 0x273   : > { %1921 = vmatpush.xpose.msra.mxu0 %v1745_v50  ;;  %1944 = vmatpush.xpose.msra.mxu1 %v1746_v57  ;;  %v3033_v21 = vpop.eup %3032  ;;  %v1738_v50 = vld [vmem:[%s4859_s7 + $0x190] sm:$0xff]  ;;  %v1827_v57 = vld [vmem:[%s4859_s7 + $0x458] sm:$0xff] }
 0x274   : > { %1901 = vmatpush.xpose.msrb.mxu3 %v1690_v60  ;;  %v3035_v56 = vpop.eup %3034  ;;  %v1796_v60 = vld [vmem:[%s4859_s7 + $0x360] sm:$0xff] }
 0x275   : > { %v3037_v19 = vpop.eup %3036 }
 0x277   : > { %1922 = vmatpush.xpose.msra.mxu0 %v1742_v61  ;;  %1945 = vmatpush.xpose.msra.mxu1 %v1743_v2 }
 0x278   : > { %1978 = vmatpush.xpose.msra.mxu3 %v1829_v63 }
 0x279   : > { %2892 = vmatmul.msk.f32.gmra.mxu0 %vm968_vm0, %v3023_v5  ;;  %2908 = vmatmul.msk.f32.gmra.mxu1 %vm968_vm0, %v3023_v5 }
 0x27a   : > { %2924 = vmatmul.msk.f32.gmra.mxu2 %vm968_vm0, %v3023_v5  ;;  %v1765_v5 = vld [vmem:[%s4859_s7 + $0x268] sm:$0xff]  ;;  %1902 = vmatmul.f32.vlgmr.msrb.gmra.mxu3 %v4395_v4 }
 0x27b   : > { %1961 = vmatpush.xpose.msra.mxu2 %v1765_v5  ;;  %1923 = vmatpush.xpose.msra.mxu0 %v1739_v6  ;;  %v1824_v6 = vld [vmem:[%s4859_s7 + $0x440] sm:$0xff] }
 0x27c   : > { %1979 = vmatpush.xpose.msra.mxu3 %v1826_v59  ;;  %1946 = vmatpush.xpose.msra.mxu1 %v1740_v17  ;;  %v1793_v59 = vld [vmem:[%s4859_s7 + $0x348] sm:$0xff] }
 0x27d   : > { %v1801_v17 = vld [vmem:[%s4859_s7 + $0x388] sm:$0xff] }
 0x27f   : > { %1924 = vmatpush.xpose.msra.mxu0 %v1736_v23  ;;  %1962 = vmatpush.xpose.msra.mxu2 %v1762_v25 }
 0x280   : > { %1980 = vmatpush.xpose.msra.mxu3 %v1823_v26  ;;  %v1790_v26 = vld [vmem:[%s4859_s7 + $0x330] sm:$0xff] }
 0x281   : > { %2893 = vmatmul.msk.f32.gmra.mxu0 %vm968_vm0, %v3025_v27  ;;  %2909 = vmatmul.msk.f32.gmra.mxu1 %vm968_vm0, %v3025_v27 }
 0x282   : > { %2925 = vmatmul.msk.f32.gmra.mxu2 %vm968_vm0, %v3025_v27  ;;  %v1737_v27 = vld [vmem:[%s4859_s7 + $0x188] sm:$0xff]  ;;  %1905 = vmatmul.f32.gmra.mxu3 %v4427_v32 }
 0x283   : > { %1947 = vmatpush.xpose.msra.mxu1 %v1737_v27  ;;  %1963 = vmatpush.xpose.msra.mxu2 %v1759_v29 }
 0x284   : > { %1981 = vmatpush.xpose.msra.mxu3 %v1820_v16  ;;  %v1818_v16 = vld [vmem:[%s4859_s7 + $0x410] sm:$0xff] }
 0x287   : > { %2024 = vmatpush.xpose.msrb.mxu1 %v1831_v28  ;;  %1964 = vmatpush.xpose.msra.mxu2 %v1756_v36 }
 0x288   : > { %1982 = vmatpush.xpose.msra.mxu3 %v1817_v55 }
 0x289   : > { %2894 = vmatmul.msk.f32.gmra.mxu0 %vm968_vm0, %v3027_v0  ;;  %2910 = vmatmul.msk.f32.gmra.mxu1 %vm968_vm0, %v3027_v0 }
 0x28a   : > { %2926 = vmatmul.msk.f32.gmra.mxu2 %vm968_vm0, %v3027_v0  ;;  %v1261_v0 = vadd.f32 %v1260_v33, %v1196_v35  ;;  %v1787_v33 = vld [vmem:[%s4859_s7 + $0x318] sm:$0xff] }
 0x28b   : > { %2025 = vmatpush.xpose.msrb.mxu1 %v1828_v34  ;;  %1965 = vmatpush.xpose.msra.mxu2 %v1753_v54  ;;  %v1815_v34 = vld [vmem:[%s4859_s7 + $0x3f8] sm:$0xff] }
 0x28c   : > { %v1278_v10 = vmul.f32 0.14433756, %v1261_v0  ;;  %1983 = vmatpush.xpose.msra.mxu3 %v1814_v1 }
 0x28e   : > { %3038 = vtanh.f32 %v1278_v10 }
 0x28f   : > { %2026 = vmatpush.xpose.msrb.mxu1 %v1825_v30  ;;  %1966 = vmatpush.xpose.msra.mxu2 %v1750_v15  ;;  %v1784_v30 = vld [vmem:[%s4859_s7 + $0x300] sm:$0xff] }
 0x290   : > { %1984 = vmatpush.xpose.msra.mxu3 %v1811_v9  ;;  %v1812_v15 = vld [vmem:[%s4859_s7 + $0x3e0] sm:$0xff] }
 0x291   : > { %2895 = vmatmul.msk.f32.gmra.mxu0 %vm968_vm0, %v3029_v42  ;;  %2911 = vmatmul.msk.f32.gmra.mxu1 %vm968_vm0, %v3029_v42  ;;  %v1792_v9 = vld [vmem:[%s4859_s7 + $0x340] sm:$0xff] }
 0x292   : > { %2927 = vmatmul.msk.f32.gmra.mxu2 %vm968_vm0, %v3029_v42  ;;  %v1744_v42 = vld [vmem:[%s4859_s7 + $0x1c0] sm:$0xff] }
 0x293   : > { %2027 = vmatpush.xpose.msrb.mxu1 %v1822_v11  ;;  %1967 = vmatpush.xpose.msra.mxu2 %v1747_v37  ;;  %v1789_v37 = vld [vmem:[%s4859_s7 + $0x328] sm:$0xff] }
 0x294   : > { %v3039_v41 = vpop.eup %3038  ;;  %1985 = vmatpush.xpose.msra.mxu3 %v1808_v39 }
 0x297   : > { %2028 = vmatpush.xpose.msrb.mxu1 %v1819_v20  ;;  %1968 = vmatpush.xpose.msra.mxu2 %v1744_v42  ;;  %v1809_v20 = vld [vmem:[%s4859_s7 + $0x3c8] sm:$0xff] }
 0x298   : > { %1986 = vmatpush.xpose.msra.mxu3 %v1805_v43 }
 0x299   : > { %2896 = vmatmul.msk.f32.gmra.mxu0 %vm968_vm0, %v3031_v13  ;;  %2912 = vmatmul.msk.f32.gmra.mxu1 %vm968_vm0, %v3031_v13 }
 0x29a   : > { %2928 = vmatmul.msk.f32.gmra.mxu2 %vm968_vm0, %v3031_v13 }
 0x29b   : > { %2029 = vmatpush.xpose.msrb.mxu1 %v1816_v40  ;;  %1969 = vmatpush.xpose.msra.mxu2 %v1741_v12 }
 0x29c   : > { %1987 = vmatpush.xpose.msra.mxu3 %v1802_v45 }
 0x29f   : > { %2030 = vmatpush.xpose.msrb.mxu1 %v1813_v44  ;;  %1970 = vmatpush.xpose.msra.mxu2 %v1738_v50 }
 0x2a0   : > { %1988 = vmatpush.xpose.msra.mxu3 %v1799_v53 }
 0x2a1   : > { %2897 = vmatmul.msk.f32.gmra.mxu0 %vm968_vm0, %v3033_v21  ;;  %2913 = vmatmul.msk.f32.gmra.mxu1 %vm968_vm0, %v3033_v21 }
 0x2a2   : > { %2929 = vmatmul.msk.f32.gmra.mxu2 %vm968_vm0, %v3033_v21 }
 0x2a3   : > { %2031 = vmatpush.xpose.msrb.mxu1 %v1810_v49  ;;  %2082 = vmatpush.msrb.mxu2 %v4363_v51 }
 0x2a4   : > { %1989 = vmatpush.xpose.msra.mxu3 %v1796_v60 }
 0x2a5   : > { %2083 = vmatpush.msrb.mxu2 %v4331_v38 }
 0x2a7   : > { %2032 = vmatpush.xpose.msrb.mxu1 %v1807_v52 }
 0x2a8   : > { %1990 = vmatpush.xpose.msra.mxu3 %v1793_v59 }
 0x2a9   : > { %2898 = vmatmul.msk.f32.gmra.mxu0 %vm968_vm0, %v3035_v56  ;;  %2914 = vmatmul.msk.f32.gmra.mxu1 %vm968_vm0, %v3035_v56 }
 0x2aa   : > { %2930 = vmatmul.msk.f32.gmra.mxu2 %vm968_vm0, %v3035_v56  ;;  %v1795_v56 = vld [vmem:[%s4859_s7 + $0x358] sm:$0xff] }
 0x2ab   : > { %2033 = vmatpush.xpose.msrb.mxu1 %v1804_v7 }
 0x2ac   : > { %1991 = vmatpush.xpose.msra.mxu3 %v1790_v26 }
 0x2af   : > { %2034 = vmatpush.xpose.msrb.mxu1 %v1801_v17 }
 0x2b0   : > { %1992 = vmatpush.xpose.msra.mxu3 %v1787_v33 }
 0x2b1   : > { %2899 = vmatmul.msk.f32.gmra.mxu0 %vm968_vm0, %v3037_v19  ;;  %2915 = vmatmul.msk.f32.gmra.mxu1 %vm968_vm0, %v3037_v19 }
 0x2b2   : > { %2931 = vmatmul.msk.f32.gmra.mxu2 %vm968_vm0, %v3037_v19 }
 0x2b3   : > { %2035 = vmatpush.xpose.msrb.mxu1 %v1798_v62  ;;  %v1785_v62 = vld [vmem:[%s4859_s7 + $0x308] sm:$0xff] }
 0x2b4   : > { %1993 = vmatpush.xpose.msra.mxu3 %v1784_v30 }
 0x2b7   : > { %2036 = vmatpush.xpose.msrb.mxu1 %v1795_v56  ;;  %1994 = vmatmul.f32.vlgmr.msra.gmra.mxu3 %v4331_v38 }
 0x2b8   : > { %2105 = vmatpush.msrb.mxu3 %v4531_v3 }
 0x2b9   : > { %2900 = vmatmul.msk.f32.gmra.mxu0 %vm968_vm0, %v3039_v41  ;;  %2916 = vmatmul.msk.f32.gmra.mxu1 %vm968_vm0, %v3039_v41 }
 0x2ba   : > { %2932 = vmatmul.msk.f32.gmra.mxu2 %vm968_vm0, %v3039_v41  ;;  %2106 = vmatpush.msrb.mxu3 %v4498_v47 }
 0x2bb   : > { %2037 = vmatpush.xpose.msrb.mxu1 %v1792_v9 }
 0x2be   : > { %v1360_v46 = vpop.f32.mrf.mxu0  ;;  %v1425_v8 = vpop.f32.mrf.mxu1 }
 0x2bf   : > { %3040 = vtanh.f32 %v1360_v46  ;;  %2038 = vmatpush.xpose.msrb.mxu1 %v1789_v37  ;;  %v1806_v46 = vld [vmem:[%s4859_s7 + $0x3b0] sm:$0xff]  ;;  %1997 = vmatmul.f32.gmra.mxu3 %v4363_v51 }
 0x2c0   : > { %3042 = vtanh.f32 %v1425_v8  ;;  %v1786_v8 = vld [vmem:[%s4859_s7 + $0x310] sm:$0xff] }
 0x2c1   : > { %1879 = vmatmul.f32.vlgmr.msrb.gmra.mxu0 %v4498_v47  ;;  %1948 = vmatmul.f32.vlgmr.msra.gmra.mxu1 %v4498_v47 }
 0x2c2   : > { %2001 = vmatpush.xpose.msrb.mxu0 %v1830_v48  ;;  %1971 = vmatmul.f32.vlgmr.msra.gmra.mxu2 %v4395_v4  ;;  %v1803_v48 = vld [vmem:[%s4859_s7 + $0x398] sm:$0xff] }
 0x2c3   : > { %2128 = vmatpush.msra.mxu2 %v4427_v32  ;;  %2039 = vmatpush.xpose.msrb.mxu1 %v1786_v8 }
 0x2c5   : > { %v3041_v13 = vpop.eup %3040  ;;  %v1490_v58 = vpop.f32.mrf.mxu2  ;;  %2129 = vmatpush.msra.mxu2 %v4395_v4 }
 0x2c6   : > { %v3043_v61 = vpop.eup %3042  ;;  %v1586_v63 = vmax.f32 %v3041_v13, 0.0  ;;  %3044 = vtanh.f32 %v1490_v58  ;;  %v1363_v18 = vpop.f32.mrf.mxu0  ;;  %2002 = vmatpush.xpose.msrb.mxu0 %v1827_v57 }
 0x2c7   : > { %v1428_v2 = vpop.f32.mrf.mxu1  ;;  %v1587_v5 = vmax.f32 %v3043_v61, 0.0  ;;  %3046 = vtanh.f32 %v1363_v18 }
 0x2c8   : > { %1634 = vst [vmem:[%s4525_s29] sm:$0xff] %v1586_v63  ;;  %3048 = vtanh.f32 %v1428_v2 }
 0x2c9   : > { %1635 = vst [vmem:[%s4525_s29 + $0x8] sm:$0xff] %v1587_v5  ;;  %1882 = vmatmul.f32.gmra.mxu0 %v4531_v3  ;;  %1951 = vmatmul.f32.gmra.mxu1 %v4531_v3 }
 0x2ca   : > { %2003 = vmatpush.xpose.msrb.mxu0 %v1824_v6  ;;  %1974 = vmatmul.f32.gmra.mxu2 %v4427_v32 }
 0x2cc   : > { %v3045_v21 = vpop.eup %3044 }
 0x2cd   : > { %v3047_v22 = vpop.eup %3046  ;;  %v1588_v23 = vmax.f32 %v3045_v21, 0.0  ;;  %v1493_v25 = vpop.f32.mrf.mxu2  ;;  %v1794_v21 = vld [vmem:[%s4859_s7 + $0x350] sm:$0xff] }
 0x2ce   : > { %v3049_v24 = vpop.eup %3048  ;;  %v1589_v27 = vmax.f32 %v3047_v22, 0.0  ;;  %3050 = vtanh.f32 %v1493_v25  ;;  %v1366_v28 = vpop.f32.mrf.mxu0  ;;  %2004 = vmatpush.xpose.msrb.mxu0 %v1821_v14 }
 0x2cf   : > { %v1431_v29 = vpop.f32.mrf.mxu1  ;;  %1636 = vst [vmem:[%s4525_s29 + $0x10] sm:$0xff] %v1588_v23  ;;  %v1590_v31 = vmax.f32 %v3049_v24, 0.0  ;;  %3052 = vtanh.f32 %v1366_v28 }
 0x2d0   : > { %1637 = vst [vmem:[%s4525_s29 + $0x18] sm:$0xff] %v1589_v27  ;;  %3054 = vtanh.f32 %v1431_v29 }
 0x2d1   : > { %1638 = vst [vmem:[%s4525_s29 + $0x20] sm:$0xff] %v1590_v31  ;;  %1925 = vmatmul.f32.vlgmr.msra.gmra.mxu0 %v4331_v38  ;;  %2040 = vmatmul.f32.vlgmr.msrb.gmra.mxu1 %v4395_v4  ;;  %v1797_v4 = vld [vmem:[%s4859_s7 + $0x368] sm:$0xff] }
 0x2d2   : > { %2005 = vmatpush.xpose.msrb.mxu0 %v1818_v16  ;;  %v1788_v16 = vld [vmem:[%s4859_s7 + $0x320] sm:$0xff] }
 0x2d4   : > { %v3051_v35 = vpop.eup %3050 }
 0x2d5   : > { %v3053_v36 = vpop.eup %3052  ;;  %v1591_v55 = vmax.f32 %v3051_v35, 0.0  ;;  %v1496_v0 = vpop.f32.mrf.mxu2 }
 0x2d6   : > { %v3055_v54 = vpop.eup %3054  ;;  %v1592_v1 = vmax.f32 %v3053_v36, 0.0  ;;  %3056 = vtanh.f32 %v1496_v0  ;;  %v1369_v10 = vpop.f32.mrf.mxu0  ;;  %2006 = vmatpush.xpose.msrb.mxu0 %v1815_v34 }
 0x2d7   : > { %v1434_v11 = vpop.f32.mrf.mxu1  ;;  %1639 = vst [vmem:[%s4525_s29 + $0x28] sm:$0xff] %v1591_v55  ;;  %v1593_v19 = vmax.f32 %v3055_v54, 0.0  ;;  %3058 = vtanh.f32 %v1369_v10 }
 0x2d8   : > { %1640 = vst [vmem:[%s4525_s29 + $0x30] sm:$0xff] %v1592_v1  ;;  %3060 = vtanh.f32 %v1434_v11 }
 0x2d9   : > { %1641 = vst [vmem:[%s4525_s29 + $0x38] sm:$0xff] %v1593_v19  ;;  %1928 = vmatmul.f32.gmra.mxu0 %v4363_v51  ;;  %v1800_v51 = vld [vmem:[%s4859_s7 + $0x380] sm:$0xff]  ;;  %2043 = vmatmul.f32.gmra.mxu1 %v4427_v32  ;;  %v1791_v32 = vld [vmem:[%s4859_s7 + $0x338] sm:$0xff] }
 0x2da   : > { %2007 = vmatpush.xpose.msrb.mxu0 %v1812_v15 }
 0x2dc   : > { %v3057_v39 = vpop.eup %3056 }
 0x2dd   : > { %v3059_v40 = vpop.eup %3058  ;;  %v1594_v41 = vmax.f32 %v3057_v39, 0.0  ;;  %v1499_v42 = vpop.f32.mrf.mxu2 }
 0x2de   : > { %v3061_v43 = vpop.eup %3060  ;;  %v1595_v44 = vmax.f32 %v3059_v40, 0.0  ;;  %3062 = vtanh.f32 %v1499_v42  ;;  %v1372_v12 = vpop.f32.mrf.mxu0  ;;  %2008 = vmatpush.xpose.msrb.mxu0 %v1809_v20 }
 0x2df   : > { %v1437_v45 = vpop.f32.mrf.mxu1  ;;  %1642 = vst [vmem:[%s4525_s29 + $0x40] sm:$0xff] %v1594_v41  ;;  %v1596_v38 = vmax.f32 %v3061_v43, 0.0  ;;  %3064 = vtanh.f32 %v1372_v12 }
 0x2e0   : > { %1643 = vst [vmem:[%s4525_s29 + $0x48] sm:$0xff] %v1595_v44  ;;  %3066 = vtanh.f32 %v1437_v45 }
 0x2e1   : > { %1644 = vst [vmem:[%s4525_s29 + $0x50] sm:$0xff] %v1596_v38 }
 0x2e2   : > { %2009 = vmatpush.xpose.msrb.mxu0 %v1806_v46 }
 0x2e4   : > { %v3063_v49 = vpop.eup %3062 }
 0x2e5   : > { %v3065_v50 = vpop.eup %3064  ;;  %v1597_v53 = vmax.f32 %v3063_v49, 0.0  ;;  %v1502_v57 = vpop.f32.mrf.mxu2 }
 0x2e6   : > { %v3067_v52 = vpop.eup %3066  ;;  %v1598_v13 = vmax.f32 %v3065_v50, 0.0  ;;  %3068 = vtanh.f32 %v1502_v57  ;;  %v1375_v58 = vpop.f32.mrf.mxu0  ;;  %2010 = vmatpush.xpose.msrb.mxu0 %v1803_v48 }
 0x2e7   : > { %v1440_v60 = vpop.f32.mrf.mxu1  ;;  %1645 = vst [vmem:[%s4525_s29 + $0x58] sm:$0xff] %v1597_v53  ;;  %v1599_v61 = vmax.f32 %v3067_v52, 0.0  ;;  %3070 = vtanh.f32 %v1375_v58 }
 0x2e8   : > { %1646 = vst [vmem:[%s4525_s29 + $0x60] sm:$0xff] %v1598_v13  ;;  %3072 = vtanh.f32 %v1440_v60  ;;  %v2047_v13 = vld [vmem:[%s4861_s9] sm:$0xff] }
 0x2e9   : > { %1647 = vst [vmem:[%s4525_s29 + $0x68] sm:$0xff] %v1599_v61  ;;  %2933 = vmatmul.msk.f32.vlgmr.msrb.gmra.mxu2 %vm2061_vm1, %v2047_v13  ;;  %2935 = vmatmul.msk.f32.vlgmr.msrb.gmra.mxu3 %vm2061_vm1, %v2047_v13 }
 0x2ea   : > { %2011 = vmatpush.xpose.msrb.mxu0 %v1800_v51 }
 0x2ec   : > { %v3069_v63 = vpop.eup %3068 }
 0x2ed   : > { %v3071_v18 = vpop.eup %3070  ;;  %v1600_v2 = vmax.f32 %v3069_v63, 0.0  ;;  %v1505_v5 = vpop.f32.mrf.mxu2 }
 0x2ee   : > { %v3073_v6 = vpop.eup %3072  ;;  %v1601_v7 = vmax.f32 %v3071_v18, 0.0  ;;  %3074 = vtanh.f32 %v1505_v5  ;;  %v1378_v59 = vpop.f32.mrf.mxu0  ;;  %2012 = vmatpush.xpose.msrb.mxu0 %v1797_v4 }
 0x2ef   : > { %v1443_v14 = vpop.f32.mrf.mxu1  ;;  %1648 = vst [vmem:[%s4525_s29 + $0x70] sm:$0xff] %v1600_v2  ;;  %v1602_v17 = vmax.f32 %v3073_v6, 0.0  ;;  %3076 = vtanh.f32 %v1378_v59  ;;  %v2048_v6 = vld [vmem:[%s4861_s9 + $0x8] sm:$0xff] }
 0x2f0   : > { %1649 = vst [vmem:[%s4525_s29 + $0x78] sm:$0xff] %v1601_v7  ;;  %3078 = vtanh.f32 %v1443_v14 }
 0x2f1   : > { %1650 = vst [vmem:[%s4525_s29 + $0x80] sm:$0xff] %v1602_v17  ;;  %2934 = vmatmul.msk.f32.gmra.mxu2 %vm2061_vm1, %v2048_v6  ;;  %2936 = vmatmul.msk.f32.gmra.mxu3 %vm2061_vm1, %v2048_v6 }
 0x2f2   : > { %2013 = vmatpush.xpose.msrb.mxu0 %v1794_v21 }
 0x2f4   : > { %v3075_v22 = vpop.eup %3074 }
 0x2f5   : > { %v3077_v23 = vpop.eup %3076  ;;  %v1603_v25 = vmax.f32 %v3075_v22, 0.0  ;;  %v1508_v26 = vpop.f32.mrf.mxu2 }
 0x2f6   : > { %v3079_v24 = vpop.eup %3078  ;;  %v1604_v27 = vmax.f32 %v3077_v23, 0.0  ;;  %3080 = vtanh.f32 %v1508_v26  ;;  %v1381_v28 = vpop.f32.mrf.mxu0  ;;  %2014 = vmatpush.xpose.msrb.mxu0 %v1791_v32  ;;  %v2050_v26 = vld [vmem:[%s4862_s10 + $0x8] sm:$0xff] }
 0x2f7   : > { %v1446_v29 = vpop.f32.mrf.mxu1  ;;  %1651 = vst [vmem:[%s4525_s29 + $0x88] sm:$0xff] %v1603_v25  ;;  %v1605_v31 = vmax.f32 %v3079_v24, 0.0  ;;  %3082 = vtanh.f32 %v1381_v28  ;;  %v1857_v24 = vpop.f32.mrf.mxu3  ;;  %2058 = vperm.xlu2 %3007, %v2050_v26  }
 0x2f8   : > { %1652 = vst [vmem:[%s4525_s29 + $0x90] sm:$0xff] %v1604_v27  ;;  %3084 = vtanh.f32 %v1446_v29 }
 0x2f9   : > { %1653 = vst [vmem:[%s4525_s29 + $0x98] sm:$0xff] %v1605_v31  ;;  %2937 = vmatmul.msk.f32.vlgmr.msra.gmra.mxu2 %vm2061_vm1, %v2047_v13 }
 0x2fa   : > { %2015 = vmatpush.xpose.msrb.mxu0 %v1788_v16  ;;  %v2049_v16 = vld [vmem:[%s4862_s10] sm:$0xff] }
 0x2fc   : > { %v3081_v33 = vpop.eup %3080 }
 0x2fd   : > { %v3083_v34 = vpop.eup %3082  ;;  %v1606_v56 = vmax.f32 %v3081_v33, 0.0  ;;  %v1511_v35 = vpop.f32.mrf.mxu2 }
 0x2fe   : > { %v3085_v36 = vpop.eup %3084  ;;  %v1607_v55 = vmax.f32 %v3083_v34, 0.0  ;;  %3086 = vtanh.f32 %v1511_v35  ;;  %v1384_v0 = vpop.f32.mrf.mxu0  ;;  %2016 = vmatpush.xpose.msrb.mxu0 %v1785_v62 }
 0x2ff   : > { %v1449_v30 = vpop.f32.mrf.mxu1  ;;  %1654 = vst [vmem:[%s4525_s29 + $0xa0] sm:$0xff] %v1606_v56  ;;  %v1608_v54 = vmax.f32 %v3085_v36, 0.0  ;;  %3088 = vtanh.f32 %v1384_v0  ;;  %2053 = vperm.xlu2 %3007, %v2049_v16   ;;  %v1860_v36 = vpop.f32.mrf.mxu3 }
 0x300   : > { %1655 = vst [vmem:[%s4525_s29 + $0xa8] sm:$0xff] %v1607_v55  ;;  %3090 = vtanh.f32 %v1449_v30 }
 0x301   : > { %1656 = vst [vmem:[%s4525_s29 + $0xb0] sm:$0xff] %v1608_v54  ;;  %2017 = vmatmul.f32.vlgmr.msrb.gmra.mxu0 %v4498_v47  ;;  %2938 = vmatmul.msk.f32.gmra.mxu2 %vm2061_vm1, %v2048_v6 }
 0x304   : > { %v3087_v1 = vpop.eup %3086 }
 0x305   : > { %v3089_v10 = vpop.eup %3088  ;;  %v1609_v11 = vmax.f32 %v3087_v1, 0.0  ;;  %v1514_v19 = vpop.f32.mrf.mxu2 }
 0x306   : > { %v3091_v15 = vpop.eup %3090  ;;  %v1610_v9 = vmax.f32 %v3089_v10, 0.0  ;;  %3092 = vtanh.f32 %v1514_v19  ;;  %v1387_v20 = vpop.f32.mrf.mxu0 }
 0x307   : > { %v1452_v37 = vpop.f32.mrf.mxu1  ;;  %1657 = vst [vmem:[%s4525_s29 + $0xb8] sm:$0xff] %v1609_v11  ;;  %v1611_v39 = vmax.f32 %v3091_v15, 0.0  ;;  %3094 = vtanh.f32 %v1387_v20  ;;  %v1903_v20 = vpop.f32.mrf.mxu3 }
 0x308   : > { %1658 = vst [vmem:[%s4525_s29 + $0xc0] sm:$0xff] %v1610_v9  ;;  %3096 = vtanh.f32 %v1452_v37 }
 0x309   : > { %1659 = vst [vmem:[%s4525_s29 + $0xc8] sm:$0xff] %v1611_v39  ;;  %2020 = vmatmul.f32.gmra.mxu0 %v4531_v3 }
 0x30c   : > { %v3093_v47 = vpop.eup %3092 }
 0x30d   : > { %v3095_v40 = vpop.eup %3094  ;;  %v1612_v41 = vmax.f32 %v3093_v47, 0.0  ;;  %v1517_v42 = vpop.f32.mrf.mxu2 }
 0x30e   : > { %v3097_v43 = vpop.eup %3096  ;;  %v1613_v44 = vmax.f32 %v3095_v40, 0.0  ;;  %3098 = vtanh.f32 %v1517_v42  ;;  %v1390_v12 = vpop.f32.mrf.mxu0  ;;  %v4690_v42 = vld [vmem:[%s4860_s8] sm:$0x7] }
 0x30f   : > { %v1455_v45 = vpop.f32.mrf.mxu1  ;;  %1660 = vst [vmem:[%s4525_s29 + $0xd0] sm:$0xff] %v1612_v41  ;;  %v1614_v38 = vmax.f32 %v3097_v43, 0.0  ;;  %3100 = vtanh.f32 %v1390_v12  ;;  %v1834_v12 = vperm.slane %v4690_v42, 0  ;;  %v1836_v16 = vperm.slane %v4690_v42, 2 }
 0x310   : > { %1661 = vst [vmem:[%s4525_s29 + $0xd8] sm:$0xff] %v1613_v44  ;;  %3102 = vtanh.f32 %v1455_v45 }
 0x311   : > { %1662 = vst [vmem:[%s4525_s29 + $0xe0] sm:$0xff] %v1614_v38  ;;  %v1861_v45 = vadd.f32 %v1860_v36, %v1834_v12 }
 0x314   : > { %v3099_v46 = vpop.eup %3098 }
 0x315   : > { %v3101_v3 = vpop.eup %3100  ;;  %v1615_v8 = vmax.f32 %v3099_v46, 0.0  ;;  %v1520_v48 = vpop.f32.mrf.mxu2 }
 0x316   : > { %v3103_v49 = vpop.eup %3102  ;;  %v1616_v50 = vmax.f32 %v3101_v3, 0.0  ;;  %3104 = vtanh.f32 %v1520_v48  ;;  %v1393_v53 = vpop.f32.mrf.mxu0  ;;  %v1858_v3 = vadd.f32 %v1857_v24, %v1834_v12  ;;  %v3272_v24 = vld [vmem:[%s3966_s26 + $0x78] sm:$0xff] }
 0x317   : > { %v1458_v57 = vpop.f32.mrf.mxu1  ;;  %1663 = vst [vmem:[%s4525_s29 + $0xe8] sm:$0xff] %v1615_v8  ;;  %v1617_v52 = vmax.f32 %v3103_v49, 0.0  ;;  %3106 = vtanh.f32 %v1393_v53  ;;  %v1906_v48 = vpop.f32.mrf.mxu3 }
 0x318   : > { %1664 = vst [vmem:[%s4525_s29 + $0xf0] sm:$0xff] %v1616_v50  ;;  %3108 = vtanh.f32 %v1458_v57 }
 0x319   : > { %1665 = vst [vmem:[%s4525_s29 + $0xf8] sm:$0xff] %v1617_v52 }
 0x31c   : > { %v3105_v58 = vpop.eup %3104 }
 0x31d   : > { %v3107_v60 = vpop.eup %3106  ;;  %v1618_v61 = vmax.f32 %v3105_v58, 0.0  ;;  %v1523_v51 = vpop.f32.mrf.mxu2 }
 0x31e   : > { %v3109_v4 = vpop.eup %3108  ;;  %v1619_v63 = vmax.f32 %v3107_v60, 0.0  ;;  %3110 = vtanh.f32 %v1523_v51  ;;  %v1396_v18 = vpop.f32.mrf.mxu0  ;;  %v3264_v60 = vld [vmem:[%s3966_s26] sm:$0xff] }
 0x31f   : > { %v1461_v2 = vpop.f32.mrf.mxu1  ;;  %1666 = vst [vmem:[%s4525_s29 + $0x100] sm:$0xff] %v1618_v61  ;;  %v1620_v5 = vmax.f32 %v3109_v4, 0.0  ;;  %3112 = vtanh.f32 %v1396_v18  ;;  %v1835_v61 = vperm.slane %v4690_v42, 1  ;;  %v3285_v42 = vld [vmem:[%s3966_s26 + $0xf0] sm:$0xff] }
 0x320   : > { %1667 = vst [vmem:[%s4525_s29 + $0x108] sm:$0xff] %v1619_v63  ;;  %3114 = vtanh.f32 %v1461_v2 }
 0x321   : > { %1668 = vst [vmem:[%s4525_s29 + $0x110] sm:$0xff] %v1620_v5 }
 0x324   : > { %v3111_v7 = vpop.eup %3110 }
 0x325   : > { %v3113_v59 = vpop.eup %3112  ;;  %v1621_v14 = vmax.f32 %v3111_v7, 0.0  ;;  %v1526_v17 = vpop.f32.mrf.mxu2  ;;  %v3265_v7 = vld [vmem:[%s3966_s26 + $0x18] sm:$0xff] }
 0x326   : > { %v3115_v21 = vpop.eup %3114  ;;  %v1622_v32 = vmax.f32 %v3113_v59, 0.0  ;;  %3116 = vtanh.f32 %v1526_v17  ;;  %v1399_v22 = vpop.f32.mrf.mxu0  ;;  %v3266_v17 = vld [vmem:[%s3966_s26 + $0x30] sm:$0xff] }
 0x327   : > { %v1464_v23 = vpop.f32.mrf.mxu1  ;;  %1669 = vst [vmem:[%s4525_s29 + $0x118] sm:$0xff] %v1621_v14  ;;  %v1623_v25 = vmax.f32 %v3115_v21, 0.0  ;;  %3118 = vtanh.f32 %v1399_v22  ;;  %v3267_v21 = vld [vmem:[%s3966_s26 + $0x8] sm:$0xff]  ;;  %v3269_v22 = vld [vmem:[%s3966_s26 + $0x20] sm:$0xff] }
 0x328   : > { %1670 = vst [vmem:[%s4525_s29 + $0x120] sm:$0xff] %v1622_v32  ;;  %3120 = vtanh.f32 %v1464_v23  ;;  %v3268_v32 = vld [vmem:[%s3966_s26 + $0x48] sm:$0xff]  ;;  %v3270_v23 = vld [vmem:[%s3966_s26 + $0x60] sm:$0xff] }
 0x329   : > { %1671 = vst [vmem:[%s4525_s29 + $0x128] sm:$0xff] %v1623_v25  ;;  %v3271_v25 = vld [vmem:[%s3966_s26 + $0x38] sm:$0xff] }
 0x32c   : > { %v3117_v27 = vpop.eup %3116 }
 0x32d   : > { %v3119_v28 = vpop.eup %3118  ;;  %v1624_v29 = vmax.f32 %v3117_v27, 0.0  ;;  %v1529_v31 = vpop.f32.mrf.mxu2 }
 0x32e   : > { %v3121_v62 = vpop.eup %3120  ;;  %v1625_v33 = vmax.f32 %v3119_v28, 0.0  ;;  %3122 = vtanh.f32 %v1529_v31  ;;  %v1402_v34 = vpop.f32.mrf.mxu0  ;;  %v3273_v28 = vld [vmem:[%s3966_s26 + $0x50] sm:$0xff] }
 0x32f   : > { %v1467_v56 = vpop.f32.mrf.mxu1  ;;  %1672 = vst [vmem:[%s4525_s29 + $0x130] sm:$0xff] %v1624_v29  ;;  %v1626_v35 = vmax.f32 %v3121_v62, 0.0  ;;  %3124 = vtanh.f32 %v1402_v34  ;;  %v3274_v62 = vld [vmem:[%s3966_s26 + $0x90] sm:$0xff]  ;;  %v3275_v34 = vld [vmem:[%s3966_s26 + $0x68] sm:$0xff] }
 0x330   : > { %1673 = vst [vmem:[%s4525_s29 + $0x138] sm:$0xff] %v1625_v33  ;;  %3126 = vtanh.f32 %v1467_v56 }
 0x331   : > { %1674 = vst [vmem:[%s4525_s29 + $0x140] sm:$0xff] %v1626_v35 }
 0x334   : > { %v3123_v55 = vpop.eup %3122 }
 0x335   : > { %v3125_v0 = vpop.eup %3124  ;;  %v1627_v30 = vmax.f32 %v3123_v55, 0.0  ;;  %v1532_v54 = vpop.f32.mrf.mxu2 }
 0x336   : > { %v3127_v1 = vpop.eup %3126  ;;  %v1628_v10 = vmax.f32 %v3125_v0, 0.0  ;;  %3128 = vtanh.f32 %v1532_v54  ;;  %v1405_v11 = vpop.f32.mrf.mxu0  ;;  %v3276_v54 = vld [vmem:[%s3966_s26 + $0xa8] sm:$0xff] }
 0x337   : > { %v1470_v19 = vpop.f32.mrf.mxu1  ;;  %1675 = vst [vmem:[%s4525_s29 + $0x148] sm:$0xff] %v1627_v30  ;;  %v1629_v15 = vmax.f32 %v3127_v1, 0.0  ;;  %3130 = vtanh.f32 %v1405_v11  ;;  %v3277_v1 = vld [vmem:[%s3966_s26 + $0x80] sm:$0xff]  ;;  %v3278_v11 = vld [vmem:[%s3966_s26 + $0x10] sm:$0xff] }
 0x338   : > { %1676 = vst [vmem:[%s4525_s29 + $0x150] sm:$0xff] %v1628_v10  ;;  %3132 = vtanh.f32 %v1470_v19  ;;  %v3279_v19 = vld [vmem:[%s3966_s26 + $0xc0] sm:$0xff] }
 0x339   : > { %1677 = vst [vmem:[%s4525_s29 + $0x158] sm:$0xff] %v1629_v15  ;;  %v3280_v15 = vld [vmem:[%s3966_s26 + $0x98] sm:$0xff] }
 0x33a   : > { %v1995_v26 = vpop.f32.mrf.mxu3 }
 0x33b   : > { %v1996_v56 = vadd.f32 %v1995_v26, %v1836_v16 }
 0x33c   : > { %v3129_v9 = vpop.eup %3128 }
 0x33d   : > { %v3131_v37 = vpop.eup %3130  ;;  %v1630_v39 = vmax.f32 %v3129_v9, 0.0  ;;  %v1535_v47 = vpop.f32.mrf.mxu2 }
 0x33e   : > { %v3133_v40 = vpop.eup %3132  ;;  %v1631_v41 = vmax.f32 %v3131_v37, 0.0  ;;  %3134 = vtanh.f32 %v1535_v47  ;;  %v1880_v43 = vpop.f32.mrf.mxu0  ;;  %v3282_v37 = vld [vmem:[%s3966_s26 + $0xd8] sm:$0xff] }
 0x33f   : > { %1678 = vst [vmem:[%s4525_s29 + $0x160] sm:$0xff] %v1630_v39  ;;  %v1632_v44 = vmax.f32 %v3133_v40, 0.0  ;;  %v1881_v50 = vadd.f32 %v1880_v43, %v1858_v3  ;;  %v1949_v57 = vpop.f32.mrf.mxu1  ;;  %v3283_v39 = vld [vmem:[%s3966_s26 + $0xb0] sm:$0xff] }
 0x340   : > { %1679 = vst [vmem:[%s4525_s29 + $0x168] sm:$0xff] %v1631_v41  ;;  %v3284_v41 = vld [vmem:[%s3966_s26 + $0x40] sm:$0xff] }
 0x341   : > { %1680 = vst [vmem:[%s4525_s29 + $0x170] sm:$0xff] %v1632_v44  ;;  %v1904_v52 = vadd.f32 %v1903_v20, %v1881_v50  ;;  %v3281_v20 = vld [vmem:[%s3966_s26 + $0x28] sm:$0xff]  ;;  %v3289_v50 = vld [vmem:[%s3966_s26 + $0xe0] sm:$0xff] }
 0x342   : > { %v1998_v31 = vpop.f32.mrf.mxu3  ;;  %v3286_v44 = vld [vmem:[%s3966_s26 + $0xc8] sm:$0xff] }
 0x343   : > { %v1999_v33 = vadd.f32 %v1998_v31, %v1836_v16  ;;  %v3310_v31 = vld [vmem:[%s3966_s26 + $0x160] sm:$0xff] }
 0x344   : > { %v3135_v38 = vpop.eup %3134 }
 0x345   : > { %v1633_v46 = vmax.f32 %v3135_v38, 0.0  ;;  %v1972_v58 = vpop.f32.mrf.mxu2 }
 0x346   : > { %v1883_v8 = vpop.f32.mrf.mxu0 }
 0x347   : > { %1681 = vst [vmem:[%s4525_s29 + $0x178] sm:$0xff] %v1633_v46  ;;  %v1884_v49 = vadd.f32 %v1883_v8, %v1861_v45  ;;  %v1952_v63 = vpop.f32.mrf.mxu1 }
 0x349   : > { %v1907_v53 = vadd.f32 %v1906_v48, %v1884_v49  ;;  %v3287_v48 = vld [vmem:[%s3966_s26 + $0x58] sm:$0xff]  ;;  %v3288_v49 = vld [vmem:[%s3966_s26 + $0x108] sm:$0xff] }
 0x34b   : > { %2151 = vmatpush.xpose.msra.mxu3 %v1907_v53 }
 0x34d   : > { %v1975_v2 = vpop.f32.mrf.mxu2 }
 0x34e   : > { %v1926_v13 = vpop.f32.mrf.mxu0 }
 0x34f   : > { %2152 = vmatpush.xpose.msra.mxu3 %v1904_v52  ;;  %v1927_v51 = vadd.f32 %v1926_v13, %v1835_v61  ;;  %v2041_v27 = vpop.f32.mrf.mxu1  ;;  %v3291_v52 = vld [vmem:[%s3966_s26 + $0x120] sm:$0xff]  ;;  %v3292_v13 = vld [vmem:[%s3966_s26 + $0xf8] sm:$0xff] }
 0x351   : > { %v1950_v5 = vadd.f32 %v1949_v57, %v1927_v51  ;;  %v2059_v9 = vpop.permute.xlu2 %2058  ;;  %v3290_v57 = vld [vmem:[%s3966_s26 + $0x70] sm:$0xff]  ;;  %v3293_v51 = vld [vmem:[%s3966_s26 + $0x88] sm:$0xff] }
 0x352   : > { %2153 = vmatmul.f32.vlgmr.msra.gmra.mxu3 %v3264_v60 }
 0x353   : > { %v1973_v14 = vadd.f32 %v1972_v58, %v1950_v5  ;;  %v3298_v5 = vld [vmem:[%s3966_s26 + $0x128] sm:$0xff] }
 0x356   : > { %v1929_v4 = vpop.f32.mrf.mxu0 }
 0x357   : > { %v1930_v18 = vadd.f32 %v1929_v4, %v1835_v61  ;;  %v2044_v36 = vpop.f32.mrf.mxu1  ;;  %v3294_v4 = vld [vmem:[%s3966_s26 + $0x138] sm:$0xff] }
 0x359   : > { %v1953_v6 = vadd.f32 %v1952_v63, %v1930_v18  ;;  %v2054_v43 = vpop.permute.xlu2 %2053  ;;  %v3295_v63 = vld [vmem:[%s3966_s26 + $0x110] sm:$0xff]  ;;  %v3296_v18 = vld [vmem:[%s3966_s26 + $0xa0] sm:$0xff] }
 0x35a   : > { %2156 = vmatmul.f32.gmra.mxu3 %v3265_v7  ;;  %v3300_v7 = vld [vmem:[%s3966_s26 + $0x168] sm:$0xff] }
 0x35b   : > { %v1976_v59 = vadd.f32 %v1975_v2, %v1953_v6  ;;  %v3297_v2 = vld [vmem:[%s3966_s26 + $0x150] sm:$0xff]  ;;  %v3299_v6 = vld [vmem:[%s3966_s26 + $0xb8] sm:$0xff] }
 0x35d   : > { %2216 = vmatpush.xpose.msra.mxu0 %v1976_v59  ;;  %v3301_v59 = vld [vmem:[%s3966_s26 + $0x140] sm:$0xff] }
 0x361   : > { %2217 = vmatpush.xpose.msra.mxu0 %v1973_v14  ;;  %v3302_v14 = vld [vmem:[%s3966_s26 + $0xd0] sm:$0xff] }
 0x362   : > { %2159 = vmatmul.f32.gmra.mxu3 %v3266_v17  ;;  %v3303_v17 = vld [vmem:[%s3966_s26 + $0x158] sm:$0xff] }
 0x364   : > { %2218 = vmatmul.f32.vlgmr.msra.gmra.mxu0 %v3267_v21  ;;  %v3304_v21 = vld [vmem:[%s3966_s26 + $0xe8] sm:$0xff] }
 0x36a   : > { %2162 = vmatmul.f32.gmra.mxu3 %v3268_v32  ;;  %v3305_v32 = vld [vmem:[%s3966_s26 + $0x170] sm:$0xff] }
 0x36c   : > { %2221 = vmatmul.f32.gmra.mxu0 %v3269_v22  ;;  %v2085_v47 = vpop.f32.mrf.mxu2  ;;  %v2108_v40 = vpop.f32.mrf.mxu3  ;;  %v3306_v22 = vld [vmem:[%s3966_s26 + $0x100] sm:$0xff] }
 0x36d   : > { %v2086_v46 = vadd.f32 %v2085_v47, %v2054_v43  ;;  %v2109_v3 = vadd.f32 %v2108_v40, %v2054_v43 }
 0x372   : > { %2165 = vmatmul.f32.gmra.mxu3 %v3270_v23  ;;  %v3307_v23 = vld [vmem:[%s3966_s26 + $0x118] sm:$0xff] }
 0x374   : > { %2224 = vmatmul.f32.gmra.mxu0 %v3271_v25  ;;  %v2088_v12 = vpop.f32.mrf.mxu2  ;;  %v2111_v45 = vpop.f32.mrf.mxu3 }
 0x375   : > { %v2089_v38 = vadd.f32 %v2088_v12, %v2059_v9  ;;  %v2112_v8 = vadd.f32 %v2111_v45, %v2059_v9 }
 0x377   : > { %2426 = vmatpush.msra.mxu1 %v2089_v38  ;;  %2491 = vmatpush.msrb.mxu3 %v2112_v8 }
 0x379   : > { %2427 = vmatpush.msra.mxu1 %v2086_v46  ;;  %2492 = vmatpush.msrb.mxu3 %v2109_v3 }
 0x37a   : > { %2168 = vmatmul.f32.gmra.mxu3 %v3272_v24  ;;  %v3308_v24 = vld [vmem:[%s3966_s26 + $0x130] sm:$0xff] }
 0x37c   : > { %2227 = vmatmul.f32.gmra.mxu0 %v3273_v28  ;;  %v2131_v53 = vpop.f32.mrf.mxu2 }
 0x37d   : > { %v2132_v60 = vadd.f32 %v2131_v53, %v2054_v43 }
 0x37e   : > { %v2018_v29 = vpop.f32.mrf.mxu0 }
 0x37f   : > { %v2019_v0 = vadd.f32 %v2018_v29, %v1996_v56 }
 0x381   : > { %v2042_v10 = vadd.f32 %v2041_v27, %v2019_v0  ;;  %v3309_v27 = vld [vmem:[%s3966_s26 + $0x148] sm:$0xff] }
 0x382   : > { %2171 = vmatmul.f32.gmra.mxu3 %v3274_v62 }
 0x384   : > { %2230 = vmatmul.f32.gmra.mxu0 %v3275_v34  ;;  %v2134_v58 = vpop.f32.mrf.mxu2 }
 0x385   : > { %v2135_v61 = vadd.f32 %v2134_v58, %v2059_v9 }
 0x386   : > { %v2021_v35 = vpop.f32.mrf.mxu0 }
 0x387   : > { %v2022_v55 = vadd.f32 %v2021_v35, %v1999_v33  ;;  %2556 = vmatpush.msrb.mxu0 %v2135_v61  ;;  %v3311_v33 = vld [vmem:[%s3966_s26 + $0x178] sm:$0xff] }
 0x389   : > { %v2045_v30 = vadd.f32 %v2044_v36, %v2022_v55  ;;  %2557 = vmatpush.msrb.mxu0 %v2132_v60 }
 0x38a   : > { %2174 = vmatmul.f32.gmra.mxu3 %v3276_v54 }
 0x38b   : > { %2281 = vmatpush.xpose.msrb.mxu2 %v2045_v30 }
 0x38c   : > { %2233 = vmatmul.f32.gmra.mxu0 %v3277_v1 }
 0x38f   : > { %2282 = vmatpush.xpose.msrb.mxu2 %v2042_v10 }
 0x392   : > { %2283 = vmatmul.f32.vlgmr.msrb.gmra.mxu2 %v3278_v11  ;;  %2177 = vmatmul.f32.gmra.mxu3 %v3279_v19 }
 0x394   : > { %2236 = vmatmul.f32.gmra.mxu0 %v3280_v15 }
 0x39a   : > { %2286 = vmatmul.f32.gmra.mxu2 %v3281_v20  ;;  %2180 = vmatmul.f32.gmra.mxu3 %v3282_v37 }
 0x39c   : > { %2239 = vmatmul.f32.gmra.mxu0 %v3283_v39 }
 0x3a2   : > { %2289 = vmatmul.f32.gmra.mxu2 %v3284_v41  ;;  %2183 = vmatmul.f32.gmra.mxu3 %v3285_v42 }
 0x3a4   : > { %2242 = vmatmul.f32.gmra.mxu0 %v3286_v44 }
 0x3aa   : > { %2292 = vmatmul.f32.gmra.mxu2 %v3287_v48  ;;  %2186 = vmatmul.f32.gmra.mxu3 %v3288_v49 }
 0x3ac   : > { %2245 = vmatmul.f32.gmra.mxu0 %v3289_v50 }
 0x3b2   : > { %2295 = vmatmul.f32.gmra.mxu2 %v3290_v57  ;;  %2189 = vmatmul.f32.gmra.mxu3 %v3291_v52 }
 0x3b4   : > { %2248 = vmatmul.f32.gmra.mxu0 %v3292_v13 }
 0x3ba   : > { %2298 = vmatmul.f32.gmra.mxu2 %v3293_v51  ;;  %2192 = vmatmul.f32.gmra.mxu3 %v3294_v4 }
 0x3bc   : > { %2251 = vmatmul.f32.gmra.mxu0 %v3295_v63 }
 0x3c2   : > { %2301 = vmatmul.f32.gmra.mxu2 %v3296_v18  ;;  %2195 = vmatmul.f32.gmra.mxu3 %v3297_v2 }
 0x3c4   : > { %2254 = vmatmul.f32.gmra.mxu0 %v3298_v5 }
 0x3ca   : > { %2304 = vmatmul.f32.gmra.mxu2 %v3299_v6  ;;  %2198 = vmatmul.f32.gmra.mxu3 %v3300_v7 }
 0x3cc   : > { %2257 = vmatmul.f32.gmra.mxu0 %v3301_v59 }
 0x3d2   : > { %2307 = vmatmul.f32.gmra.mxu2 %v3302_v14 }
 0x3d4   : > { %2260 = vmatmul.f32.gmra.mxu0 %v3303_v17 }
 0x3d5   : > { %v2154_v25 = vpop.f32.mrf.mxu3 }
 0x3da   : > { %2310 = vmatmul.f32.gmra.mxu2 %v3304_v21 }
 0x3dc   : > { %2263 = vmatmul.f32.gmra.mxu0 %v3305_v32 }
 0x3dd   : > { %v2157_v28 = vpop.f32.mrf.mxu3 }
 0x3e1   : > { %v2219_v26 = vpop.f32.mrf.mxu0 }
 0x3e2   : > { %2313 = vmatmul.f32.gmra.mxu2 %v3306_v22  ;;  %v2220_v35 = vadd.f32 %v2219_v26, %v2154_v25 }
 0x3e5   : > { %v2160_v16 = vpop.f32.mrf.mxu3 }
 0x3e9   : > { %v2222_v29 = vpop.f32.mrf.mxu0 }
 0x3ea   : > { %2316 = vmatmul.f32.gmra.mxu2 %v3307_v23  ;;  %v2223_v54 = vadd.f32 %v2222_v29, %v2157_v28 }
 0x3ed   : > { %v2163_v34 = vpop.f32.mrf.mxu3 }
 0x3f1   : > { %v2225_v62 = vpop.f32.mrf.mxu0 }
 0x3f2   : > { %2319 = vmatmul.f32.gmra.mxu2 %v3308_v24  ;;  %v2226_v9 = vadd.f32 %v2225_v62, %v2160_v16 }
 0x3f5   : > { %v2166_v30 = vpop.f32.mrf.mxu3 }
 0x3f9   : > { %v2228_v56 = vpop.f32.mrf.mxu0 }
 0x3fa   : > { %2322 = vmatmul.f32.gmra.mxu2 %v3309_v27  ;;  %v2229_v42 = vadd.f32 %v2228_v56, %v2163_v34 }
 0x3fd   : > { %v2169_v20 = vpop.f32.mrf.mxu3 }
 0x401   : > { %v2231_v1 = vpop.f32.mrf.mxu0 }
 0x402   : > { %2325 = vmatmul.f32.gmra.mxu2 %v3310_v31  ;;  %v2232_v3 = vadd.f32 %v2231_v1, %v2166_v30 }
 0x405   : > { %v2172_v43 = vpop.f32.mrf.mxu3 }
 0x409   : > { %v2234_v37 = vpop.f32.mrf.mxu0 }
 0x40a   : > { %2328 = vmatmul.f32.gmra.mxu2 %v3311_v33  ;;  %v2235_v52 = vadd.f32 %v2234_v37, %v2169_v20 }
 0x40d   : > { %v2175_v49 = vpop.f32.mrf.mxu3 }
 0x411   : > { %v2237_v12 = vpop.f32.mrf.mxu0 }
 0x412   : > { %v2238_v63 = vadd.f32 %v2237_v12, %v2172_v43 }
 0x415   : > { %v2284_v36 = vpop.f32.mrf.mxu2  ;;  %v2178_v51 = vpop.f32.mrf.mxu3 }
 0x416   : > { %v2285_v55 = vadd.f32 %v2284_v36, %v2220_v35 }
 0x418   : > { %v2332_v0 = vmul.f32 0.14433756, %v2285_v55 }
 0x419   : > { %v2240_v50 = vpop.f32.mrf.mxu0 }
 0x41a   : > { %3136 = vtanh.f32 %v2332_v0  ;;  %v2241_v7 = vadd.f32 %v2240_v50, %v2175_v49 }
 0x41d   : > { %v2287_v10 = vpop.f32.mrf.mxu2  ;;  %v2181_v59 = vpop.f32.mrf.mxu3 }
 0x41e   : > { %v2288_v11 = vadd.f32 %v2287_v10, %v2223_v54 }
 0x420   : > { %v3137_v19 = vpop.eup %3136  ;;  %v2333_v15 = vmul.f32 0.14433756, %v2288_v11 }
 0x421   : > { %2939 = vmatmul.msk.f32.vlgmr.msra.gmra.mxu1 %vm2061_vm1, %v3137_v19  ;;  %2955 = vmatmul.msk.f32.vlgmr.msrb.gmra.mxu3 %vm2061_vm1, %v3137_v19  ;;  %v2243_v4 = vpop.f32.mrf.mxu0 }
 0x422   : > { %3138 = vtanh.f32 %v2333_v15  ;;  %2971 = vmatmul.msk.f32.vlgmr.msrb.gmra.mxu0 %vm2061_vm1, %v3137_v19  ;;  %v2244_v23 = vadd.f32 %v2243_v4, %v2178_v51 }
 0x425   : > { %v2290_v39 = vpop.f32.mrf.mxu2  ;;  %v2184_v25 = vpop.f32.mrf.mxu3 }
 0x426   : > { %v2291_v47 = vadd.f32 %v2290_v39, %v2226_v9 }
 0x428   : > { %v3139_v40 = vpop.eup %3138  ;;  %v2334_v41 = vmul.f32 0.14433756, %v2291_v47 }
 0x429   : > { %2940 = vmatmul.msk.f32.gmra.mxu1 %vm2061_vm1, %v3139_v40  ;;  %2956 = vmatmul.msk.f32.gmra.mxu3 %vm2061_vm1, %v3139_v40  ;;  %v2246_v14 = vpop.f32.mrf.mxu0 }
 0x42a   : > { %3140 = vtanh.f32 %v2334_v41  ;;  %2972 = vmatmul.msk.f32.gmra.mxu0 %vm2061_vm1, %v3139_v40  ;;  %v2247_v31 = vadd.f32 %v2246_v14, %v2181_v59 }
 0x42d   : > { %v2293_v44 = vpop.f32.mrf.mxu2  ;;  %v2187_v33 = vpop.f32.mrf.mxu3 }
 0x42e   : > { %v2294_v45 = vadd.f32 %v2293_v44, %v2229_v42 }
 0x430   : > { %v3141_v38 = vpop.eup %3140  ;;  %v2335_v46 = vmul.f32 0.14433756, %v2294_v45 }
 0x431   : > { %2941 = vmatmul.msk.f32.gmra.mxu1 %vm2061_vm1, %v3141_v38  ;;  %2957 = vmatmul.msk.f32.gmra.mxu3 %vm2061_vm1, %v3141_v38  ;;  %v2249_v24 = vpop.f32.mrf.mxu0 }
 0x432   : > { %2973 = vmatmul.msk.f32.gmra.mxu0 %vm2061_vm1, %v3141_v38  ;;  %3142 = vtanh.f32 %v2335_v46  ;;  %v2250_v36 = vadd.f32 %v2249_v24, %v2184_v25 }
 0x435   : > { %v2296_v8 = vpop.f32.mrf.mxu2  ;;  %v2190_v1 = vpop.f32.mrf.mxu3 }
 0x436   : > { %v2297_v48 = vadd.f32 %v2296_v8, %v2232_v3 }
 0x438   : > { %v3143_v53 = vpop.eup %3142  ;;  %v2336_v57 = vmul.f32 0.14433756, %v2297_v48 }
 0x439   : > { %2942 = vmatmul.msk.f32.gmra.mxu1 %vm2061_vm1, %v3143_v53  ;;  %2958 = vmatmul.msk.f32.gmra.mxu3 %vm2061_vm1, %v3143_v53  ;;  %v2252_v34 = vpop.f32.mrf.mxu0 }
 0x43a   : > { %3144 = vtanh.f32 %v2336_v57  ;;  %2974 = vmatmul.msk.f32.gmra.mxu0 %vm2061_vm1, %v3143_v53  ;;  %v2253_v11 = vadd.f32 %v2252_v34, %v2187_v33 }
 0x43d   : > { %v2299_v13 = vpop.f32.mrf.mxu2  ;;  %v2193_v39 = vpop.f32.mrf.mxu3 }
 0x43e   : > { %v2300_v58 = vadd.f32 %v2299_v13, %v2235_v52 }
 0x440   : > { %v3145_v60 = vpop.eup %3144  ;;  %v2337_v61 = vmul.f32 0.14433756, %v2300_v58 }
 0x441   : > { %2943 = vmatmul.msk.f32.gmra.mxu1 %vm2061_vm1, %v3145_v60  ;;  %2959 = vmatmul.msk.f32.gmra.mxu3 %vm2061_vm1, %v3145_v60  ;;  %v2255_v10 = vpop.f32.mrf.mxu0 }
 0x442   : > { %3146 = vtanh.f32 %v2337_v61  ;;  %2975 = vmatmul.msk.f32.gmra.mxu0 %vm2061_vm1, %v3145_v60  ;;  %v2256_v37 = vadd.f32 %v2255_v10, %v2190_v1 }
 0x445   : > { %v2302_v18 = vpop.f32.mrf.mxu2  ;;  %v2196_v12 = vpop.f32.mrf.mxu3 }
 0x446   : > { %v2303_v2 = vadd.f32 %v2302_v18, %v2238_v63 }
 0x448   : > { %v3147_v5 = vpop.eup %3146  ;;  %v2338_v6 = vmul.f32 0.14433756, %v2303_v2 }
 0x449   : > { %2944 = vmatmul.msk.f32.gmra.mxu1 %vm2061_vm1, %v3147_v5  ;;  %2960 = vmatmul.msk.f32.gmra.mxu3 %vm2061_vm1, %v3147_v5  ;;  %v2258_v47 = vpop.f32.mrf.mxu0 }
 0x44a   : > { %3148 = vtanh.f32 %v2338_v6  ;;  %2976 = vmatmul.msk.f32.gmra.mxu0 %vm2061_vm1, %v3147_v5  ;;  %v2259_v44 = vadd.f32 %v2258_v47, %v2193_v39 }
 0x44d   : > { %v2305_v17 = vpop.f32.mrf.mxu2  ;;  %v2199_v53 = vpop.f32.mrf.mxu3 }
 0x44e   : > { %v2306_v21 = vadd.f32 %v2305_v17, %v2241_v7 }
 0x450   : > { %v3149_v32 = vpop.eup %3148  ;;  %v2339_v22 = vmul.f32 0.14433756, %v2306_v21 }
 0x451   : > { %2945 = vmatmul.msk.f32.gmra.mxu1 %vm2061_vm1, %v3149_v32  ;;  %2961 = vmatmul.msk.f32.gmra.mxu3 %vm2061_vm1, %v3149_v32  ;;  %v2261_v38 = vpop.f32.mrf.mxu0 }
 0x452   : > { %3150 = vtanh.f32 %v2339_v22  ;;  %2977 = vmatmul.msk.f32.gmra.mxu0 %vm2061_vm1, %v3149_v32  ;;  %v2262_v48 = vadd.f32 %v2261_v38, %v2196_v12 }
 0x455   : > { %v2308_v26 = vpop.f32.mrf.mxu2 }
 0x456   : > { %v2309_v27 = vadd.f32 %v2308_v26, %v2244_v23 }
 0x458   : > { %v3151_v28 = vpop.eup %3150  ;;  %v2340_v29 = vmul.f32 0.14433756, %v2309_v27 }
 0x459   : > { %2946 = vmatmul.msk.f32.gmra.mxu1 %vm2061_vm1, %v3151_v28  ;;  %2962 = vmatmul.msk.f32.gmra.mxu3 %vm2061_vm1, %v3151_v28  ;;  %v2264_v57 = vpop.f32.mrf.mxu0 }
 0x45a   : > { %3152 = vtanh.f32 %v2340_v29  ;;  %2978 = vmatmul.msk.f32.gmra.mxu0 %vm2061_vm1, %v3151_v28  ;;  %v2265_v58 = vadd.f32 %v2264_v57, %v2199_v53 }
 0x45d   : > { %v2311_v16 = vpop.f32.mrf.mxu2 }
 0x45e   : > { %v2312_v62 = vadd.f32 %v2311_v16, %v2247_v31 }
 0x460   : > { %v3153_v56 = vpop.eup %3152  ;;  %v2341_v35 = vmul.f32 0.14433756, %v2312_v62 }
 0x461   : > { %2947 = vmatmul.msk.f32.gmra.mxu1 %vm2061_vm1, %v3153_v56  ;;  %2963 = vmatmul.msk.f32.gmra.mxu3 %vm2061_vm1, %v3153_v56 }
 0x462   : > { %3154 = vtanh.f32 %v2341_v35  ;;  %2979 = vmatmul.msk.f32.gmra.mxu0 %vm2061_vm1, %v3153_v56 }
 0x465   : > { %v2314_v55 = vpop.f32.mrf.mxu2 }
 0x466   : > { %v2315_v0 = vadd.f32 %v2314_v55, %v2250_v36 }
 0x468   : > { %v3155_v30 = vpop.eup %3154  ;;  %v2342_v54 = vmul.f32 0.14433756, %v2315_v0 }
 0x469   : > { %2948 = vmatmul.msk.f32.gmra.mxu1 %vm2061_vm1, %v3155_v30  ;;  %2964 = vmatmul.msk.f32.gmra.mxu3 %vm2061_vm1, %v3155_v30 }
 0x46a   : > { %3156 = vtanh.f32 %v2342_v54  ;;  %2980 = vmatmul.msk.f32.gmra.mxu0 %vm2061_vm1, %v3155_v30 }
 0x46d   : > { %v2317_v19 = vpop.f32.mrf.mxu2 }
 0x46e   : > { %v2318_v15 = vadd.f32 %v2317_v19, %v2253_v11 }
 0x470   : > { %v3157_v9 = vpop.eup %3156  ;;  %v2343_v20 = vmul.f32 0.14433756, %v2318_v15 }
 0x471   : > { %2949 = vmatmul.msk.f32.gmra.mxu1 %vm2061_vm1, %v3157_v9  ;;  %2965 = vmatmul.msk.f32.gmra.mxu3 %vm2061_vm1, %v3157_v9 }
 0x472   : > { %3158 = vtanh.f32 %v2343_v20  ;;  %2981 = vmatmul.msk.f32.gmra.mxu0 %vm2061_vm1, %v3157_v9 }
 0x475   : > { %v2320_v40 = vpop.f32.mrf.mxu2 }
 0x476   : > { %v2321_v41 = vadd.f32 %v2320_v40, %v2256_v37 }
 0x478   : > { %v3159_v42 = vpop.eup %3158  ;;  %v2344_v43 = vmul.f32 0.14433756, %v2321_v41 }
 0x479   : > { %2950 = vmatmul.msk.f32.gmra.mxu1 %vm2061_vm1, %v3159_v42  ;;  %2966 = vmatmul.msk.f32.gmra.mxu3 %vm2061_vm1, %v3159_v42 }
 0x47a   : > { %3160 = vtanh.f32 %v2344_v43  ;;  %2982 = vmatmul.msk.f32.gmra.mxu0 %vm2061_vm1, %v3159_v42 }
 0x47d   : > { %v2323_v45 = vpop.f32.mrf.mxu2 }
 0x47e   : > { %v2324_v46 = vadd.f32 %v2323_v45, %v2259_v44 }
 0x480   : > { %v3161_v3 = vpop.eup %3160  ;;  %v2345_v8 = vmul.f32 0.14433756, %v2324_v46 }
 0x481   : > { %2951 = vmatmul.msk.f32.gmra.mxu1 %vm2061_vm1, %v3161_v3  ;;  %2967 = vmatmul.msk.f32.gmra.mxu3 %vm2061_vm1, %v3161_v3 }
 0x482   : > { %3162 = vtanh.f32 %v2345_v8  ;;  %2983 = vmatmul.msk.f32.gmra.mxu0 %vm2061_vm1, %v3161_v3 }
 0x485   : > { %v2326_v49 = vpop.f32.mrf.mxu2 }
 0x486   : > { %v2327_v50 = vadd.f32 %v2326_v49, %v2262_v48 }
 0x488   : > { %v3163_v52 = vpop.eup %3162  ;;  %v2346_v13 = vmul.f32 0.14433756, %v2327_v50 }
 0x489   : > { %2952 = vmatmul.msk.f32.gmra.mxu1 %vm2061_vm1, %v3163_v52  ;;  %2968 = vmatmul.msk.f32.gmra.mxu3 %vm2061_vm1, %v3163_v52 }
 0x48a   : > { %3164 = vtanh.f32 %v2346_v13  ;;  %2984 = vmatmul.msk.f32.gmra.mxu0 %vm2061_vm1, %v3163_v52 }
 0x48d   : > { %v2329_v60 = vpop.f32.mrf.mxu2 }
 0x48e   : > { %v2330_v61 = vadd.f32 %v2329_v60, %v2265_v58 }
 0x490   : > { %v3165_v51 = vpop.eup %3164  ;;  %v2347_v4 = vmul.f32 0.14433756, %v2330_v61 }
 0x491   : > { %2953 = vmatmul.msk.f32.gmra.mxu1 %vm2061_vm1, %v3165_v51  ;;  %2969 = vmatmul.msk.f32.gmra.mxu3 %vm2061_vm1, %v3165_v51 }
 0x492   : > { %3166 = vtanh.f32 %v2347_v4  ;;  %2985 = vmatmul.msk.f32.gmra.mxu0 %vm2061_vm1, %v3165_v51 }
 0x498   : > { %v3167_v63 = vpop.eup %3166 }
 0x499   : > { %2954 = vmatmul.msk.f32.gmra.mxu1 %vm2061_vm1, %v3167_v63  ;;  %2970 = vmatmul.msk.f32.gmra.mxu3 %vm2061_vm1, %v3167_v63 }
 0x49a   : > { %2986 = vmatmul.msk.f32.gmra.mxu0 %vm2061_vm1, %v3167_v63 }
 0x49e   : > { %v2429_v18 = vpop.f32.mrf.mxu1 }
 0x49f   : > { %3168 = vtanh.f32 %v2429_v18  ;;  %v2559_v2 = vpop.f32.mrf.mxu0 }
 0x4a0   : > { %3170 = vtanh.f32 %v2559_v2 }
 0x4a4   : > { %v2494_v5 = vpop.f32.mrf.mxu3 }
 0x4a5   : > { %v3169_v6 = vpop.eup %3168  ;;  %3172 = vtanh.f32 %v2494_v5 }
 0x4a6   : > { %v3171_v7 = vpop.eup %3170  ;;  %v2655_v59 = vmax.f32 %v3169_v6, 0.0  ;;  %v2432_v14 = vpop.f32.mrf.mxu1 }
 0x4a7   : > { %v2657_v17 = vmax.f32 %v3171_v7, 0.0  ;;  %3174 = vtanh.f32 %v2432_v14  ;;  %v2562_v21 = vpop.f32.mrf.mxu0 }
 0x4a8   : > { %2703 = vst [vmem:[%s4799_s18] sm:$0xff] %v2655_v59  ;;  %3176 = vtanh.f32 %v2562_v21 }
 0x4a9   : > { %2705 = vst [vmem:[%s4799_s18 + $0x10] sm:$0xff] %v2657_v17 }
 0x4ab   : > { %v3173_v32 = vpop.eup %3172 }
 0x4ac   : > { %v2656_v22 = vmax.f32 %v3173_v32, 0.0  ;;  %v2497_v23 = vpop.f32.mrf.mxu3 }
 0x4ad   : > { %v3175_v25 = vpop.eup %3174  ;;  %3178 = vtanh.f32 %v2497_v23 }
 0x4ae   : > { %v3177_v26 = vpop.eup %3176  ;;  %2704 = vst [vmem:[%s4799_s18 + $0x8] sm:$0xff] %v2656_v22  ;;  %v2658_v24 = vmax.f32 %v3175_v25, 0.0  ;;  %v2435_v27 = vpop.f32.mrf.mxu1 }
 0x4af   : > { %v2660_v28 = vmax.f32 %v3177_v26, 0.0  ;;  %3180 = vtanh.f32 %v2435_v27  ;;  %v2565_v29 = vpop.f32.mrf.mxu0 }
 0x4b0   : > { %2706 = vst [vmem:[%s4799_s18 + $0x18] sm:$0xff] %v2658_v24  ;;  %3182 = vtanh.f32 %v2565_v29 }
 0x4b1   : > { %2708 = vst [vmem:[%s4799_s18 + $0x28] sm:$0xff] %v2660_v28 }
 0x4b3   : > { %v3179_v31 = vpop.eup %3178 }
 0x4b4   : > { %v2659_v16 = vmax.f32 %v3179_v31, 0.0  ;;  %v2500_v62 = vpop.f32.mrf.mxu3 }
 0x4b5   : > { %v3181_v33 = vpop.eup %3180  ;;  %3184 = vtanh.f32 %v2500_v62 }
 0x4b6   : > { %v3183_v34 = vpop.eup %3182  ;;  %2707 = vst [vmem:[%s4799_s18 + $0x20] sm:$0xff] %v2659_v16  ;;  %v2661_v56 = vmax.f32 %v3181_v33, 0.0  ;;  %v2438_v36 = vpop.f32.mrf.mxu1 }
 0x4b7   : > { %v2663_v35 = vmax.f32 %v3183_v34, 0.0  ;;  %3186 = vtanh.f32 %v2438_v36  ;;  %v2568_v55 = vpop.f32.mrf.mxu0 }
 0x4b8   : > { %2709 = vst [vmem:[%s4799_s18 + $0x30] sm:$0xff] %v2661_v56  ;;  %3188 = vtanh.f32 %v2568_v55 }
 0x4b9   : > { %2711 = vst [vmem:[%s4799_s18 + $0x40] sm:$0xff] %v2663_v35 }
 0x4bb   : > { %v3185_v0 = vpop.eup %3184 }
 0x4bc   : > { %v2662_v30 = vmax.f32 %v3185_v0, 0.0  ;;  %v2503_v54 = vpop.f32.mrf.mxu3 }
 0x4bd   : > { %v3187_v1 = vpop.eup %3186  ;;  %3190 = vtanh.f32 %v2503_v54 }
 0x4be   : > { %2710 = vst [vmem:[%s4799_s18 + $0x38] sm:$0xff] %v2662_v30  ;;  %v3189_v10 = vpop.eup %3188  ;;  %v2664_v11 = vmax.f32 %v3187_v1, 0.0  ;;  %v2441_v19 = vpop.f32.mrf.mxu1 }
 0x4bf   : > { %v2666_v15 = vmax.f32 %v3189_v10, 0.0  ;;  %3192 = vtanh.f32 %v2441_v19  ;;  %v2571_v9 = vpop.f32.mrf.mxu0 }
 0x4c0   : > { %2712 = vst [vmem:[%s4799_s18 + $0x48] sm:$0xff] %v2664_v11  ;;  %3194 = vtanh.f32 %v2571_v9 }
 0x4c1   : > { %2714 = vst [vmem:[%s4799_s18 + $0x58] sm:$0xff] %v2666_v15 }
 0x4c3   : > { %v3191_v20 = vpop.eup %3190 }
 0x4c4   : > { %v2665_v37 = vmax.f32 %v3191_v20, 0.0  ;;  %v2506_v39 = vpop.f32.mrf.mxu3 }
 0x4c5   : > { %v3193_v47 = vpop.eup %3192  ;;  %3196 = vtanh.f32 %v2506_v39 }
 0x4c6   : > { %v3195_v40 = vpop.eup %3194  ;;  %2713 = vst [vmem:[%s4799_s18 + $0x50] sm:$0xff] %v2665_v37  ;;  %v2667_v41 = vmax.f32 %v3193_v47, 0.0  ;;  %v2444_v42 = vpop.f32.mrf.mxu1 }
 0x4c7   : > { %v2669_v43 = vmax.f32 %v3195_v40, 0.0  ;;  %3198 = vtanh.f32 %v2444_v42  ;;  %v2574_v44 = vpop.f32.mrf.mxu0 }
 0x4c8   : > { %2715 = vst [vmem:[%s4799_s18 + $0x60] sm:$0xff] %v2667_v41  ;;  %3200 = vtanh.f32 %v2574_v44 }
 0x4c9   : > { %2717 = vst [vmem:[%s4799_s18 + $0x70] sm:$0xff] %v2669_v43 }
 0x4cb   : > { %v3197_v12 = vpop.eup %3196 }
 0x4cc   : > { %v2668_v45 = vmax.f32 %v3197_v12, 0.0  ;;  %v2509_v38 = vpop.f32.mrf.mxu3 }
 0x4cd   : > { %v3199_v46 = vpop.eup %3198  ;;  %3202 = vtanh.f32 %v2509_v38 }
 0x4ce   : > { %v3201_v3 = vpop.eup %3200  ;;  %2716 = vst [vmem:[%s4799_s18 + $0x68] sm:$0xff] %v2668_v45  ;;  %v2670_v8 = vmax.f32 %v3199_v46, 0.0  ;;  %v2447_v48 = vpop.f32.mrf.mxu1 }
 0x4cf   : > { %v2672_v49 = vmax.f32 %v3201_v3, 0.0  ;;  %3204 = vtanh.f32 %v2447_v48  ;;  %v2577_v50 = vpop.f32.mrf.mxu0 }
 0x4d0   : > { %2718 = vst [vmem:[%s4799_s18 + $0x78] sm:$0xff] %v2670_v8  ;;  %3206 = vtanh.f32 %v2577_v50 }
 0x4d1   : > { %2720 = vst [vmem:[%s4799_s18 + $0x88] sm:$0xff] %v2672_v49 }
 0x4d3   : > { %v3203_v53 = vpop.eup %3202 }
 0x4d4   : > { %v2671_v57 = vmax.f32 %v3203_v53, 0.0  ;;  %v2512_v52 = vpop.f32.mrf.mxu3 }
 0x4d5   : > { %v3205_v13 = vpop.eup %3204  ;;  %3208 = vtanh.f32 %v2512_v52 }
 0x4d6   : > { %v3207_v58 = vpop.eup %3206  ;;  %2719 = vst [vmem:[%s4799_s18 + $0x80] sm:$0xff] %v2671_v57  ;;  %v2673_v60 = vmax.f32 %v3205_v13, 0.0  ;;  %v2450_v61 = vpop.f32.mrf.mxu1 }
 0x4d7   : > { %v2675_v51 = vmax.f32 %v3207_v58, 0.0  ;;  %3210 = vtanh.f32 %v2450_v61  ;;  %v2580_v4 = vpop.f32.mrf.mxu0 }
 0x4d8   : > { %2721 = vst [vmem:[%s4799_s18 + $0x90] sm:$0xff] %v2673_v60  ;;  %3212 = vtanh.f32 %v2580_v4 }
 0x4d9   : > { %2723 = vst [vmem:[%s4799_s18 + $0xa0] sm:$0xff] %v2675_v51 }
 0x4db   : > { %v3209_v63 = vpop.eup %3208 }
 0x4dc   : > { %v2674_v18 = vmax.f32 %v3209_v63, 0.0  ;;  %v2515_v2 = vpop.f32.mrf.mxu3 }
 0x4dd   : > { %v3211_v5 = vpop.eup %3210  ;;  %3214 = vtanh.f32 %v2515_v2 }
 0x4de   : > { %v3213_v6 = vpop.eup %3212  ;;  %2722 = vst [vmem:[%s4799_s18 + $0x98] sm:$0xff] %v2674_v18  ;;  %v2676_v7 = vmax.f32 %v3211_v5, 0.0  ;;  %v2453_v59 = vpop.f32.mrf.mxu1 }
 0x4df   : > { %v2678_v14 = vmax.f32 %v3213_v6, 0.0  ;;  %3216 = vtanh.f32 %v2453_v59  ;;  %v2583_v17 = vpop.f32.mrf.mxu0 }
 0x4e0   : > { %2724 = vst [vmem:[%s4799_s18 + $0xa8] sm:$0xff] %v2676_v7  ;;  %3218 = vtanh.f32 %v2583_v17 }
 0x4e1   : > { %2726 = vst [vmem:[%s4799_s18 + $0xb8] sm:$0xff] %v2678_v14 }
 0x4e3   : > { %v3215_v21 = vpop.eup %3214 }
 0x4e4   : > { %v2677_v32 = vmax.f32 %v3215_v21, 0.0  ;;  %v2518_v22 = vpop.f32.mrf.mxu3 }
 0x4e5   : > { %v3217_v23 = vpop.eup %3216  ;;  %3220 = vtanh.f32 %v2518_v22 }
 0x4e6   : > { %v3219_v25 = vpop.eup %3218  ;;  %2725 = vst [vmem:[%s4799_s18 + $0xb0] sm:$0xff] %v2677_v32  ;;  %v2679_v26 = vmax.f32 %v3217_v23, 0.0  ;;  %v2456_v24 = vpop.f32.mrf.mxu1 }
 0x4e7   : > { %v2681_v27 = vmax.f32 %v3219_v25, 0.0  ;;  %3222 = vtanh.f32 %v2456_v24  ;;  %v2586_v28 = vpop.f32.mrf.mxu0 }
 0x4e8   : > { %2727 = vst [vmem:[%s4799_s18 + $0xc0] sm:$0xff] %v2679_v26  ;;  %3224 = vtanh.f32 %v2586_v28 }
 0x4e9   : > { %2729 = vst [vmem:[%s4799_s18 + $0xd0] sm:$0xff] %v2681_v27 }
 0x4eb   : > { %v3221_v29 = vpop.eup %3220 }
 0x4ec   : > { %v2680_v31 = vmax.f32 %v3221_v29, 0.0  ;;  %v2521_v16 = vpop.f32.mrf.mxu3 }
 0x4ed   : > { %v3223_v62 = vpop.eup %3222  ;;  %3226 = vtanh.f32 %v2521_v16 }
 0x4ee   : > { %v3225_v33 = vpop.eup %3224  ;;  %2728 = vst [vmem:[%s4799_s18 + $0xc8] sm:$0xff] %v2680_v31  ;;  %v2682_v34 = vmax.f32 %v3223_v62, 0.0  ;;  %v2459_v56 = vpop.f32.mrf.mxu1 }
 0x4ef   : > { %v2684_v35 = vmax.f32 %v3225_v33, 0.0  ;;  %3228 = vtanh.f32 %v2459_v56  ;;  %v2589_v36 = vpop.f32.mrf.mxu0 }
 0x4f0   : > { %2730 = vst [vmem:[%s4799_s18 + $0xd8] sm:$0xff] %v2682_v34  ;;  %3230 = vtanh.f32 %v2589_v36 }
 0x4f1   : > { %2732 = vst [vmem:[%s4799_s18 + $0xe8] sm:$0xff] %v2684_v35 }
 0x4f3   : > { %v3227_v55 = vpop.eup %3226 }
 0x4f4   : > { %v2683_v0 = vmax.f32 %v3227_v55, 0.0  ;;  %v2524_v30 = vpop.f32.mrf.mxu3 }
 0x4f5   : > { %v3229_v54 = vpop.eup %3228  ;;  %3232 = vtanh.f32 %v2524_v30 }
 0x4f6   : > { %v3231_v1 = vpop.eup %3230  ;;  %2731 = vst [vmem:[%s4799_s18 + $0xe0] sm:$0xff] %v2683_v0  ;;  %v2685_v10 = vmax.f32 %v3229_v54, 0.0  ;;  %v2462_v11 = vpop.f32.mrf.mxu1 }
 0x4f7   : > { %v2687_v19 = vmax.f32 %v3231_v1, 0.0  ;;  %3234 = vtanh.f32 %v2462_v11  ;;  %v2592_v15 = vpop.f32.mrf.mxu0 }
 0x4f8   : > { %2733 = vst [vmem:[%s4799_s18 + $0xf0] sm:$0xff] %v2685_v10  ;;  %3236 = vtanh.f32 %v2592_v15 }
 0x4f9   : > { %2735 = vst [vmem:[%s4799_s18 + $0x100] sm:$0xff] %v2687_v19 }
 0x4fb   : > { %v3233_v9 = vpop.eup %3232 }
 0x4fc   : > { %v2686_v20 = vmax.f32 %v3233_v9, 0.0  ;;  %v2527_v37 = vpop.f32.mrf.mxu3 }
 0x4fd   : > { %v3235_v39 = vpop.eup %3234  ;;  %3238 = vtanh.f32 %v2527_v37 }
 0x4fe   : > { %v3237_v47 = vpop.eup %3236  ;;  %2734 = vst [vmem:[%s4799_s18 + $0xf8] sm:$0xff] %v2686_v20  ;;  %v2688_v40 = vmax.f32 %v3235_v39, 0.0  ;;  %v2465_v41 = vpop.f32.mrf.mxu1 }
 0x4ff   : > { %v2690_v42 = vmax.f32 %v3237_v47, 0.0  ;;  %3240 = vtanh.f32 %v2465_v41  ;;  %v2595_v43 = vpop.f32.mrf.mxu0 }
 0x500   : > { %2736 = vst [vmem:[%s4799_s18 + $0x108] sm:$0xff] %v2688_v40  ;;  %3242 = vtanh.f32 %v2595_v43 }
 0x501   : > { %2738 = vst [vmem:[%s4799_s18 + $0x118] sm:$0xff] %v2690_v42 }
 0x503   : > { %v3239_v44 = vpop.eup %3238 }
 0x504   : > { %v2689_v12 = vmax.f32 %v3239_v44, 0.0  ;;  %v2530_v45 = vpop.f32.mrf.mxu3 }
 0x505   : > { %v3241_v38 = vpop.eup %3240  ;;  %3244 = vtanh.f32 %v2530_v45 }
 0x506   : > { %v3243_v46 = vpop.eup %3242  ;;  %2737 = vst [vmem:[%s4799_s18 + $0x110] sm:$0xff] %v2689_v12  ;;  %v2691_v3 = vmax.f32 %v3241_v38, 0.0  ;;  %v2468_v8 = vpop.f32.mrf.mxu1 }
 0x507   : > { %v2693_v48 = vmax.f32 %v3243_v46, 0.0  ;;  %3246 = vtanh.f32 %v2468_v8  ;;  %v2598_v49 = vpop.f32.mrf.mxu0 }
 0x508   : > { %2739 = vst [vmem:[%s4799_s18 + $0x120] sm:$0xff] %v2691_v3  ;;  %3248 = vtanh.f32 %v2598_v49 }
 0x509   : > { %2741 = vst [vmem:[%s4799_s18 + $0x130] sm:$0xff] %v2693_v48 }
 0x50b   : > { %v3245_v50 = vpop.eup %3244 }
 0x50c   : > { %v2692_v53 = vmax.f32 %v3245_v50, 0.0  ;;  %v2533_v57 = vpop.f32.mrf.mxu3 }
 0x50d   : > { %v3247_v52 = vpop.eup %3246  ;;  %3250 = vtanh.f32 %v2533_v57 }
 0x50e   : > { %v3249_v13 = vpop.eup %3248  ;;  %2740 = vst [vmem:[%s4799_s18 + $0x128] sm:$0xff] %v2692_v53  ;;  %v2694_v58 = vmax.f32 %v3247_v52, 0.0  ;;  %v2471_v60 = vpop.f32.mrf.mxu1 }
 0x50f   : > { %v2696_v61 = vmax.f32 %v3249_v13, 0.0  ;;  %3252 = vtanh.f32 %v2471_v60  ;;  %v2601_v51 = vpop.f32.mrf.mxu0 }
 0x510   : > { %2742 = vst [vmem:[%s4799_s18 + $0x138] sm:$0xff] %v2694_v58  ;;  %3254 = vtanh.f32 %v2601_v51 }
 0x511   : > { %2744 = vst [vmem:[%s4799_s18 + $0x148] sm:$0xff] %v2696_v61 }
 0x513   : > { %v3251_v4 = vpop.eup %3250 }
 0x514   : > { %v2695_v63 = vmax.f32 %v3251_v4, 0.0  ;;  %v2536_v18 = vpop.f32.mrf.mxu3 }
 0x515   : > { %v3253_v2 = vpop.eup %3252  ;;  %3256 = vtanh.f32 %v2536_v18 }
 0x516   : > { %v3255_v5 = vpop.eup %3254  ;;  %2743 = vst [vmem:[%s4799_s18 + $0x140] sm:$0xff] %v2695_v63  ;;  %v2697_v6 = vmax.f32 %v3253_v2, 0.0  ;;  %v2474_v7 = vpop.f32.mrf.mxu1 }
 0x517   : > { %v2699_v59 = vmax.f32 %v3255_v5, 0.0  ;;  %3258 = vtanh.f32 %v2474_v7  ;;  %v2604_v14 = vpop.f32.mrf.mxu0 }
 0x518   : > { %2745 = vst [vmem:[%s4799_s18 + $0x150] sm:$0xff] %v2697_v6  ;;  %3260 = vtanh.f32 %v2604_v14 }
 0x519   : > { %2747 = vst [vmem:[%s4799_s18 + $0x160] sm:$0xff] %v2699_v59 }
 0x51b   : > { %v3257_v17 = vpop.eup %3256 }
 0x51c   : > { %v2698_v21 = vmax.f32 %v3257_v17, 0.0  ;;  %v2539_v32 = vpop.f32.mrf.mxu3 }
 0x51d   : > { %v3259_v22 = vpop.eup %3258  ;;  %3262 = vtanh.f32 %v2539_v32 }
 0x51e   : > { %v3261_v23 = vpop.eup %3260  ;;  %2746 = vst [vmem:[%s4799_s18 + $0x158] sm:$0xff] %v2698_v21  ;;  %v2700_v25 = vmax.f32 %v3259_v22, 0.0 }
 0x51f   : > { %v2702_v26 = vmax.f32 %v3261_v23, 0.0 }
 0x520   : > { %2748 = vst [vmem:[%s4799_s18 + $0x168] sm:$0xff] %v2700_v25 }
 0x521   : > { %2750 = vst [vmem:[%s4799_s18 + $0x178] sm:$0xff] %v2702_v26 }
 0x523   : > { %v3263_v24 = vpop.eup %3262 }
 0x524   : > { %v2701_v27 = vmax.f32 %v3263_v24, 0.0 }
 0x526   : > { %2749 = vst [vmem:[%s4799_s18 + $0x170] sm:$0xff] %v2701_v27 }
 0x527 PF: > { %s23_s21 = sadd.s32 1, %s3318_s21  }
 0x528   : > { %p20_p4 = scmp.ge.s32.totalorder %s23_s21, 4  }
 0x52a   :  { %22 = sbr.rel (!%p20_p4) target bundleno = 1 (0x1), region = 112 }

</bundles_post_ra>
